<compile_context>
chip_gen: v5e
topology: v5e:2x2
jax: 0.10.0
libtpu: 0.0.40
codegen_flags: <defaults>
</compile_context>

<pallas_src>
import functools

import jax
import jax.numpy as jnp
import numpy as np
from jax.experimental import pallas as pl
from jax.experimental.pallas import tpu as pltpu


def _round_up(a, b):
    return (a + b - 1) // b * b


# ---------------------------------------------------------------------------
# Kernels
# ---------------------------------------------------------------------------
def _stats_kernel(x_ref, sum_r_ref, sum_i_ref, sq_r_ref, sq_i_ref, *, lane_tile, true_lanes):
    """Per-(batch, channel, plane) partial sums / sums-of-squares.

    Grid = (N, num_lane_tiles); the lane axis (last grid axis) is the reduction axis and the
    four (1, C, 1) output blocks stay resident across it (accumulate-in-output pattern).
    Real/imag planes are separated by lane parity of the interleaved layout.
    """
    j = pl.program_id(1)

    @pl.when(j == 0)
    def _():
        sum_r_ref[...] = jnp.zeros_like(sum_r_ref)
        sum_i_ref[...] = jnp.zeros_like(sum_i_ref)
        sq_r_ref[...] = jnp.zeros_like(sq_r_ref)
        sq_i_ref[...] = jnp.zeros_like(sq_i_ref)

    x = x_ref[...].astype(jnp.float32)                      # (1, C, TL)
    lane = jax.lax.broadcasted_iota(jnp.int32, (1, 1, x.shape[-1]), 2)
    valid = (lane + j * lane_tile) < true_lanes             # ragged last tile mask (no jnp.pad)
    even = jnp.bitwise_and(lane, 1) == 0                    # even lanes = real plane

    xm = jnp.where(valid, x, 0.0)
    xr = jnp.where(even, xm, 0.0)                           # real values, zeros on imag lanes
    xi = xm - xr                                            # imag values, zeros on real lanes

    sum_r_ref[...] += jnp.sum(xr, axis=2, keepdims=True)
    sum_i_ref[...] += jnp.sum(xi, axis=2, keepdims=True)
    sq_r_ref[...] += jnp.sum(xr * xr, axis=2, keepdims=True)
    sq_i_ref[...] += jnp.sum(xi * xi, axis=2, keepdims=True)


def _normalize_kernel(x_ref, scale_r_ref, scale_i_ref, shift_r_ref, shift_i_ref, y_ref):
    """y = x * scale + shift with per-lane scale/shift selected by real/imag lane parity."""
    x = x_ref[...].astype(jnp.float32)                      # (1, C, TL)
    lane = jax.lax.broadcasted_iota(jnp.int32, (1, 1, x.shape[-1]), 2)
    even = jnp.bitwise_and(lane, 1) == 0
    scale = jnp.where(even, scale_r_ref[...][None], scale_i_ref[...][None])   # (1, C, TL)
    shift = jnp.where(even, shift_r_ref[...][None], shift_i_ref[...][None])
    y_ref[...] = (x * scale + shift).astype(y_ref.dtype)


def _fused_kernel(x_ref, gamma_r_ref, gamma_i_ref, beta_r_ref, beta_i_ref, y_ref,
                  *, inv_count, eps):
    """Single-pass BN when the whole slab fits in VMEM: read x once, stats + normalize + store."""
    x = x_ref[...].astype(jnp.float32)                      # (N, C, S2)
    lane = jax.lax.broadcasted_iota(jnp.int32, (1, 1, x.shape[-1]), 2)
    even = jnp.bitwise_and(lane, 1) == 0

    xr = jnp.where(even, x, 0.0)
    xi = x - xr

    sum_r = jnp.sum(xr, axis=(0, 2), keepdims=True)         # (1, C, 1)
    sum_i = jnp.sum(xi, axis=(0, 2), keepdims=True)
    sq_r = jnp.sum(xr * xr, axis=(0, 2), keepdims=True)
    sq_i = jnp.sum(xi * xi, axis=(0, 2), keepdims=True)

    mean_r = sum_r * inv_count
    mean_i = sum_i * inv_count
    var_r = jnp.maximum(sq_r * inv_count - mean_r * mean_r, 0.0)
    var_i = jnp.maximum(sq_i * inv_count - mean_i * mean_i, 0.0)

    scale_r = gamma_r_ref[...][None] * jax.lax.rsqrt(var_r + eps)
    scale_i = gamma_i_ref[...][None] * jax.lax.rsqrt(var_i + eps)
    shift_r = beta_r_ref[...][None] - mean_r * scale_r
    shift_i = beta_i_ref[...][None] - mean_i * scale_i

    scale = jnp.where(even, scale_r, scale_i)               # (1, C, S2)
    shift = jnp.where(even, shift_r, shift_i)
    y_ref[...] = (x * scale + shift).astype(y_ref.dtype)


# ---------------------------------------------------------------------------
# Wrapper
# ---------------------------------------------------------------------------
def naive_complex_batchnorm3d(x, gamma_r, beta_r, gamma_i, beta_i, *, eps=1e-5,
                              target_block_bytes=2 << 20, allow_fused=True):
    """x: (N, C, D, H, W, 2).  Returns the same shape and dtype.

    Training-mode forward of NaiveComplexBatchNorm3d: BatchNorm3d applied independently to the
    real plane (x[..., 0]) and the imaginary plane (x[..., 1]) with batch statistics.
    """
    N, C, D, H, W, two = x.shape
    assert two == 2, "last dim must hold (real, imag)"
    S2 = D * H * W * 2                      # interleaved lane extent (even = real, odd = imag)
    L = N * D * H * W                       # per-(channel, plane) element count
    dtype = x.dtype
    itemsize = np.dtype(dtype).itemsize
    inv_count = 1.0 / float(L)
    eps = float(eps)

    # Free layout plumbing: merge trailing contiguous dims only (no transpose, no pad, no copy).
    x3 = x.reshape(N, C, S2)
    g_r = gamma_r.reshape(C, 1).astype(jnp.float32)
    g_i = gamma_i.reshape(C, 1).astype(jnp.float32)
    b_r = beta_r.reshape(C, 1).astype(jnp.float32)
    b_i = beta_i.reshape(C, 1).astype(jnp.float32)

    vmem_limit = 32 * 1024 * 1024           # safe on v5e/v6e (128 MiB phys) and v7x (64 MiB phys)

    # ---- fused single-pass path: whole slab resident in VMEM, x read from HBM once ----
    fused_footprint = N * C * S2 * (3 * 4 + 2 * itemsize) + C * S2 * 8
    if allow_fused and fused_footprint <= (12 << 20):
        x_full_spec = pl.BlockSpec((N, C, S2), lambda i: (0, 0, 0))
        param_spec = pl.BlockSpec((C, 1), lambda i: (0, 0))
        y3 = pl.pallas_call(
            functools.partial(_fused_kernel, inv_count=inv_count, eps=eps),
            out_shape=jax.ShapeDtypeStruct((N, C, S2), dtype),
            grid=(1,),
            in_specs=[x_full_spec, param_spec, param_spec, param_spec, param_spec],
            out_specs=x_full_spec,
            compiler_params=pltpu.CompilerParams(
                dimension_semantics=("arbitrary",),
                vmem_limit_bytes=vmem_limit),
        )(x3, g_r, g_i, b_r, b_i)
        return y3.reshape(N, C, D, H, W, 2)

    # ---- general two-pass path ----
    # VMEM-budget-aware lane tile: ~target_block_bytes per x block, multiple of 128 lanes,
    # pipelined footprint (2 in + 2 out buffers in pass 2) capped well below the scoped limit.
    lanes_full = _round_up(S2, 128)
    TL = _round_up(max(target_block_bytes // max(C * itemsize, 1), 128), 128)
    TL = min(TL, lanes_full)
    while 4 * C * TL * itemsize > (8 << 20) and TL > 128:
        TL = _round_up(TL // 2, 128)
    nL = pl.cdiv(S2, TL)

    x_spec = pl.BlockSpec((1, C, TL), lambda n, j: (n, 0, j))
    stat_spec = pl.BlockSpec((1, C, 1), lambda n, j: (n, 0, 0))
    param_spec = pl.BlockSpec((C, 1), lambda n, j: (0, 0))
    stat_shape = jax.ShapeDtypeStruct((N, C, 1), jnp.float32)

    # Pass 1: per-(n, channel, plane) partial sums.  Batch axis "parallel" (megacore / v7x two-TC),
    # lane-tile axis "arbitrary" (accumulation into the resident output block).
    sum_r, sum_i, sq_r, sq_i = pl.pallas_call(
        functools.partial(_stats_kernel, lane_tile=TL, true_lanes=S2),
        out_shape=(stat_shape, stat_shape, stat_shape, stat_shape),
        grid=(N, nL),
        in_specs=[x_spec],
        out_specs=(stat_spec, stat_spec, stat_spec, stat_spec),
        compiler_params=pltpu.CompilerParams(
            dimension_semantics=("parallel", "arbitrary"),
            vmem_limit_bytes=vmem_limit),
    )(x3)

    # Tiny finalize in XLA (O(C) elements): combine partials, fold stats + affine into scale/shift.
    sum_r = jnp.sum(sum_r, axis=0)          # (C, 1)
    sum_i = jnp.sum(sum_i, axis=0)
    sq_r = jnp.sum(sq_r, axis=0)
    sq_i = jnp.sum(sq_i, axis=0)
    mean_r = sum_r * inv_count
    mean_i = sum_i * inv_count
    var_r = jnp.maximum(sq_r * inv_count - mean_r * mean_r, 0.0)   # biased var (torch training)
    var_i = jnp.maximum(sq_i * inv_count - mean_i * mean_i, 0.0)
    scale_r = g_r * jax.lax.rsqrt(var_r + eps)
    scale_i = g_i * jax.lax.rsqrt(var_i + eps)
    shift_r = b_r - mean_r * scale_r
    shift_i = b_i - mean_i * scale_i

    # Pass 2: fused broadcast FMA with lane-parity scale/shift select; fully parallel grid,
    # lane-dense native-dtype loads/stores.
    y3 = pl.pallas_call(
        _normalize_kernel,
        out_shape=jax.ShapeDtypeStruct((N, C, S2), dtype),
        grid=(N, nL),
        in_specs=[x_spec, param_spec, param_spec, param_spec, param_spec],
        out_specs=x_spec,
        compiler_params=pltpu.CompilerParams(
            dimension_semantics=("parallel", "parallel"),
            vmem_limit_bytes=vmem_limit),
    )(x3, scale_r, scale_i, shift_r, shift_i)

    return y3.reshape(N, C, D, H, W, 2)


# ---------------------------------------------------------------------------
# Pure-JAX reference (PyTorch training-mode BatchNorm3d semantics per plane)
# ---------------------------------------------------------------------------
def naive_complex_batchnorm3d_ref(x, gamma_r, beta_r, gamma_i, beta_i, eps=1e-5):
    def bn3d(v, g, b):
        mean = jnp.mean(v, axis=(0, 2, 3, 4), keepdims=True)
        var = jnp.var(v, axis=(0, 2, 3, 4), keepdims=True)      # biased variance
        vhat = (v - mean) * jax.lax.rsqrt(var + eps)
        return vhat * g.reshape(1, -1, 1, 1, 1) + b.reshape(1, -1, 1, 1, 1)

    return jnp.stack([bn3d(x[..., 0], gamma_r, beta_r),
                      bn3d(x[..., 1], gamma_i, beta_i)], axis=-1)


if __name__ == "__main__":
    N, C, D, H, W = 2, 4, 8, 16, 16          # S2 = D*H*W*2 = 4096 interleaved lanes per (n, c)

    key = jax.random.PRNGKey(0)
    kx, kg1, kb1, kg2, kb2 = jax.random.split(key, 5)
    x = jax.random.normal(kx, (N, C, D, H, W, 2), jnp.float32)
    # random affine params (PyTorch default would be gamma=1, beta=0) to exercise the affine path
    gamma_r = jax.random.uniform(kg1, (C,), jnp.float32, 0.5, 1.5)
    beta_r = jax.random.uniform(kb1, (C,), jnp.float32, -0.5, 0.5)
    gamma_i = jax.random.uniform(kg2, (C,), jnp.float32, 0.5, 1.5)
    beta_i = jax.random.uniform(kb2, (C,), jnp.float32, -0.5, 0.5)

    y_ref = naive_complex_batchnorm3d_ref(x, gamma_r, beta_r, gamma_i, beta_i)

    # Fused single-kernel path (whole slab resident in VMEM; x read from HBM once).
    y_fused = naive_complex_batchnorm3d(x, gamma_r, beta_r, gamma_i, beta_i, allow_fused=True)
    y_fused = jax.block_until_ready(y_fused)
    np.testing.assert_allclose(np.asarray(y_fused), np.asarray(y_ref), rtol=2e-4, atol=2e-4)

    # General two-pass tiled path; small lane tile (512) forces 8 lane tiles so the stats
    # accumulation grid loop and the parallel batch axis are both exercised.
    y_tiled = naive_complex_batchnorm3d(x, gamma_r, beta_r, gamma_i, beta_i,
                                        allow_fused=False, target_block_bytes=8 * 1024)
    y_tiled = jax.block_until_ready(y_tiled)
    np.testing.assert_allclose(np.asarray(y_tiled), np.asarray(y_ref), rtol=2e-4, atol=2e-4)

    print("KERNEL_OK")
</pallas_src>

<mosaic_0001>
module attributes {stable_mosaic.version = 11 : i64} {
  func.func @_fused_kernel(%arg0: i32, %arg1: memref<2x4x4096xf32, #tpu.memory_space<vmem>>, %arg2: memref<4x1xf32, #tpu.memory_space<vmem>>, %arg3: memref<4x1xf32, #tpu.memory_space<vmem>>, %arg4: memref<4x1xf32, #tpu.memory_space<vmem>>, %arg5: memref<4x1xf32, #tpu.memory_space<vmem>>, %arg6: memref<2x4x4096xf32, #tpu.memory_space<vmem>>) attributes {dimension_semantics = [#tpu.dimension_semantics<arbitrary>], iteration_bounds = array<i64: 1>, scalar_prefetch = 0 : i64, scratch_operands = 0 : i64, tpu.core_type = #tpu.core_type<tc>, window_params = [{pipeline_mode = #tpu.pipeline_mode<synchronous>, transform_indices = @transform_0, window_bounds = array<i64: 2, 4, 4096>}, {pipeline_mode = #tpu.pipeline_mode<synchronous>, transform_indices = @transform_1, window_bounds = array<i64: 4, 1>}, {pipeline_mode = #tpu.pipeline_mode<synchronous>, transform_indices = @transform_2, window_bounds = array<i64: 4, 1>}, {pipeline_mode = #tpu.pipeline_mode<synchronous>, transform_indices = @transform_3, window_bounds = array<i64: 4, 1>}, {pipeline_mode = #tpu.pipeline_mode<synchronous>, transform_indices = @transform_4, window_bounds = array<i64: 4, 1>}, {pipeline_mode = #tpu.pipeline_mode<synchronous>, transform_indices = @transform_5, window_bounds = array<i64: 2, 4, 4096>}]} {
    %c0 = arith.constant 0 : index
    %c0_0 = arith.constant 0 : index
    %c0_1 = arith.constant 0 : index
    %0 = vector.load %arg1[%c0, %c0_0, %c0_1] : memref<2x4x4096xf32, #tpu.memory_space<vmem>>, vector<2x4x4096xf32>
    %1 = tpu.iota {dimensions = array<i32: 2>} : vector<1x1x4096xi32>
    %c1_i32 = arith.constant 1 : i32
    %2 = vector.broadcast %c1_i32 : i32 to vector<1x1x4096xi32>
    %3 = arith.andi %1, %2 : vector<1x1x4096xi32>
    %c0_i32 = arith.constant 0 : i32
    %4 = vector.broadcast %c0_i32 : i32 to vector<1x1x4096xi32>
    %5 = arith.cmpi eq, %3, %4 : vector<1x1x4096xi32>
    %cst = arith.constant 0.000000e+00 : f32
    %6 = vector.shape_cast %5 : vector<1x1x4096xi1> to vector<1x1x4096xi1>
    %7 = vector.broadcast %6 : vector<1x1x4096xi1> to vector<2x4x4096xi1>
    %8 = vector.broadcast %cst : f32 to vector<2x4x4096xf32>
    %9 = arith.select %7, %0, %8 : vector<2x4x4096xi1>, vector<2x4x4096xf32>
    %10 = arith.subf %0, %9 : vector<2x4x4096xf32>
    %cst_2 = arith.constant dense<0.000000e+00> : vector<4xf32>
    %11 = vector.multi_reduction <add>, %9, %cst_2 [0, 2] : vector<2x4x4096xf32> to vector<4xf32>
    %12 = vector.shape_cast %11 : vector<4xf32> to vector<1x4x1xf32>
    %cst_3 = arith.constant dense<0.000000e+00> : vector<4xf32>
    %13 = vector.multi_reduction <add>, %10, %cst_3 [0, 2] : vector<2x4x4096xf32> to vector<4xf32>
    %14 = vector.shape_cast %13 : vector<4xf32> to vector<1x4x1xf32>
    %15 = arith.mulf %9, %9 : vector<2x4x4096xf32>
    %cst_4 = arith.constant dense<0.000000e+00> : vector<4xf32>
    %16 = vector.multi_reduction <add>, %15, %cst_4 [0, 2] : vector<2x4x4096xf32> to vector<4xf32>
    %17 = vector.shape_cast %16 : vector<4xf32> to vector<1x4x1xf32>
    %18 = arith.mulf %10, %10 : vector<2x4x4096xf32>
    %cst_5 = arith.constant dense<0.000000e+00> : vector<4xf32>
    %19 = vector.multi_reduction <add>, %18, %cst_5 [0, 2] : vector<2x4x4096xf32> to vector<4xf32>
    %20 = vector.shape_cast %19 : vector<4xf32> to vector<1x4x1xf32>
    %cst_6 = arith.constant 2.44140625E-4 : f32
    %21 = vector.broadcast %cst_6 : f32 to vector<1x4x1xf32>
    %22 = arith.mulf %12, %21 : vector<1x4x1xf32>
    %cst_7 = arith.constant 2.44140625E-4 : f32
    %23 = vector.broadcast %cst_7 : f32 to vector<1x4x1xf32>
    %24 = arith.mulf %14, %23 : vector<1x4x1xf32>
    %cst_8 = arith.constant 2.44140625E-4 : f32
    %25 = vector.broadcast %cst_8 : f32 to vector<1x4x1xf32>
    %26 = arith.mulf %17, %25 : vector<1x4x1xf32>
    %27 = arith.mulf %22, %22 : vector<1x4x1xf32>
    %28 = arith.subf %26, %27 : vector<1x4x1xf32>
    %cst_9 = arith.constant 0.000000e+00 : f32
    %29 = vector.broadcast %cst_9 : f32 to vector<1x4x1xf32>
    %30 = arith.maximumf %28, %29 : vector<1x4x1xf32>
    %cst_10 = arith.constant 2.44140625E-4 : f32
    %31 = vector.broadcast %cst_10 : f32 to vector<1x4x1xf32>
    %32 = arith.mulf %20, %31 : vector<1x4x1xf32>
    %33 = arith.mulf %24, %24 : vector<1x4x1xf32>
    %34 = arith.subf %32, %33 : vector<1x4x1xf32>
    %cst_11 = arith.constant 0.000000e+00 : f32
    %35 = vector.broadcast %cst_11 : f32 to vector<1x4x1xf32>
    %36 = arith.maximumf %34, %35 : vector<1x4x1xf32>
    %c0_12 = arith.constant 0 : index
    %c0_13 = arith.constant 0 : index
    %37 = vector.load %arg2[%c0_12, %c0_13] : memref<4x1xf32, #tpu.memory_space<vmem>>, vector<4x1xf32>
    %38 = vector.shape_cast %37 : vector<4x1xf32> to vector<1x4x1xf32>
    %cst_14 = arith.constant 9.99999974E-6 : f32
    %39 = vector.broadcast %cst_14 : f32 to vector<1x4x1xf32>
    %40 = arith.addf %30, %39 : vector<1x4x1xf32>
    %41 = math.rsqrt %40 : vector<1x4x1xf32>
    %42 = arith.mulf %38, %41 : vector<1x4x1xf32>
    %c0_15 = arith.constant 0 : index
    %c0_16 = arith.constant 0 : index
    %43 = vector.load %arg3[%c0_15, %c0_16] : memref<4x1xf32, #tpu.memory_space<vmem>>, vector<4x1xf32>
    %44 = vector.shape_cast %43 : vector<4x1xf32> to vector<1x4x1xf32>
    %cst_17 = arith.constant 9.99999974E-6 : f32
    %45 = vector.broadcast %cst_17 : f32 to vector<1x4x1xf32>
    %46 = arith.addf %36, %45 : vector<1x4x1xf32>
    %47 = math.rsqrt %46 : vector<1x4x1xf32>
    %48 = arith.mulf %44, %47 : vector<1x4x1xf32>
    %c0_18 = arith.constant 0 : index
    %c0_19 = arith.constant 0 : index
    %49 = vector.load %arg4[%c0_18, %c0_19] : memref<4x1xf32, #tpu.memory_space<vmem>>, vector<4x1xf32>
    %50 = vector.shape_cast %49 : vector<4x1xf32> to vector<1x4x1xf32>
    %51 = arith.mulf %22, %42 : vector<1x4x1xf32>
    %52 = arith.subf %50, %51 : vector<1x4x1xf32>
    %c0_20 = arith.constant 0 : index
    %c0_21 = arith.constant 0 : index
    %53 = vector.load %arg5[%c0_20, %c0_21] : memref<4x1xf32, #tpu.memory_space<vmem>>, vector<4x1xf32>
    %54 = vector.shape_cast %53 : vector<4x1xf32> to vector<1x4x1xf32>
    %55 = arith.mulf %24, %48 : vector<1x4x1xf32>
    %56 = arith.subf %54, %55 : vector<1x4x1xf32>
    %57 = vector.shape_cast %5 : vector<1x1x4096xi1> to vector<1x1x4096xi1>
    %58 = vector.broadcast %57 : vector<1x1x4096xi1> to vector<1x4x4096xi1>
    %59 = vector.shape_cast %42 : vector<1x4x1xf32> to vector<1x4x1xf32>
    %60 = vector.broadcast %59 : vector<1x4x1xf32> to vector<1x4x4096xf32>
    %61 = vector.shape_cast %48 : vector<1x4x1xf32> to vector<1x4x1xf32>
    %62 = vector.broadcast %61 : vector<1x4x1xf32> to vector<1x4x4096xf32>
    %63 = arith.select %58, %60, %62 : vector<1x4x4096xi1>, vector<1x4x4096xf32>
    %64 = vector.shape_cast %5 : vector<1x1x4096xi1> to vector<1x1x4096xi1>
    %65 = vector.broadcast %64 : vector<1x1x4096xi1> to vector<1x4x4096xi1>
    %66 = vector.shape_cast %52 : vector<1x4x1xf32> to vector<1x4x1xf32>
    %67 = vector.broadcast %66 : vector<1x4x1xf32> to vector<1x4x4096xf32>
    %68 = vector.shape_cast %56 : vector<1x4x1xf32> to vector<1x4x1xf32>
    %69 = vector.broadcast %68 : vector<1x4x1xf32> to vector<1x4x4096xf32>
    %70 = arith.select %65, %67, %69 : vector<1x4x4096xi1>, vector<1x4x4096xf32>
    %71 = vector.broadcast %63 : vector<1x4x4096xf32> to vector<2x4x4096xf32>
    %72 = arith.mulf %0, %71 : vector<2x4x4096xf32>
    %73 = vector.broadcast %70 : vector<1x4x4096xf32> to vector<2x4x4096xf32>
    %74 = arith.addf %72, %73 : vector<2x4x4096xf32>
    %c0_22 = arith.constant 0 : index
    %c0_23 = arith.constant 0 : index
    %c0_24 = arith.constant 0 : index
    %75 = vector.load %arg6[%c0_22, %c0_23, %c0_24] : memref<2x4x4096xf32, #tpu.memory_space<vmem>>, vector<2x4x4096xf32>
    tpu.vector_store %arg6[%c0_22, %c0_23, %c0_24], %74 {strides = array<i32>} : memref<2x4x4096xf32, #tpu.memory_space<vmem>>, vector<2x4x4096xf32>,
    return
  }
  func.func @transform_0(%arg0: i32) -> (i32, i32, i32) {
    %c0_i32 = arith.constant 0 : i32
    %c0_i32_0 = arith.constant 0 : i32
    %c0_i32_1 = arith.constant 0 : i32
    %c0_i32_2 = arith.constant 0 : i32
    return %c0_i32, %c0_i32_0, %c0_i32_1 : i32, i32, i32
  }
  func.func @transform_1(%arg0: i32) -> (i32, i32) {
    %c0_i32 = arith.constant 0 : i32
    %c0_i32_0 = arith.constant 0 : i32
    %c0_i32_1 = arith.constant 0 : i32
    return %c0_i32, %c0_i32_0 : i32, i32
  }
  func.func @transform_2(%arg0: i32) -> (i32, i32) {
    %c0_i32 = arith.constant 0 : i32
    %c0_i32_0 = arith.constant 0 : i32
    %c0_i32_1 = arith.constant 0 : i32
    return %c0_i32, %c0_i32_0 : i32, i32
  }
  func.func @transform_3(%arg0: i32) -> (i32, i32) {
    %c0_i32 = arith.constant 0 : i32
    %c0_i32_0 = arith.constant 0 : i32
    %c0_i32_1 = arith.constant 0 : i32
    return %c0_i32, %c0_i32_0 : i32, i32
  }
  func.func @transform_4(%arg0: i32) -> (i32, i32) {
    %c0_i32 = arith.constant 0 : i32
    %c0_i32_0 = arith.constant 0 : i32
    %c0_i32_1 = arith.constant 0 : i32
    return %c0_i32, %c0_i32_0 : i32, i32
  }
  func.func @transform_5(%arg0: i32) -> (i32, i32, i32) {
    %c0_i32 = arith.constant 0 : i32
    %c0_i32_0 = arith.constant 0 : i32
    %c0_i32_1 = arith.constant 0 : i32
    %c0_i32_2 = arith.constant 0 : i32
    return %c0_i32, %c0_i32_0, %c0_i32_1 : i32, i32, i32
  }
}

</mosaic_0001>

<bundles_post_ra>
// kernel: tpu_custom_call.1
= control target key start
LH: loop header
LB: loop body
LE: loop exit
PB: predicated region body
PF: predicated region fallthrough
CT: control target
= control target key end

     0   :  { %10 = vsyncpa [#allocation3], 0  ;;  %s4611_s0 = inlined_call_operand.hbm [shape: f32[2,4,4096], index: 0, kind: input, shape index: {}]   ;;  %s4612_s1 = inlined_call_operand.vmem [shape: f32[4,1], index: 1, kind: input, shape index: {}]   ;;  %s4613_s2 = inlined_call_operand.vmem [shape: f32[4,1], index: 2, kind: input, shape index: {}]   ;;  %s4614_s3 = inlined_call_operand.vmem [shape: f32[4,1], index: 3, kind: input, shape index: {}]   ;;  %s4615_s4 = inlined_call_operand.vmem [shape: f32[4,1], index: 4, kind: input, shape index: {}]   ;;  %s4616_s5 = inlined_call_operand.hbm [shape: f32[2,4,4096], index: 5, kind: output, shape index: {}]  }
   0x1   :  { %11 = vsyncpa [#allocation4], 0  ;;  %s16_s20 = sshll.u32 %s4611_s0, 4  ;;  %s2149_s21 = smov [#allocation2]   ;;  %s17_s20 = int_to_ptr.hbm [resolvable:$true] %s16_s20 }
   0x2   :  { %s18_s22 = sshll.u32 %s2149_s21, 4  ;;  %s2150_s23 = smov 2048   ;;  %s19_s22 = int_to_ptr.vmem [resolvable:$true] %s18_s22 }
   0x3   :  { %s2151_s24 = smov 128  }
   0x4   :  { %24 = dma.hbm_to_vmem [thread:$0]  %s17_s20, 4096, %s19_s22, [#allocation3], %s2150_s23, %s2150_s23, %s2151_s24  }
   0x5   :  { %2145 = dma.done.wait [#allocation3], 4096  }
   0x6   :  { %2146 = vsyncadd [#allocation3], 4294963200  ;;  %v2190_v0 = vld [vmem:[#allocation2] sm:$0xff]  ;;  %v2192_v1 = vld [vmem:[#allocation2 + $0x8] sm:$0xff]  ;;  %v69_v28 = vlaneseq  ;;  %s2072_s7 = sshll.u32 %s4616_s5, 4  ;;  %s2073_s7 = int_to_ptr.hbm [resolvable:$true] %s2072_s7 }
   0x7   :  { %4852 = vst [vmem:[#allocation8_spill] sm:$0xff] %v2190_v0  ;;  %v2194_v2 = vld [vmem:[#allocation2 + $0x10] sm:$0xff]  ;;  %v2196_v3 = vld [vmem:[#allocation2 + $0x18] sm:$0xff]  ;;  %v2202_v4 = vld [vmem:[#allocation2 + $0x20] sm:$0xff] }
   0x8   :  { %4853 = vst [vmem:[#allocation9_spill] sm:$0xff] %v2192_v1  ;;  %v2204_v5 = vld [vmem:[#allocation2 + $0x28] sm:$0xff]  ;;  %v2208_v7 = vld [vmem:[#allocation2 + $0x30] sm:$0xff]  ;;  %v2222_v14 = vld [vmem:[#allocation2 + $0x38] sm:$0xff]  ;;  %v2262_v31 = vand.u32 127, %v69_v28 }
   0x9   :  { %4854 = vst [vmem:[#allocation10_spill] sm:$0xff] %v2194_v2  ;;  %v2230_v16 = vld [vmem:[#allocation2 + $0x40] sm:$0xff]  ;;  %v2232_v17 = vld [vmem:[#allocation2 + $0x48] sm:$0xff]  ;;  %v2236_v19 = vld [vmem:[#allocation2 + $0x50] sm:$0xff] }
   0xa   :  { %4855 = vst [vmem:[#allocation11_spill] sm:$0xff] %v2196_v3  ;;  %v2250_v26 = vld [vmem:[#allocation2 + $0x58] sm:$0xff]  ;;  %v2258_v29 = vld [vmem:[#allocation2 + $0x60] sm:$0xff]  ;;  %v2260_v30 = vld [vmem:[#allocation2 + $0x68] sm:$0xff]  ;;  %v2288_v42 = vadd.s32 128, %v2262_v31  ;;  %v2291_v43 = vadd.s32 256, %v2262_v31 }
   0xb   :  { %262 = vst [vmem:[#allocation1] ss:$2 sm:$0xff] %v2190_v0  ;;  %v2266_v33 = vld [vmem:[#allocation2 + $0x70] sm:$0xff]  ;;  %v2280_v40 = vld [vmem:[#allocation2 + $0x78] sm:$0xff]  ;;  %v2294_v44 = vadd.s32 384, %v2262_v31  ;;  %v2297_v45 = vadd.s32 512, %v2262_v31 }
   0xc   :  { %264 = vst [vmem:[#allocation1 + $0x10] ss:$2 sm:$0xff] %v2192_v1  ;;  %v2301_v46 = vadd.s32 640, %v2262_v31  ;;  %v2304_v47 = vadd.s32 768, %v2262_v31  ;;  %v2307_v48 = vadd.s32 896, %v2262_v31  ;;  %v2310_v49 = vadd.s32 1024, %v2262_v31 }
   0xd   :  { %266 = vst [vmem:[#allocation1 + $0x20] ss:$2 sm:$0xff] %v2194_v2  ;;  %v2313_v50 = vadd.s32 1152, %v2262_v31  ;;  %v2316_v51 = vadd.s32 1280, %v2262_v31  ;;  %v2319_v52 = vadd.s32 1408, %v2262_v31  ;;  %v2322_v53 = vadd.s32 1536, %v2262_v31 }
   0xe   :  { %268 = vst [vmem:[#allocation1 + $0x30] ss:$2 sm:$0xff] %v2196_v3  ;;  %v2325_v54 = vadd.s32 1664, %v2262_v31  ;;  %v2328_v55 = vadd.s32 1792, %v2262_v31  ;;  %v2331_v56 = vadd.s32 1920, %v2262_v31  ;;  %v2334_v57 = vadd.s32 2048, %v2262_v31 }
   0xf   :  { %4856 = vst [vmem:[#allocation12_spill] sm:$0xff] %v2202_v4  ;;  %v2336_v58 = vld [vmem:[#allocation2 + $0x80] sm:$0xff]  ;;  %v2338_v59 = vld [vmem:[#allocation2 + $0x88] sm:$0xff]  ;;  %v2341_v60 = vadd.s32 2176, %v2262_v31  ;;  %v2345_v62 = vld [vmem:[#allocation2 + $0x90] sm:$0xff]  ;;  %v103_v3 = vand.u32 1, %v2288_v42 }
  0x10   :  { %4857 = vst [vmem:[#allocation13_spill] sm:$0xff] %v2204_v5  ;;  %v104_v2 = vand.u32 1, %v2291_v43  ;;  %v105_v1 = vand.u32 1, %v2294_v44  ;;  %v106_v0 = vand.u32 1, %v2297_v45  ;;  %v112_v42 = vand.u32 1, %v2316_v51 }
  0x11   :  { %4858 = vst [vmem:[#allocation14_spill] sm:$0xff] %v2208_v7  ;;  %v113_v43 = vand.u32 1, %v2319_v52  ;;  %v114_v44 = vand.u32 1, %v2322_v53  ;;  %v115_v52 = vand.u32 1, %v2325_v54  ;;  %vm2473_vm1 = vcmp.eq.s32.totalorder %v103_v3, 0  ;;  %v2495_v3 = vld [vmem:[#allocation2 + $0xc8] sm:$0xff] }
  0x12   :  { %v2206_v6 = vld.sshfl [vmem:[#allocation1] sm:$0xff pattern:$0x75316420]  ;;  %v2210_v8 = vld.sshfl [vmem:[#allocation1 + $0x8] sm:$0xff pattern:$0x75316420] }
  0x13   :  { %v2212_v9 = vld.sshfl [vmem:[#allocation1 + $0x10] sm:$0xff pattern:$0x75316420]  ;;  %v2214_v10 = vld.sshfl [vmem:[#allocation1 + $0x18] sm:$0xff pattern:$0x75316420] }
  0x14   :  { %v2216_v11 = vld.sshfl [vmem:[#allocation1 + $0x20] sm:$0xff pattern:$0x75316420]  ;;  %v2218_v12 = vld.sshfl [vmem:[#allocation1 + $0x28] sm:$0xff pattern:$0x75316420] }
  0x15   :  { %v2220_v13 = vld.sshfl [vmem:[#allocation1 + $0x30] sm:$0xff pattern:$0x75316420]  ;;  %4859 = vst [vmem:[#allocation15_spill] sm:$0xff] %v2222_v14  ;;  %vm2479_vm2 = vcmp.eq.s32.totalorder %v104_v2, 0  ;;  %vm2483_vm3 = vcmp.eq.s32.totalorder %v105_v1, 0 }
  0x16   :  { %v2224_v15 = vld.sshfl [vmem:[#allocation1 + $0x38] sm:$0xff pattern:$0x75316420]  ;;  %277 = vst [vmem:[#allocation1] ss:$2 sm:$0xff] %v2202_v4  ;;  %v2381_v4 = vadd.s32 2944, %v2262_v31 }
  0x17   :  { %278 = vst [vmem:[#allocation1 + $0x10] ss:$2 sm:$0xff] %v2204_v5  ;;  %v2378_v5 = vadd.s32 2816, %v2262_v31  ;;  %vm2487_vm4 = vcmp.eq.s32.totalorder %v106_v0, 0  ;;  %v4919_v2 = vmov 0  ;;  %v4922_v1 = vmov 0 }
  0x18   :  { %279 = vst [vmem:[#allocation1 + $0x20] ss:$2 sm:$0xff] %v2208_v7  ;;  %v2374_v7 = vadd.s32 2688, %v2262_v31  ;;  %vm2534_vm10 = vcmp.eq.s32.totalorder %v112_v42, 0  ;;  %vm2538_vm11 = vcmp.eq.s32.totalorder %v113_v43, 0  ;;  %vm2542_vm12 = vcmp.eq.s32.totalorder %v114_v44, 0 }
  0x19   :  { %280 = vst [vmem:[#allocation1 + $0x30] ss:$2 sm:$0xff] %v2222_v14  ;;  %v2371_v14 = vadd.s32 2560, %v2262_v31  ;;  %vm2546_vm13 = vcmp.eq.s32.totalorder %v115_v52, 0  ;;  %v4953_v42 = vmov 0  ;;  %v4956_v43 = vmov 0 }
  0x1a   :  { %4860 = vst [vmem:[#allocation16_spill] sm:$0xff] %v2230_v16  ;;  %v2567_v44 = vsel %vm2473_vm1, %v2210_v8, 0.0  ;;  %v4965_v52 = vmov 0 }
  0x1b   :  { %4861 = vst [vmem:[#allocation17_spill] sm:$0xff] %v2232_v17  ;;  %v122_v54 = vand.u32 1, %v2371_v14 }
  0x1c   :  { %4862 = vst [vmem:[#allocation18_spill] sm:$0xff] %v2236_v19 }
  0x1d   :  { %v2234_v18 = vld.sshfl [vmem:[#allocation1] sm:$0xff pattern:$0x75316420]  ;;  %v2238_v20 = vld.sshfl [vmem:[#allocation1 + $0x8] sm:$0xff pattern:$0x75316420] }
  0x1e   :  { %v2240_v21 = vld.sshfl [vmem:[#allocation1 + $0x10] sm:$0xff pattern:$0x75316420]  ;;  %v2242_v22 = vld.sshfl [vmem:[#allocation1 + $0x18] sm:$0xff pattern:$0x75316420] }
  0x1f   :  { %v2244_v23 = vld.sshfl [vmem:[#allocation1 + $0x20] sm:$0xff pattern:$0x75316420]  ;;  %v2246_v24 = vld.sshfl [vmem:[#allocation1 + $0x28] sm:$0xff pattern:$0x75316420] }
  0x20   :  { %v2248_v25 = vld.sshfl [vmem:[#allocation1 + $0x30] sm:$0xff pattern:$0x75316420]  ;;  %4863 = vst [vmem:[#allocation19_spill] sm:$0xff] %v2250_v26 }
  0x21   :  { %v2252_v27 = vld.sshfl [vmem:[#allocation1 + $0x38] sm:$0xff pattern:$0x75316420]  ;;  %289 = vst [vmem:[#allocation1] ss:$2 sm:$0xff] %v2230_v16  ;;  %v2368_v16 = vadd.s32 2432, %v2262_v31 }
  0x22   :  { %290 = vst [vmem:[#allocation1 + $0x10] ss:$2 sm:$0xff] %v2232_v17  ;;  %v2365_v17 = vadd.s32 2304, %v2262_v31 }
  0x23   :  { %291 = vst [vmem:[#allocation1 + $0x20] ss:$2 sm:$0xff] %v2236_v19 }
  0x24   :  { %292 = vst [vmem:[#allocation1 + $0x30] ss:$2 sm:$0xff] %v2250_v26  ;;  %v2359_v26 = vld [vmem:[#allocation2 + $0x98] sm:$0xff] }
  0x25   :  { %4864 = vst [vmem:[#allocation20_spill] sm:$0xff] %v2258_v29 }
  0x26   :  { %4865 = vst [vmem:[#allocation21_spill] sm:$0xff] %v2260_v30 }
  0x27   :  { %4866 = vst [vmem:[#allocation22_spill] sm:$0xff] %v2266_v33 }
  0x28   :  { %v2264_v32 = vld.sshfl [vmem:[#allocation1] sm:$0xff pattern:$0x75316420]  ;;  %v2268_v34 = vld.sshfl [vmem:[#allocation1 + $0x8] sm:$0xff pattern:$0x75316420] }
  0x29   :  { %v2270_v35 = vld.sshfl [vmem:[#allocation1 + $0x10] sm:$0xff pattern:$0x75316420]  ;;  %v2272_v36 = vld.sshfl [vmem:[#allocation1 + $0x18] sm:$0xff pattern:$0x75316420] }
  0x2a   :  { %4867 = vst [vmem:[#allocation23_spill] sm:$0xff] %v2272_v36  ;;  %v2274_v37 = vld.sshfl [vmem:[#allocation1 + $0x20] sm:$0xff pattern:$0x75316420] }
  0x2b   :  { %4868 = vst [vmem:[#allocation24_spill] sm:$0xff] %v2274_v37  ;;  %v2276_v38 = vld.sshfl [vmem:[#allocation1 + $0x28] sm:$0xff pattern:$0x75316420] }
  0x2c   :  { %4869 = vst [vmem:[#allocation25_spill] sm:$0xff] %v2276_v38  ;;  %v2278_v39 = vld.sshfl [vmem:[#allocation1 + $0x30] sm:$0xff pattern:$0x75316420] }
  0x2d   :  { %4870 = vst [vmem:[#allocation26_spill] sm:$0xff] %v2278_v39  ;;  %v2282_v41 = vld.sshfl [vmem:[#allocation1 + $0x38] sm:$0xff pattern:$0x75316420]  ;;  %v110_v39 = vand.u32 1, %v2310_v49  ;;  %v2421_v38 = vld [vmem:[#allocation2 + $0xa8] sm:$0xff] }
  0x2e   :  { %4871 = vst [vmem:[#allocation27_spill] sm:$0xff] %v2280_v40 }
  0x2f   :  { %4872 = vst [vmem:[#allocation28_spill] sm:$0xff] %v2282_v41  ;;  %v109_v41 = vand.u32 1, %v2307_v48  ;;  %v2434_v48 = vld [vmem:[#allocation2 + $0xb8] sm:$0xff]  ;;  %vm2505_vm8 = vcmp.eq.s32.totalorder %v110_v39, 0 }
  0x30   :  { %301 = vst [vmem:[#allocation1] ss:$2 sm:$0xff] %v2258_v29  ;;  %v4923_v1 = vsel %vm2505_vm8, 4294967295, %v4922_v1 }
  0x31   :  { %302 = vst [vmem:[#allocation1 + $0x10] ss:$2 sm:$0xff] %v2260_v30  ;;  %vm2501_vm7 = vcmp.eq.s32.totalorder %v109_v41, 0 }
  0x32   :  { %303 = vst [vmem:[#allocation1 + $0x20] ss:$2 sm:$0xff] %v2266_v33  ;;  %v4920_v2 = vsel %vm2501_vm7, 4294967295, %v4919_v2 }
  0x33   :  { %304 = vst [vmem:[#allocation1 + $0x30] ss:$2 sm:$0xff] %v2280_v40 }
  0x34   :  { %4873 = vst [vmem:[#allocation29_spill] sm:$0xff] %v2336_v58 }
  0x35   :  { %4874 = vst [vmem:[#allocation30_spill] sm:$0xff] %v2338_v59 }
  0x36   :  { %4876 = vst [vmem:[#allocation32_spill] sm:$0xff] %v2345_v62 }
  0x37   :  { %v2343_v61 = vld.sshfl [vmem:[#allocation1] sm:$0xff pattern:$0x75316420]  ;;  %v2347_v63 = vld.sshfl [vmem:[#allocation1 + $0x8] sm:$0xff pattern:$0x75316420] }
  0x38   :  { %4875 = vst [vmem:[#allocation31_spill] sm:$0xff] %v2343_v61  ;;  %v2349_v28 = vld.sshfl [vmem:[#allocation1 + $0x10] sm:$0xff pattern:$0x75316420]  ;;  %v2415_v61 = vld [vmem:[#allocation2 + $0xa0] sm:$0xff] }
  0x39   :  { %4877 = vst [vmem:[#allocation33_spill] sm:$0xff] %v2347_v63  ;;  %v2351_v40 = vld.sshfl [vmem:[#allocation1 + $0x18] sm:$0xff pattern:$0x75316420]  ;;  %v107_v63 = vand.u32 1, %v2301_v46 }
  0x3a   :  { %4878 = vst [vmem:[#allocation34_spill] sm:$0xff] %v2349_v28  ;;  %v2353_v33 = vld.sshfl [vmem:[#allocation1 + $0x20] sm:$0xff pattern:$0x75316420]  ;;  %v2407_v28 = vadd.s32 3968, %v2262_v31  ;;  %v2428_v46 = vld [vmem:[#allocation2 + $0xb0] sm:$0xff] }
  0x3b   :  { %4879 = vst [vmem:[#allocation35_spill] sm:$0xff] %v2351_v40  ;;  %v2355_v30 = vld.sshfl [vmem:[#allocation1 + $0x28] sm:$0xff pattern:$0x75316420]  ;;  %v2404_v40 = vadd.s32 3840, %v2262_v31  ;;  %vm2491_vm5 = vcmp.eq.s32.totalorder %v107_v63, 0 }
  0x3c   :  { %4880 = vst [vmem:[#allocation36_spill] sm:$0xff] %v2353_v33  ;;  %v2357_v29 = vld.sshfl [vmem:[#allocation1 + $0x30] sm:$0xff pattern:$0x75316420]  ;;  %v2400_v33 = vadd.s32 3712, %v2262_v31  ;;  %v2511_v63 = vld [vmem:[#allocation2 + $0xd0] sm:$0xff] }
  0x3d   :  { %4881 = vst [vmem:[#allocation37_spill] sm:$0xff] %v2355_v30  ;;  %v2361_v19 = vld.sshfl [vmem:[#allocation1 + $0x38] sm:$0xff pattern:$0x75316420]  ;;  %v2394_v30 = vadd.s32 3456, %v2262_v31 }
  0x3e   :  { %4882 = vst [vmem:[#allocation38_spill] sm:$0xff] %v2357_v29  ;;  %v2391_v29 = vadd.s32 3328, %v2262_v31 }
  0x3f   :  { %4883 = vst [vmem:[#allocation39_spill] sm:$0xff] %v2359_v26 }
  0x40   :  { %4884 = vst [vmem:[#allocation40_spill] sm:$0xff] %v2361_v19  ;;  %v2387_v19 = vadd.s32 3200, %v2262_v31 }
  0x41   :  { %313 = vst [vmem:[#allocation1] ss:$2 sm:$0xff] %v2336_v58  ;;  %v2384_v58 = vadd.s32 3072, %v2262_v31 }
  0x42   :  { %314 = vst [vmem:[#allocation1 + $0x10] ss:$2 sm:$0xff] %v2338_v59  ;;  %v2397_v59 = vadd.s32 3584, %v2262_v31 }
  0x43   :  { %315 = vst [vmem:[#allocation1 + $0x20] ss:$2 sm:$0xff] %v2345_v62  ;;  %v102_v62 = vand.u32 1, %v2262_v31  ;;  %v111_v31 = vand.u32 1, %v2313_v50 }
  0x44   :  { %316 = vst [vmem:[#allocation1 + $0x30] ss:$2 sm:$0xff] %v2359_v26  ;;  %v108_v26 = vand.u32 1, %v2304_v47 }
  0x45   :  { %4885 = vst [vmem:[#allocation41_spill] sm:$0xff] %v2415_v61  ;;  %vm2469_vm0 = vcmp.eq.s32.totalorder %v102_v62, 0  ;;  %v4912_v62 = vmov 0  ;;  %vm2527_vm9 = vcmp.eq.s32.totalorder %v111_v31, 0  ;;  %v4947_v31 = vmov 0 }
  0x46   :  { %4886 = vst [vmem:[#allocation42_spill] sm:$0xff] %v2421_v38  ;;  %v4913_v62 = vsel %vm2491_vm5, 4294967295, %v4912_v62  ;;  %vm2497_vm6 = vcmp.eq.s32.totalorder %v108_v26, 0  ;;  %v2517_v26 = vld [vmem:[#allocation2 + $0xd8] sm:$0xff]  ;;  %v4948_v31 = vsel %vm2546_vm13, 4294967295, %v4947_v31  ;;  %v2590_v8 = vsel %vm2469_vm0, %v2206_v6, 0.0 }
  0x47   :  { %4888 = vst [vmem:[#allocation44_spill] sm:$0xff] %v2428_v46 }
  0x48   :  { %v2426_v45 = vld.sshfl [vmem:[#allocation1] sm:$0xff pattern:$0x75316420]  ;;  %v2430_v37 = vld.sshfl [vmem:[#allocation1 + $0x8] sm:$0xff pattern:$0x75316420] }
  0x49   :  { %4887 = vst [vmem:[#allocation43_spill] sm:$0xff] %v2426_v45  ;;  %v2432_v47 = vld.sshfl [vmem:[#allocation1 + $0x10] sm:$0xff pattern:$0x75316420]  ;;  %v118_v45 = vand.u32 1, %v2334_v57  ;;  %v126_v57 = vand.u32 1, %v2384_v58 }
  0x4a   :  { %4889 = vst [vmem:[#allocation45_spill] sm:$0xff] %v2430_v37  ;;  %v2436_v49 = vld.sshfl [vmem:[#allocation1 + $0x18] sm:$0xff pattern:$0x75316420]  ;;  %v116_v37 = vand.u32 1, %v2328_v55  ;;  %v124_v55 = vand.u32 1, %v2378_v5 }
  0x4b   :  { %4890 = vst [vmem:[#allocation46_spill] sm:$0xff] %v2432_v47  ;;  %v2438_v50 = vld.sshfl [vmem:[#allocation1 + $0x20] sm:$0xff pattern:$0x75316420]  ;;  %v117_v47 = vand.u32 1, %v2331_v56  ;;  %v125_v56 = vand.u32 1, %v2381_v4 }
  0x4c   :  { %4891 = vst [vmem:[#allocation47_spill] sm:$0xff] %v2434_v48  ;;  %v2440_v36 = vld.sshfl [vmem:[#allocation1 + $0x28] sm:$0xff pattern:$0x75316420]  ;;  %v4896_v4 = vmov 0  ;;  %v4909_v5 = vmov 0 }
  0x4d   :  { %4892 = vst [vmem:[#allocation48_spill] sm:$0xff] %v2436_v49  ;;  %v2442_v51 = vld.sshfl [vmem:[#allocation1 + $0x30] sm:$0xff pattern:$0x75316420]  ;;  %v119_v49 = vand.u32 1, %v2341_v60  ;;  %v127_v60 = vand.u32 1, %v2387_v19 }
  0x4e   :  { %4893 = vst [vmem:[#allocation49_spill] sm:$0xff] %v2440_v36  ;;  %v2445_v53 = vld.sshfl [vmem:[#allocation1 + $0x38] sm:$0xff pattern:$0x75316420]  ;;  %v120_v36 = vand.u32 1, %v2365_v17  ;;  %v4897_v4 = vsel %vm2469_vm0, 4294967295, %v4896_v4 }
  0x4f   :  { %4894 = vst [vmem:[#allocation50_spill] sm:$0xff] %v2442_v51  ;;  %v121_v51 = vand.u32 1, %v2368_v16  ;;  %v4899_v19 = vmov 0  ;;  %v2477_v58 = vld [vmem:[#allocation2 + $0xc0] sm:$0xff]  ;;  %v4903_v16 = vmov 0  ;;  %v4910_v5 = vsel %vm2487_vm4, 4294967295, %v4909_v5 }
  0x50   :  { %4895 = vst [vmem:[#allocation51_spill] sm:$0xff] %v2445_v53  ;;  %v123_v53 = vand.u32 1, %v2374_v7  ;;  %v4900_v19 = vsel %vm2473_vm1, 4294967295, %v4899_v19  ;;  %v4904_v16 = vsel %vm2479_vm2, 4294967295, %v4903_v16  ;;  %v4906_v7 = vmov 0 }
  0x51   :  { %325 = vst [vmem:[#allocation1] ss:$2 sm:$0xff] %v2415_v61  ;;  %v4907_v7 = vsel %vm2483_vm3, 4294967295, %v4906_v7  ;;  %v4934_v61 = vmov 0  ;;  %vm2551_vm14 = vcmp.eq.s32.totalorder %v116_v37, 0  ;;  %vm2555_vm15 = vcmp.eq.s32.totalorder %v117_v47, 0 }
  0x52   :  { %326 = vst [vmem:[#allocation1 + $0x10] ss:$2 sm:$0xff] %v2421_v38  ;;  %v4935_v61 = vsel %vm2527_vm9, 4294967295, %v4934_v61  ;;  %v4954_v42 = vsel %vm2555_vm15, 4294967295, %v4953_v42  ;;  %v2572_v37 = vsel %vm2483_vm3, %v2214_v10, 0.0  ;;  %v4959_v47 = vmov 0 }
  0x53   :  { %327 = vst [vmem:[#allocation1 + $0x20] ss:$2 sm:$0xff] %v2428_v46  ;;  %v4916_v46 = vmov 0  ;;  %vm2578_vm15 = vcmp.eq.s32.totalorder %v120_v36, 0  ;;  %v2595_v10 = vsel %vm2479_vm2, %v2212_v9, 0.0  ;;  %vm4687_vm3 = vcmask 1043456  }
  0x54   :  { %328 = vst [vmem:[#allocation1 + $0x30] ss:$2 sm:$0xff] %v2434_v48  ;;  %v4917_v46 = vsel %vm2497_vm6, 4294967295, %v4916_v46  ;;  %vm2597_vm1 = vcmp.eq.s32.totalorder %v122_v54, 0  ;;  %v4968_v36 = vmov 0  ;;  %v682_v6 = vsel %vm4687_vm3, %v2590_v8, 0.0 }
  0x55   :  { %4898 = vst [vmem:[#allocation52_spill] sm:$0xff] %v4897_v4  ;;  %v4969_v36 = vsel %vm2597_vm1, 4294967295, %v4968_v36  ;;  %v683_v9 = vsel %vm4687_vm3, %v2567_v44, 0.0  ;;  %v685_v54 = vsel %vm4687_vm3, %v2595_v10, 0.0  ;;  %vm2615_vm2 = vcmp.eq.s32.totalorder %v125_v56, 0 }
  0x56   :  { %4901 = vst [vmem:[#allocation53_spill] sm:$0xff] %v4900_v19  ;;  %vm2628_vm0 = vcmp.eq.s32.totalorder %v126_v57, 0  ;;  %vm2632_vm3 = vcmp.eq.s32.totalorder %v127_v60, 0  ;;  %v4984_v56 = vmov 0  ;;  %v2649_v57 = vsel %vm2501_vm7, %v2224_v15, 0.0 }
  0x57   :  { %4902 = vst [vmem:[#allocation54_spill] sm:$0xff] %v2477_v58  ;;  %v4985_v56 = vsel %vm2632_vm3, 4294967295, %v4984_v56 }
  0x58   :  { %4905 = vst [vmem:[#allocation55_spill] sm:$0xff] %v4904_v16  ;;  %v2509_v0 = vld.sshfl [vmem:[#allocation1] sm:$0xff pattern:$0x75316420] }
  0x59   :  { %4908 = vst [vmem:[#allocation56_spill] sm:$0xff] %v4907_v7  ;;  %v2513_v14 = vld.sshfl [vmem:[#allocation1 + $0x8] sm:$0xff pattern:$0x75316420] }
  0x5a   :  { %4911 = vst [vmem:[#allocation57_spill] sm:$0xff] %v4910_v5  ;;  %v2515_v17 = vld.sshfl [vmem:[#allocation1 + $0x10] sm:$0xff pattern:$0x75316420] }
  0x5b   :  { %4914 = vst [vmem:[#allocation58_spill] sm:$0xff] %v4913_v62  ;;  %v2519_v48 = vld.sshfl [vmem:[#allocation1 + $0x18] sm:$0xff pattern:$0x75316420] }
  0x5c   :  { %4915 = vst [vmem:[#allocation59_spill] sm:$0xff] %v2495_v3  ;;  %v2521_v41 = vld.sshfl [vmem:[#allocation1 + $0x20] sm:$0xff pattern:$0x75316420] }
  0x5d   :  { %4918 = vst [vmem:[#allocation60_spill] sm:$0xff] %v4917_v46  ;;  %v2523_v38 = vld.sshfl [vmem:[#allocation1 + $0x28] sm:$0xff pattern:$0x75316420] }
  0x5e   :  { %4921 = vst [vmem:[#allocation61_spill] sm:$0xff] %v4920_v2  ;;  %v2525_v39 = vld.sshfl [vmem:[#allocation1 + $0x30] sm:$0xff pattern:$0x75316420]  ;;  %v2669_v2 = vld [vmem:[#allocation2 + $0xf0] sm:$0xff] }
  0x5f   :  { %4924 = vst [vmem:[#allocation62_spill] sm:$0xff] %v4923_v1 }
  0x60   :  { %4925 = vst [vmem:[#allocation63_spill] sm:$0xff] %v2509_v0  ;;  %v2531_v0 = vld.sshfl [vmem:[#allocation1 + $0x38] sm:$0xff pattern:$0x75316420] }
  0x61   :  { %4926 = vst [vmem:[#allocation64_spill] sm:$0xff] %v2511_v63 }
  0x62   :  { %4927 = vst [vmem:[#allocation65_spill] sm:$0xff] %v2513_v14 }
  0x63   :  { %4928 = vst [vmem:[#allocation66_spill] sm:$0xff] %v2515_v17  ;;  %v4938_v17 = vmov 0 }
  0x64   :  { %4929 = vst [vmem:[#allocation67_spill] sm:$0xff] %v2517_v26  ;;  %v4939_v17 = vsel %vm2534_vm10, 4294967295, %v4938_v17  ;;  %vm2559_vm10 = vcmp.eq.s32.totalorder %v118_v45, 0  ;;  %v4962_v45 = vmov 0 }
  0x65   :  { %4930 = vst [vmem:[#allocation68_spill] sm:$0xff] %v2519_v48  ;;  %v4941_v48 = vmov 0  ;;  %v4957_v43 = vsel %vm2559_vm10, 4294967295, %v4956_v43  ;;  %v4963_v45 = vsel %vm2578_vm15, 4294967295, %v4962_v45  ;;  %vm2582_vm10 = vcmp.eq.s32.totalorder %v121_v51, 0 }
  0x66   :  { %4931 = vst [vmem:[#allocation69_spill] sm:$0xff] %v2521_v41  ;;  %v4942_v48 = vsel %vm2538_vm11, 4294967295, %v4941_v48  ;;  %v4966_v52 = vsel %vm2582_vm10, 4294967295, %v4965_v52  ;;  %vm2601_vm15 = vcmp.eq.s32.totalorder %v123_v53, 0  ;;  %vm2605_vm10 = vcmp.eq.s32.totalorder %v124_v55, 0 }
  0x67   :  { %4932 = vst [vmem:[#allocation70_spill] sm:$0xff] %v2523_v38  ;;  %v4944_v38 = vmov 0  ;;  %v4974_v51 = vmov 0  ;;  %v2622_v53 = vsel %vm2487_vm4, %v2216_v11, 0.0  ;;  %v684_v55 = vadd.f32 %v683_v9, %v682_v6  ;;  %v2653_v9 = vld [vmem:[#allocation2 + $0xe8] sm:$0xff] }
  0x68   :  { %4933 = vst [vmem:[#allocation71_spill] sm:$0xff] %v2525_v39  ;;  %v4945_v38 = vsel %vm2542_vm12, 4294967295, %v4944_v38  ;;  %v4975_v51 = vsel %vm2605_vm10, 4294967295, %v4974_v51  ;;  %v4981_v39 = vmov 0  ;;  %v2639_v11 = vsel %vm2491_vm5, %v2218_v12, 0.0 }
  0x69   :  { %4936 = vst [vmem:[#allocation72_spill] sm:$0xff] %v4935_v61  ;;  %v4982_v39 = vsel %vm2628_vm0, 4294967295, %v4981_v39  ;;  %v2644_v6 = vsel %vm2497_vm6, %v2220_v13, 0.0  ;;  %vm4987_vm4 = vcmask 1043456   ;;  %v2660_v12 = vsel %vm2505_vm8, %v2234_v18, 0.0 }
  0x6a   :  { %4937 = vst [vmem:[#allocation73_spill] sm:$0xff] %v2531_v0  ;;  %v2626_v0 = vld [vmem:[#allocation2 + $0xe0] sm:$0xff]  ;;  %v687_v60 = vsel %vm4987_vm4, %v2572_v37, 0.0  ;;  %v2665_v13 = vsel %vm2527_vm9, %v2238_v20, 0.0  ;;  %v686_v14 = vadd.f32 %v685_v54, %v684_v55  ;;  %vm4990_vm7 = vmmov %vm4987_vm4  ;;  %v4997_v54 = vand.u32 1, %v2391_v29 }
  0x6b   :  { %337 = vst [vmem:[#allocation1] ss:$2 sm:$0xff] %v2477_v58  ;;  %v4950_v58 = vmov 0  ;;  %v689_v15 = vsel %vm4990_vm7, %v2622_v53, 0.0  ;;  %v4998_v55 = vmov 0  ;;  %vm5002_vm7 = vnez %v4939_v17 }
  0x6c   :  { %4940 = vst [vmem:[#allocation74_spill] sm:$0xff] %v4939_v17  ;;  %v4951_v58 = vsel %vm2551_vm14, 4294967295, %v4950_v58  ;;  %vm2574_vm14 = vcmp.eq.s32.totalorder %v119_v49, 0  ;;  %v4971_v49 = vmov 0  ;;  %v688_v5 = vadd.f32 %v687_v60, %v686_v14 }
  0x6d   :  { %4943 = vst [vmem:[#allocation75_spill] sm:$0xff] %v4942_v48  ;;  %v4960_v47 = vsel %vm2574_vm14, 4294967295, %v4959_v47  ;;  %v4972_v49 = vsel %vm2601_vm15, 4294967295, %v4971_v49  ;;  %vm2687_vm4 = vcmp.eq.s32.totalorder %v4997_v54, 0  ;;  %vm5003_vm9 = vcmask 1043456  }
  0x6e   :  { %4946 = vst [vmem:[#allocation76_spill] sm:$0xff] %v4945_v38  ;;  %v4999_v55 = vsel %vm2687_vm4, 4294967295, %v4998_v55  ;;  %v5004_v60 = vand.u32 1, %v2394_v30  ;;  %v5005_v29 = vmov 0  ;;  %v5008_v54 = vand.u32 1, %v2397_v59 }
  0x6f   :  { %4949 = vst [vmem:[#allocation77_spill] sm:$0xff] %v4948_v31  ;;  %v2723_v30 = vsel %vm2538_vm11, %v2242_v22, 0.0  ;;  %v2728_v59 = vsel %vm2542_vm12, %v2244_v23, 0.0  ;;  %v5020_v22 = vand.u32 1, %v2407_v28  ;;  %vm5026_vm12 = vnez %v4957_v43 }
  0x70   :  { %338 = vst [vmem:[#allocation1 + $0x10] ss:$2 sm:$0xff] %v2495_v3  ;;  %v554_v3 = vrot.slane %v2572_v37, 4  ;;  %vm2703_vm8 = vcmp.eq.s32.totalorder %v5004_v60, 0  ;;  %vm2709_vm6 = vcmp.eq.s32.totalorder %v5008_v54, 0  ;;  %v5017_v60 = vmov 0 }
  0x71   :  { %4952 = vst [vmem:[#allocation78_spill] sm:$0xff] %v4951_v58  ;;  %v5006_v29 = vsel %vm2703_vm8, 4294967295, %v5005_v29  ;;  %vm2745_vm11 = vcmp.eq.s32.totalorder %v5020_v22, 0  ;;  %v5021_v54 = vmov 0  ;;  %v690_v28 = vadd.f32 %v689_v15, %v688_v5  ;;  %v5031_v5 = vld [vmem:[#allocation24_spill] sm:$0xff] }
  0x72   :  { %4955 = vst [vmem:[#allocation79_spill] sm:$0xff] %v4954_v42  ;;  %v2655_v41 = vld.sshfl [vmem:[#allocation1] sm:$0xff pattern:$0x75316420]  ;;  %v5022_v54 = vsel %vm2745_vm11, 4294967295, %v5021_v54  ;;  %v2786_v15 = vsel %vm2597_vm1, %v5031_v5, 0.0 }
  0x73   :  { %4958 = vst [vmem:[#allocation80_spill] sm:$0xff] %v4957_v43  ;;  %v2671_v46 = vld.sshfl [vmem:[#allocation1 + $0x8] sm:$0xff pattern:$0x75316420] }
  0x74   :  { %339 = vst [vmem:[#allocation1 + $0x20] ss:$2 sm:$0xff] %v2511_v63  ;;  %v553_v63 = vrot.slane %v2567_v44, 4 }
  0x75   :  { %4961 = vst [vmem:[#allocation81_spill] sm:$0xff] %v4960_v47 }
  0x76   :  { %4964 = vst [vmem:[#allocation82_spill] sm:$0xff] %v4963_v45  ;;  %v586_v14 = vsel %vm5003_vm9, %v2590_v8, %v553_v63  ;;  %v5016_v63 = vand.u32 1, %v2404_v40  ;;  %v2763_v40 = vsel %vm5026_vm12, %v2264_v32, 0.0  ;;  %vm5030_vm12 = vcmask 1043456  }
  0x77   :  { %4967 = vst [vmem:[#allocation83_spill] sm:$0xff] %v4966_v52  ;;  %v2673_v62 = vld.sshfl [vmem:[#allocation1 + $0x10] sm:$0xff pattern:$0x75316420]  ;;  %v693_v32 = vsel %vm5030_vm12, %v2644_v6, 0.0  ;;  %v695_v5 = vsel %vm5030_vm12, %v2649_v57, 0.0  ;;  %vm5038_vm1 = vmmov %vm5030_vm12 }
  0x78   :  { %340 = vst [vmem:[#allocation1 + $0x30] ss:$2 sm:$0xff] %v2517_v26  ;;  %v4977_v26 = vmov 0  ;;  %v2677_v1 = vld.sshfl [vmem:[#allocation1 + $0x18] sm:$0xff pattern:$0x75316420]  ;;  %vm5044_vm12 = vmmov %vm5038_vm1 }
  0x79   :  { %4970 = vst [vmem:[#allocation84_spill] sm:$0xff] %v4969_v36  ;;  %v4978_v26 = vsel %vm2615_vm2, 4294967295, %v4977_v26  ;;  %v5053_v36 = vld [vmem:[#allocation10_spill] sm:$0xff] }
  0x7a   :  { %4973 = vst [vmem:[#allocation85_spill] sm:$0xff] %v4972_v49 }
  0x7b   :  { %4976 = vst [vmem:[#allocation86_spill] sm:$0xff] %v4975_v51  ;;  %v2679_v18 = vld.sshfl [vmem:[#allocation1 + $0x20] sm:$0xff pattern:$0x75316420] }
  0x7c   :  { %4979 = vst [vmem:[#allocation87_spill] sm:$0xff] %v4978_v26  ;;  %v2681_v61 = vld.sshfl [vmem:[#allocation1 + $0x28] sm:$0xff pattern:$0x75316420] }
  0x7d   :  { %4980 = vst [vmem:[#allocation88_spill] sm:$0xff] %v2626_v0 }
  0x7e   :  { %4983 = vst [vmem:[#allocation89_spill] sm:$0xff] %v4982_v39 }
  0x7f   :  { %4986 = vst [vmem:[#allocation90_spill] sm:$0xff] %v4985_v56  ;;  %v2683_v20 = vld.sshfl [vmem:[#allocation1 + $0x30] sm:$0xff pattern:$0x75316420] }
  0x80   :  { %4988 = vst [vmem:[#allocation91_spill] sm:$0xff] %v2653_v9 }
  0x81   :  { %4989 = vst [vmem:[#allocation92_spill] sm:$0xff] %v2655_v41  ;;  %v2675_v41 = vld [vmem:[#allocation2 + $0xf8] sm:$0xff] }
  0x82   :  { %4991 = vst [vmem:[#allocation93_spill] sm:$0xff] %v2669_v2 }
  0x83   :  { %4992 = vst [vmem:[#allocation94_spill] sm:$0xff] %v2671_v46  ;;  %v2691_v46 = vld.sshfl [vmem:[#allocation1 + $0x38] sm:$0xff pattern:$0x75316420] }
  0x84   :  { %4993 = vst [vmem:[#allocation95_spill] sm:$0xff] %v2675_v41 }
  0x85   :  { %4994 = vst [vmem:[#allocation96_spill] sm:$0xff] %v2677_v1  ;;  %v2697_v1 = vsel %vm5002_vm7, %v2240_v21, 0.0  ;;  %v5013_v21 = vmov 0  ;;  %vm2739_vm7 = vcmp.eq.s32.totalorder %v5016_v63, 0  ;;  %v2769_v63 = vsel %vm2574_vm14, %v2268_v34, 0.0  ;;  %v5032_v34 = vld [vmem:[#allocation25_spill] sm:$0xff] }
  0x86   :  { %4995 = vst [vmem:[#allocation97_spill] sm:$0xff] %v2681_v61  ;;  %v5018_v60 = vsel %vm2739_vm7, 4294967295, %v5017_v60  ;;  %v555_v61 = vrot.slane %v2639_v11, 4 }
  0x87   :  { %4996 = vst [vmem:[#allocation98_spill] sm:$0xff] %v2683_v20 }
  0x88   :  { %5000 = vst [vmem:[#allocation99_spill] sm:$0xff] %v4999_v55 }
  0x89   :  { %5001 = vst [vmem:[#allocation100_spill] sm:$0xff] %v2691_v46  ;;  %v5009_v46 = vmov 0 }
  0x8a   :  { %349 = vst [vmem:[#allocation1] ss:$2 sm:$0xff] %v2626_v0  ;;  %v5010_v46 = vsel %vm2709_vm6, 4294967295, %v5009_v46  ;;  %v5012_v0 = vand.u32 1, %v2400_v33  ;;  %v2733_v33 = vsel %vm2546_vm13, %v2246_v24, 0.0  ;;  %vm5024_vm13 = vnez %v4951_v58 }
  0x8b   :  { %5007 = vst [vmem:[#allocation101_spill] sm:$0xff] %v5006_v29  ;;  %v2753_v23 = vsel %vm5024_vm13, %v2248_v25, 0.0  ;;  %vm5027_vm13 = vnez %v4963_v45 }
  0x8c   :  { %5011 = vst [vmem:[#allocation102_spill] sm:$0xff] %v5010_v46  ;;  %vm2715_vm5 = vcmp.eq.s32.totalorder %v5012_v0, 0  ;;  %v691_v0 = vsel %vm5003_vm9, %v2639_v11, 0.0  ;;  %vm5025_vm9 = vnez %v4954_v42  ;;  %v2774_v25 = vsel %vm5027_vm13, %v2270_v35, 0.0  ;;  %v5034_v35 = vld [vmem:[#allocation26_spill] sm:$0xff] }
  0x8d   :  { %v5014_v21 = vsel %vm2715_vm5, 4294967295, %v5013_v21  ;;  %350 = vst [vmem:[#allocation1 + $0x10] ss:$2 sm:$0xff] %v2653_v9  ;;  %v2758_v24 = vsel %vm5025_vm9, %v2252_v27, 0.0  ;;  %v5028_v27 = vld [vmem:[#allocation23_spill] sm:$0xff]  ;;  %vm5029_vm9 = vnez %v4966_v52  ;;  %v5036_v9 = vld [vmem:[#allocation28_spill] sm:$0xff] }
  0x8e   :  { %5015 = vst [vmem:[#allocation103_spill] sm:$0xff] %v5014_v21  ;;  %v2779_v22 = vsel %vm5029_vm9, %v5028_v27, 0.0  ;;  %v692_v27 = vadd.f32 %v691_v0, %v690_v28  ;;  %v2801_v20 = vsel %vm2615_vm2, %v5036_v9, 0.0  ;;  %v556_v28 = vrot.slane %v2649_v57, 4  ;;  %vm5045_vm2 = vmmov %vm5038_vm1  ;;  %v5143_v45 = vld [vmem:[#allocation97_spill] sm:$0xff]  ;;  %v5146_v52 = vld [vmem:[#allocation98_spill] sm:$0xff] }
  0x8f   :  { %5019 = vst [vmem:[#allocation104_spill] sm:$0xff] %v5018_v60 }
  0x90   :  { %5023 = vst [vmem:[#allocation105_spill] sm:$0xff] %v5022_v54  ;;  %v694_v9 = vadd.f32 %v693_v32, %v692_v27 }
  0x91   :  { %351 = vst [vmem:[#allocation1 + $0x20] ss:$2 sm:$0xff] %v2669_v2  ;;  %v2796_v2 = vsel %vm2605_vm10, %v5034_v35, 0.0  ;;  %v5041_v35 = vld [vmem:[#allocation33_spill] sm:$0xff] }
  0x92   :  { %352 = vst [vmem:[#allocation1 + $0x30] ss:$2 sm:$0xff] %v2675_v41  ;;  %v2791_v41 = vsel %vm2601_vm15, %v5032_v34, 0.0  ;;  %v587_v34 = vsel %vm5038_vm1, %v2595_v10, %v554_v3  ;;  %v2816_v0 = vsel %vm2632_vm3, %v5041_v35, 0.0  ;;  %v699_v3 = vsel %vm5038_vm1, %v2665_v13, 0.0  ;;  %vm5049_vm3 = vmmov %vm5038_vm1 }
  0x93   :  { %5033 = vst [vmem:[#allocation23_spill] sm:$0xff] %v2791_v41  ;;  %v5039_v41 = vld [vmem:[#allocation31_spill] sm:$0xff]  ;;  %v2830_v56 = vld.sshfl [vmem:[#allocation1 + $0x8] sm:$0xff pattern:$0x75316420]  ;;  %v696_v32 = vadd.f32 %v695_v5, %v694_v9  ;;  %v589_v27 = vsel %vm5049_vm3, %v2644_v6, %v556_v28  ;;  %v1135_v5 = vmul.f32 %v2590_v8, %v2590_v8  ;;  %vm5070_vm3 = vnez %v4897_v4 }
  0x94   :  { %5035 = vst [vmem:[#allocation24_spill] sm:$0xff] %v2796_v2  ;;  %v2811_v51 = vsel %vm2628_vm0, %v5039_v41, 0.0  ;;  %v697_v2 = vsel %vm5044_vm12, %v2660_v12, 0.0  ;;  %v588_v41 = vsel %vm5045_vm2, %v2622_v53, %v555_v61  ;;  %v2832_v35 = vld.sshfl [vmem:[#allocation1 + $0x10] sm:$0xff pattern:$0x75316420]  ;;  %vm5064_vm2 = vmmov %vm5038_vm1  ;;  %v1139_v4 = vmul.f32 %v2622_v53, %v2622_v53 }
  0x95   :  { %5037 = vst [vmem:[#allocation25_spill] sm:$0xff] %v2801_v20  ;;  %v2819_v20 = vld.sshfl [vmem:[#allocation1] sm:$0xff pattern:$0x75316420]  ;;  %v2844_v61 = vsub.f32 %v5053_v36, %v588_v41  ;;  %v1136_v41 = vmul.f32 %v2567_v44, %v2567_v44  ;;  %v5060_v8 = vld [vmem:[#allocation36_spill] sm:$0xff]  ;;  %v701_v44 = vsel %vm5064_vm2, %v2697_v1, 0.0  ;;  %vm5072_vm12 = vmmov %vm5038_vm1 }
  0x96   :  { %5040 = vst [vmem:[#allocation26_spill] sm:$0xff] %v2811_v51  ;;  %v5046_v51 = vld [vmem:[#allocation8_spill] sm:$0xff]  ;;  %v2839_v26 = vld.sshfl [vmem:[#allocation1 + $0x18] sm:$0xff pattern:$0x75316420]  ;;  %v5055_v9 = vld [vmem:[#allocation11_spill] sm:$0xff] }
  0x97   :  { %5042 = vst [vmem:[#allocation28_spill] sm:$0xff] %v2816_v0  ;;  %v2828_v39 = vsub.f32 %v5046_v51, %v586_v14  ;;  %v5050_v0 = vld [vmem:[#allocation9_spill] sm:$0xff]  ;;  %v2853_v28 = vsub.f32 %v5055_v9, %v589_v27  ;;  %v5058_v36 = vld [vmem:[#allocation35_spill] sm:$0xff]  ;;  %v5065_v9 = vld [vmem:[#allocation38_spill] sm:$0xff] }
  0x98   :  { %5043 = vst [vmem:[#allocation31_spill] sm:$0xff] %v2819_v20  ;;  %v2837_v20 = vsub.f32 %v5050_v0, %v587_v34  ;;  %v2841_v49 = vld.sshfl [vmem:[#allocation1 + $0x20] sm:$0xff pattern:$0x75316420]  ;;  %v5057_v0 = vld [vmem:[#allocation34_spill] sm:$0xff]  ;;  %v5062_v27 = vld [vmem:[#allocation37_spill] sm:$0xff] }
  0x99   :  { %5047 = vst [vmem:[#allocation33_spill] sm:$0xff] %v2828_v39  ;;  %v2846_v14 = vld.sshfl [vmem:[#allocation1 + $0x28] sm:$0xff pattern:$0x75316420]  ;;  %vm5073_vm2 = vmmov %vm5038_vm1 }
  0x9a   :  { %5048 = vst [vmem:[#allocation106_spill] sm:$0xff] %v2830_v56  ;;  %v2848_v51 = vld.sshfl [vmem:[#allocation1 + $0x30] sm:$0xff pattern:$0x75316420]  ;;  %v698_v56 = vadd.f32 %v697_v2, %v696_v32  ;;  %v2868_v2 = vsel %vm2703_vm8, %v5058_v36, 0.0  ;;  %v2873_v32 = vsel %vm2709_vm6, %v5060_v8, 0.0 }
  0x9b   :  { %5051 = vst [vmem:[#allocation107_spill] sm:$0xff] %v2837_v20  ;;  %v2855_v34 = vld.sshfl [vmem:[#allocation1 + $0x38] sm:$0xff pattern:$0x75316420]  ;;  %v2886_v36 = vsel %vm2739_vm7, %v5065_v9, 0.0  ;;  %v1137_v9 = vmul.f32 %v2595_v10, %v2595_v10 }
  0x9c   :  { %5052 = vst [vmem:[#allocation108_spill] sm:$0xff] %v2841_v49  ;;  %v2860_v49 = vsel %vm2687_vm4, %v5057_v0, 0.0  ;;  %v2878_v0 = vsel %vm2715_vm5, %v5062_v27, 0.0 }
  0x9d   :  { %5054 = vst [vmem:[#allocation109_spill] sm:$0xff] %v2844_v61  ;;  %v5167_v29 = vld [vmem:[#allocation26_spill] sm:$0xff] }
  0x9e   :  { %5056 = vst [vmem:[#allocation110_spill] sm:$0xff] %v2853_v28 }
  0x9f   :  { %843 = vst [vmem:[#allocation1] ss:$2 sm:$0xff] %v2828_v39  ;;  %v5067_v39 = vld [vmem:[#allocation40_spill] sm:$0xff] }
  0xa0   :  { %5059 = vst [vmem:[#allocation34_spill] sm:$0xff] %v2868_v2  ;;  %v2891_v8 = vsel %vm2745_vm11, %v5067_v39, 0.0  ;;  %v1199_v39 = vsel %vm5038_vm1, %v1135_v5, 0.0  ;;  %v5080_v2 = vld [vmem:[#allocation48_spill] sm:$0xff]  ;;  %vm5081_vm11 = vnez %v4907_v7  ;;  %v1141_v7 = vmul.f32 %v2644_v6, %v2644_v6 }
  0xa1   :  { %5061 = vst [vmem:[#allocation35_spill] sm:$0xff] %v2873_v32  ;;  %v5069_v32 = vld [vmem:[#allocation43_spill] sm:$0xff]  ;;  %v2929_v53 = vsel %vm5081_vm11, %v5080_v2, 0.0 }
  0xa2   :  { %5063 = vst [vmem:[#allocation36_spill] sm:$0xff] %v2878_v0  ;;  %v2896_v27 = vsel %vm5070_vm3, %v5069_v32, 0.0  ;;  %v700_v0 = vadd.f32 %v699_v3, %v698_v56  ;;  %v705_v32 = vsel %vm5073_vm2, %v2728_v59, 0.0  ;;  %vm5074_vm3 = vmmov %vm5038_vm1  ;;  %v557_v3 = vrot.slane %v2665_v13, 4 }
  0xa3   :  { %845 = vst [vmem:[#allocation1 + $0x10] ss:$2 sm:$0xff] %v2837_v20  ;;  %v703_v20 = vsel %vm5072_vm12, %v2723_v30, 0.0  ;;  %v1200_v56 = vsel %vm5074_vm3, %v1136_v41, 0.0  ;;  %vm5075_vm12 = vmmov %vm5038_vm1  ;;  %vm5077_vm1 = vnez %v4900_v19  ;;  %vm5079_vm2 = vnez %v4904_v16 }
  0xa4   :  { %5066 = vst [vmem:[#allocation37_spill] sm:$0xff] %v2886_v36  ;;  %v1138_v36 = vmul.f32 %v2572_v37, %v2572_v37  ;;  %v1202_v10 = vsel %vm5075_vm12, %v1137_v9, 0.0  ;;  %v558_v37 = vrot.slane %v2723_v30, 4  ;;  %vm5082_vm12 = vmmov %vm5074_vm3 }
  0xa5   :  { %5068 = vst [vmem:[#allocation38_spill] sm:$0xff] %v2891_v8  ;;  %v702_v8 = vadd.f32 %v701_v44, %v700_v0  ;;  %v5078_v0 = vld [vmem:[#allocation46_spill] sm:$0xff]  ;;  %v707_v9 = vsel %vm5082_vm12, %v2733_v33, 0.0 }
  0xa6   :  { %5071 = vst [vmem:[#allocation40_spill] sm:$0xff] %v2896_v27  ;;  %v5076_v27 = vld [vmem:[#allocation45_spill] sm:$0xff]  ;;  %v2923_v44 = vsel %vm5079_vm2, %v5078_v0, 0.0  ;;  %vm5085_vm2 = vmmov %vm5074_vm3 }
  0xa7   :  { %847 = vst [vmem:[#allocation1 + $0x20] ss:$2 sm:$0xff] %v2844_v61  ;;  %v1201_v61 = vadd.f32 %v1200_v56, %v1199_v39  ;;  %v2918_v5 = vsel %vm5077_vm1, %v5076_v27, 0.0  ;;  %v704_v41 = vadd.f32 %v703_v20, %v702_v8  ;;  %v1140_v27 = vmul.f32 %v2639_v11, %v2639_v11  ;;  %v5083_v56 = vld [vmem:[#allocation57_spill] sm:$0xff]  ;;  %vm5087_vm11 = vmmov %vm5085_vm2  ;;  %v5173_v21 = vld [vmem:[#allocation34_spill] sm:$0xff] }
  0xa8   :  { %849 = vst [vmem:[#allocation1 + $0x30] ss:$2 sm:$0xff] %v2853_v28  ;;  %v1204_v28 = vsel %vm5074_vm3, %v1138_v36, 0.0  ;;  %vm5084_vm1 = vnez %v5083_v56  ;;  %v1206_v36 = vsel %vm5085_vm2, %v1139_v4, 0.0  ;;  %vm5086_vm3 = vmmov %vm5085_vm2  ;;  %v709_v2 = vsel %vm5087_vm11, %v2753_v23, 0.0  ;;  %v5093_v4 = vld [vmem:[#allocation60_spill] sm:$0xff] }
  0xa9   :  { %v1203_v39 = vadd.f32 %v1202_v10, %v1201_v61  ;;  %v2938_v0 = vsel %vm5084_vm1, %v2438_v50, 0.0  ;;  %v706_v20 = vadd.f32 %v705_v32, %v704_v41  ;;  %v590_v8 = vsel %vm5086_vm3, %v2660_v12, %v557_v3  ;;  %vm5088_vm12 = vmmov %vm5085_vm2  ;;  %v5089_v61 = vld [vmem:[#allocation49_spill] sm:$0xff]  ;;  %v5090_v10 = vld [vmem:[#allocation58_spill] sm:$0xff] }
  0xaa   :  { %v591_v11 = vsel %vm5088_vm12, %v2697_v1, %v558_v37  ;;  %vm5091_vm1 = vnez %v5090_v10  ;;  %v5092_v32 = vld [vmem:[#allocation50_spill] sm:$0xff]  ;;  %vm5094_vm2 = vnez %v5093_v4  ;;  %v1208_v56 = vsel %vm5086_vm3, %v1140_v27, 0.0  ;;  %vm5096_vm11 = vmmov %vm5086_vm3  ;;  %v2975_v4 = vld.sshfl [vmem:[#allocation1 + $0x8] sm:$0xff pattern:$0x75316420] }
  0xab   :  { %v1205_v16 = vadd.f32 %v1204_v28, %v1203_v39  ;;  %v2952_v50 = vsel %vm5091_vm1, %v5089_v61, 0.0  ;;  %v2957_v41 = vsel %vm5094_vm2, %v5092_v32, 0.0  ;;  %v708_v3 = vadd.f32 %v707_v9, %v706_v20  ;;  %v5097_v39 = vld [vmem:[#allocation12_spill] sm:$0xff]  ;;  %v2967_v61 = vld.sshfl [vmem:[#allocation1] sm:$0xff pattern:$0x75316420]  ;;  %vm5100_vm12 = vmmov %vm5086_vm3 }
  0xac   :  { %5095 = vst [vmem:[#allocation43_spill] sm:$0xff] %v2957_v41  ;;  %v711_v6 = vsel %vm5096_vm11, %v2758_v24, 0.0  ;;  %v1142_v28 = vmul.f32 %v2649_v57, %v2649_v57  ;;  %v2965_v19 = vsub.f32 %v5097_v39, %v590_v8  ;;  %v713_v32 = vsel %vm5100_vm12, %v2763_v40, 0.0  ;;  %vm5101_vm2 = vmmov %vm5086_vm3  ;;  %v5102_v20 = vld [vmem:[#allocation13_spill] sm:$0xff]  ;;  %v5107_v39 = vld [vmem:[#allocation51_spill] sm:$0xff] }
  0xad   :  { %v1207_v37 = vadd.f32 %v1206_v36, %v1205_v16  ;;  %5099 = vst [vmem:[#allocation46_spill] sm:$0xff] %v2967_v61  ;;  %v710_v10 = vadd.f32 %v709_v2, %v708_v3  ;;  %v1210_v9 = vsel %vm5101_vm2, %v1141_v7, 0.0  ;;  %v2973_v27 = vsub.f32 %v5102_v20, %v591_v11  ;;  %v2979_v36 = vld.sshfl [vmem:[#allocation1 + $0x10] sm:$0xff pattern:$0x75316420]  ;;  %v5110_v61 = vld [vmem:[#allocation63_spill] sm:$0xff]  ;;  %vm5116_vm1 = vmmov %vm5096_vm11 }
  0xae   :  { %5098 = vst [vmem:[#allocation45_spill] sm:$0xff] %v2965_v19  ;;  %v1143_v57 = vmul.f32 %v2660_v12, %v2660_v12  ;;  %v2981_v8 = vld.sshfl [vmem:[#allocation1 + $0x18] sm:$0xff pattern:$0x75316420]  ;;  %v5108_v2 = vld [vmem:[#allocation61_spill] sm:$0xff]  ;;  %v5114_v12 = vld [vmem:[#allocation72_spill] sm:$0xff] }
  0xaf   :  { %5103 = vst [vmem:[#allocation48_spill] sm:$0xff] %v2973_v27  ;;  %v1209_v16 = vadd.f32 %v1208_v56, %v1207_v37  ;;  %vm5109_vm3 = vnez %v5108_v2  ;;  %v5111_v7 = vld [vmem:[#allocation62_spill] sm:$0xff]  ;;  %v712_v20 = vadd.f32 %v711_v6, %v710_v10  ;;  %v5113_v41 = vld [vmem:[#allocation65_spill] sm:$0xff]  ;;  %vm5115_vm12 = vnez %v5114_v12  ;;  %v5119_v6 = vld [vmem:[#allocation68_spill] sm:$0xff] }
  0xb0   :  { %5104 = vst [vmem:[#allocation49_spill] sm:$0xff] %v2975_v4  ;;  %v2986_v3 = vsel %vm5109_vm3, %v5107_v39, 0.0  ;;  %vm5112_vm2 = vnez %v5111_v7  ;;  %v1212_v4 = vsel %vm5096_vm11, %v1142_v28, 0.0  ;;  %v2997_v56 = vsel %vm5115_vm12, %v5113_v41, 0.0  ;;  %v5117_v7 = vld [vmem:[#allocation66_spill] sm:$0xff]  ;;  %vm5121_vm12 = vmmov %vm5116_vm1  ;;  %v5122_v12 = vld [vmem:[#allocation69_spill] sm:$0xff] }
  0xb1   :  { %5105 = vst [vmem:[#allocation50_spill] sm:$0xff] %v2979_v36  ;;  %v2991_v11 = vsel %vm5112_vm2, %v5110_v61, 0.0  ;;  %v715_v37 = vsel %vm5116_vm1, %v2769_v63, 0.0  ;;  %v1144_v39 = vmul.f32 %v2665_v13, %v2665_v13  ;;  %v1211_v2 = vadd.f32 %v1210_v9, %v1209_v16  ;;  %vm5124_vm3 = vmmov %vm5121_vm12  ;;  %v5158_v36 = vld [vmem:[#allocation90_spill] sm:$0xff] }
  0xb2   :  { %5106 = vst [vmem:[#allocation111_spill] sm:$0xff] %v2981_v8  ;;  %vm5118_vm2 = vnez %v4939_v17  ;;  %vm5120_vm11 = vnez %v4942_v48  ;;  %v714_v41 = vadd.f32 %v713_v32, %v712_v20  ;;  %v1214_v61 = vsel %vm5121_vm12, %v1143_v57, 0.0  ;;  %v5125_v48 = vld [vmem:[#allocation70_spill] sm:$0xff]  ;;  %v5127_v20 = vld [vmem:[#allocation71_spill] sm:$0xff]  ;;  %v5156_v8 = vld [vmem:[#allocation24_spill] sm:$0xff] }
  0xb3   :  { %858 = vst [vmem:[#allocation1] ss:$2 sm:$0xff] %v2965_v19  ;;  %v3007_v10 = vsel %vm5118_vm2, %v5117_v7, 0.0  ;;  %v3012_v28 = vsel %vm5120_vm11, %v5119_v6, 0.0  ;;  %vm5123_vm1 = vnez %v4945_v38  ;;  %v717_v9 = vsel %vm5124_vm3, %v2774_v25, 0.0  ;;  %v5130_v38 = vld [vmem:[#allocation73_spill] sm:$0xff] }
  0xb4   :  { %859 = vst [vmem:[#allocation1 + $0x10] ss:$2 sm:$0xff] %v2973_v27  ;;  %v3019_v13 = vsel %vm5123_vm1, %v5122_v12, 0.0  ;;  %v1145_v16 = vmul.f32 %v2697_v1, %v2697_v1  ;;  %v1213_v7 = vadd.f32 %v1212_v4, %v1211_v2  ;;  %vm5126_vm11 = vnez %v4948_v31  ;;  %vm5129_vm1 = vmmov %vm5124_vm3  ;;  %v5133_v2 = vld [vmem:[#allocation92_spill] sm:$0xff]  ;;  %v5157_v31 = vld [vmem:[#allocation106_spill] sm:$0xff] }
  0xb5   :  { %v3028_v32 = vsel %vm5126_vm11, %v5125_v48, 0.0  ;;  %vm5128_vm12 = vnez %v4951_v58  ;;  %v716_v6 = vadd.f32 %v715_v37, %v714_v41  ;;  %v1216_v12 = vsel %vm5129_vm1, %v1144_v39, 0.0  ;;  %vm5132_vm2 = vmmov %vm5129_vm1  ;;  %v5135_v37 = vld [vmem:[#allocation94_spill] sm:$0xff]  ;;  %v5145_v58 = vld [vmem:[#allocation23_spill] sm:$0xff] }
  0xb6   :  { %v3033_v57 = vsel %vm5128_vm12, %v5127_v20, 0.0  ;;  %vm5131_vm3 = vnez %v4954_v42  ;;  %v719_v1 = vsel %vm5132_vm2, %v2779_v22, 0.0  ;;  %v1146_v48 = vmul.f32 %v2723_v30, %v2723_v30  ;;  %vm5137_vm2 = vmmov %vm5129_vm1  ;;  %v5162_v27 = vld [vmem:[#allocation25_spill] sm:$0xff] }
  0xb7   :  { %v3039_v17 = vsel %vm5131_vm3, %v5130_v38, 0.0  ;;  %v1215_v4 = vadd.f32 %v1214_v61, %v1213_v7  ;;  %vm5134_vm11 = vnez %v4957_v43  ;;  %v3053_v39 = vsel %vm2574_vm14, %v5135_v37, 0.0 }
  0xb8   :  { %v3048_v20 = vsel %vm5134_vm11, %v5133_v2, 0.0  ;;  %v718_v41 = vadd.f32 %v717_v9, %v716_v6  ;;  %v1218_v38 = vsel %vm5129_vm1, %v1145_v16, 0.0  ;;  %v3059_v42 = vsel %vm5027_vm13, %v2673_v62, 0.0  ;;  %v5138_v2 = vld [vmem:[#allocation96_spill] sm:$0xff]  ;;  %vm5142_vm13 = vmmov %vm5137_vm2 }
  0xb9   :  { %5136 = vst [vmem:[#allocation51_spill] sm:$0xff] %v3059_v42  ;;  %v721_v30 = vsel %vm5137_vm2, %v2786_v15, 0.0  ;;  %v1147_v61 = vmul.f32 %v2728_v59, %v2728_v59  ;;  %v1217_v7 = vadd.f32 %v1216_v12, %v1215_v4  ;;  %v3068_v37 = vsel %vm5029_vm9, %v5138_v2, 0.0  ;;  %v5139_v9 = vld [vmem:[#allocation84_spill] sm:$0xff] }
  0xba   :  { %vm5140_vm1 = vnez %v5139_v9  ;;  %v720_v6 = vadd.f32 %v719_v1, %v718_v41  ;;  %v1220_v62 = vsel %vm5142_vm13, %v1146_v48, 0.0  ;;  %v3079_v43 = vsel %vm2601_vm15, %v5143_v45, 0.0  ;;  %v5149_v1 = vld [vmem:[#allocation100_spill] sm:$0xff]  ;;  %v5150_v41 = vld [vmem:[#allocation87_spill] sm:$0xff]  ;;  %vm5152_vm15 = vmmov %vm5137_vm2 }
  0xbb   :  { %v3073_v16 = vsel %vm5140_vm1, %v2679_v18, 0.0  ;;  %v723_v12 = vsel %vm5137_vm2, %v5145_v58, 0.0  ;;  %v1148_v4 = vmul.f32 %v2733_v33, %v2733_v33  ;;  %v1219_v2 = vadd.f32 %v1218_v38, %v1217_v7  ;;  %v5153_v9 = vld [vmem:[#allocation31_spill] sm:$0xff] }
  0xbc   :  { %5141 = vst [vmem:[#allocation63_spill] sm:$0xff] %v3073_v16  ;;  %v3088_v18 = vsel %vm2605_vm10, %v5146_v52, 0.0  ;;  %vm5151_vm13 = vnez %v5150_v41  ;;  %v722_v47 = vadd.f32 %v721_v30, %v720_v6  ;;  %v1222_v45 = vsel %vm5152_vm15, %v1147_v61, 0.0  ;;  %vm5161_vm15 = vmmov %vm5137_vm2  ;;  %v3195_v16 = vld.sshfl [vmem:[#allocation1 + $0x38] sm:$0xff pattern:$0x75316420] }
  0xbd   :  { %5148 = vst [vmem:[#allocation65_spill] sm:$0xff] %v3088_v18  ;;  %v3093_v48 = vsel %vm5151_vm13, %v5149_v1, 0.0  ;;  %v3099_v19 = vsel %vm2628_vm0, %v5153_v9, 0.0  ;;  %v725_v38 = vsel %vm5137_vm2, %v5156_v8, 0.0  ;;  %v1149_v52 = vmul.f32 %v2753_v23, %v2753_v23 }
  0xbe   :  { %5155 = vst [vmem:[#allocation66_spill] sm:$0xff] %v3099_v19  ;;  %v1221_v7 = vadd.f32 %v1220_v62, %v1219_v2  ;;  %vm5159_vm10 = vnez %v5158_v36  ;;  %v3113_v30 = vsel %vm2687_vm4, %v2832_v35, 0.0  ;;  %v724_v61 = vadd.f32 %v723_v12, %v722_v47  ;;  %v5163_v36 = vld [vmem:[#allocation108_spill] sm:$0xff]  ;;  %vm5415_vm4 = vmmov %vm5137_vm2 }
  0xbf   :  { %v3108_v1 = vsel %vm5159_vm10, %v5157_v31, 0.0  ;;  %5160 = vst [vmem:[#allocation68_spill] sm:$0xff] %v3113_v30  ;;  %v1224_v9 = vsel %vm5161_vm15, %v1148_v4, 0.0  ;;  %v3119_v6 = vsel %vm2703_vm8, %v2839_v26, 0.0  ;;  %v727_v62 = vsel %vm5137_vm2, %v5162_v27, 0.0  ;;  %vm5165_vm15 = vmmov %vm5137_vm2  ;;  %v5177_v19 = vld [vmem:[#allocation36_spill] sm:$0xff] }
  0xc0   :  { %v1150_v31 = vmul.f32 %v2758_v24, %v2758_v24  ;;  %v1223_v2 = vadd.f32 %v1222_v45, %v1221_v7  ;;  %v3128_v35 = vsel %vm2709_vm6, %v5163_v36, 0.0  ;;  %v3133_v47 = vsel %vm2715_vm5, %v2846_v14, 0.0  ;;  %vm5171_vm5 = vmmov %vm5137_vm2  ;;  %5189 = vst [vmem:[#allocation94_spill] sm:$0xff] %v3195_v16  ;;  %v5194_v16 = vld [vmem:[#allocation16_spill] sm:$0xff] }
  0xc1   :  { %5164 = vst [vmem:[#allocation69_spill] sm:$0xff] %v3128_v35  ;;  %v726_v12 = vadd.f32 %v725_v38, %v724_v61  ;;  %v1226_v26 = vsel %vm5165_vm15, %v1149_v52, 0.0  ;;  %v3139_v4 = vsel %vm2739_vm7, %v2848_v51, 0.0  ;;  %v729_v45 = vsel %vm5137_vm2, %v5167_v29, 0.0  ;;  %v5169_v61 = vld [vmem:[#allocation28_spill] sm:$0xff]  ;;  %vm5170_vm15 = vmmov %vm5137_vm2 }
  0xc2   :  { %5166 = vst [vmem:[#allocation70_spill] sm:$0xff] %v3139_v4  ;;  %v1151_v36 = vmul.f32 %v2763_v40, %v2763_v40  ;;  %v1225_v7 = vadd.f32 %v1224_v9, %v1223_v2  ;;  %vm5168_vm6 = vnez %v5022_v54  ;;  %v731_v52 = vsel %vm5170_vm15, %v5169_v61, 0.0  ;;  %vm5172_vm7 = vmmov %vm5137_vm2  ;;  %v5174_v54 = vld [vmem:[#allocation35_spill] sm:$0xff] }
  0xc3   :  { %v3148_v14 = vsel %vm5168_vm6, %v2855_v34, 0.0  ;;  %v728_v38 = vadd.f32 %v727_v62, %v726_v12  ;;  %v1228_v60 = vsel %vm5171_vm5, %v1150_v31, 0.0  ;;  %v733_v51 = vsel %vm5172_vm7, %v2860_v49, 0.0  ;;  %vm5175_vm6 = vmmov %vm5137_vm2 }
  0xc4   :  { %v735_v46 = vsel %vm5137_vm2, %v5173_v21, 0.0  ;;  %v1152_v9 = vmul.f32 %v2769_v63, %v2769_v63  ;;  %v1227_v2 = vadd.f32 %v1226_v26, %v1225_v7  ;;  %v737_v34 = vsel %vm5175_vm6, %v5174_v54, 0.0  ;;  %vm5176_vm8 = vmmov %vm5137_vm2 }
  0xc5   :  { %v730_v55 = vadd.f32 %v729_v45, %v728_v38  ;;  %v1230_v62 = vsel %vm5176_vm8, %v1151_v36, 0.0  ;;  %v559_v12 = vrot.slane %v2733_v33, 4  ;;  %v1153_v31 = vmul.f32 %v2774_v25, %v2774_v25  ;;  %vm5178_vm5 = vmmov %vm5137_vm2 }
  0xc6   :  { %v1229_v41 = vadd.f32 %v1228_v60, %v1227_v2  ;;  %v560_v4 = vrot.slane %v2758_v24, 4  ;;  %v561_v35 = vrot.slane %v2769_v63, 4  ;;  %v739_v26 = vsel %vm5178_vm5, %v5177_v19, 0.0  ;;  %vm5179_vm7 = vmmov %vm5137_vm2 }
  0xc7   :  { %v732_v30 = vadd.f32 %v731_v52, %v730_v55  ;;  %v1232_v45 = vsel %vm5179_vm7, %v1152_v9, 0.0  ;;  %v562_v7 = vrot.slane %v2779_v22, 4  ;;  %v1154_v36 = vmul.f32 %v2779_v22, %v2779_v22  ;;  %vm5180_vm6 = vmmov %vm5137_vm2  ;;  %v3179_v52 = vld.sshfl [vmem:[#allocation1 + $0x20] sm:$0xff pattern:$0x75316420] }
  0xc8   :  { %v1231_v33 = vadd.f32 %v1230_v62, %v1229_v41  ;;  %v563_v38 = vrot.slane %v5145_v58, 4  ;;  %v564_v60 = vrot.slane %v5162_v27, 4  ;;  %v1234_v24 = vsel %vm5180_vm6, %v1153_v31, 0.0  ;;  %vm5181_vm8 = vmmov %vm5137_vm2  ;;  %5182 = vst [vmem:[#allocation71_spill] sm:$0xff] %v3179_v52  ;;  %v5186_v31 = vld [vmem:[#allocation37_spill] sm:$0xff] }
  0xc9   :  { %v734_v2 = vadd.f32 %v733_v51, %v732_v30  ;;  %v565_v55 = vrot.slane %v5169_v61, 4  ;;  %v592_v63 = vsel %vm5181_vm8, %v2728_v59, %v559_v12  ;;  %v1155_v9 = vmul.f32 %v2786_v15, %v2786_v15  ;;  %vm5183_vm15 = vmmov %vm5137_vm2  ;;  %v3187_v30 = vld.sshfl [vmem:[#allocation1 + $0x28] sm:$0xff pattern:$0x75316420] }
  0xca   :  { %v1233_v18 = vadd.f32 %v1232_v45, %v1231_v33  ;;  %v593_v22 = vsel %vm5183_vm15, %v2753_v23, %v560_v4  ;;  %v594_v41 = vsel %vm5137_vm2, %v2763_v40, %v561_v35  ;;  %5184 = vst [vmem:[#allocation73_spill] sm:$0xff] %v3187_v30  ;;  %v3189_v51 = vld.sshfl [vmem:[#allocation1 + $0x30] sm:$0xff pattern:$0x75316420]  ;;  %vm5187_vm5 = vmmov %vm5137_vm2  ;;  %v566_v52 = vrot.slane %v5173_v21, 4  ;;  %v5191_v35 = vld [vmem:[#allocation14_spill] sm:$0xff] }
  0xcb   :  { %5185 = vst [vmem:[#allocation92_spill] sm:$0xff] %v3189_v51  ;;  %v736_v62 = vadd.f32 %v735_v46, %v734_v2  ;;  %v741_v59 = vsel %vm5187_vm5, %v5186_v31, 0.0  ;;  %vm5188_vm7 = vmmov %vm5137_vm2  ;;  %v1156_v23 = vmul.f32 %v5145_v58, %v5145_v58  ;;  %v3202_v45 = vsub.f32 %v5191_v35, %v592_v63  ;;  %v3204_v46 = vld.sshfl [vmem:[#allocation1] sm:$0xff pattern:$0x75316420] }
  0xcc   :  { %v1236_v12 = vsel %vm5188_vm7, %v1154_v36, 0.0  ;;  %v1235_v4 = vadd.f32 %v1234_v24, %v1233_v18  ;;  %vm5190_vm6 = vmmov %vm5137_vm2  ;;  %v3206_v33 = vld.sshfl [vmem:[#allocation1 + $0x8] sm:$0xff pattern:$0x75316420]  ;;  %v5193_v51 = vld [vmem:[#allocation15_spill] sm:$0xff]  ;;  %v3213_v42 = vsub.f32 %v5194_v16, %v594_v41 }
  0xcd   :  { %v595_v40 = vsel %vm5190_vm6, %v2774_v25, %v562_v7  ;;  %v738_v2 = vadd.f32 %v737_v34, %v736_v62  ;;  %vm5192_vm8 = vmmov %vm5137_vm2  ;;  %v3210_v30 = vsub.f32 %v5193_v51, %v593_v22  ;;  %v3215_v58 = vld.sshfl [vmem:[#allocation1 + $0x10] sm:$0xff pattern:$0x75316420]  ;;  %v1157_v25 = vmul.f32 %v5156_v8, %v5156_v8  ;;  %860 = vst [vmem:[#allocation1 + $0x20] ss:$2 sm:$0xff] %v3202_v45 }
  0xce   :  { %v1238_v36 = vsel %vm5192_vm8, %v1155_v9, 0.0  ;;  %5195 = vst [vmem:[#allocation96_spill] sm:$0xff] %v3213_v42  ;;  %v1237_v18 = vadd.f32 %v1236_v12, %v1235_v4  ;;  %v567_v7 = vrot.slane %v5177_v19, 4  ;;  %v3221_v24 = vld.sshfl [vmem:[#allocation1 + $0x18] sm:$0xff pattern:$0x75316420]  ;;  %vm5196_vm15 = vmmov %vm5137_vm2  ;;  %v1158_v12 = vmul.f32 %v5162_v27, %v5162_v27 }
  0xcf   :  { %v740_v34 = vadd.f32 %v739_v26, %v738_v2  ;;  %v1240_v63 = vsel %vm5196_vm15, %v1156_v23, 0.0  ;;  %v5197_v9 = vld [vmem:[#allocation38_spill] sm:$0xff]  ;;  %v5198_v62 = vld [vmem:[#allocation17_spill] sm:$0xff]  ;;  %861 = vst [vmem:[#allocation1 + $0x30] ss:$2 sm:$0xff] %v3210_v30  ;;  %vm5200_vm5 = vmmov %vm5137_vm2  ;;  %v1159_v27 = vmul.f32 %v5167_v29, %v5167_v29  ;;  %v747_v2 = vsel %vm5137_vm2, %v2918_v5, 0.0 }
  0xd0   :  { %v568_v22 = vrot.slane %v5197_v9, 4  ;;  %v3226_v41 = vsub.f32 %v5198_v62, %v595_v40  ;;  %v743_v16 = vsel %vm5137_vm2, %v5197_v9, 0.0  ;;  %v1239_v4 = vadd.f32 %v1238_v36, %v1237_v18  ;;  %870 = vst [vmem:[#allocation1] ss:$2 sm:$0xff] %v3213_v42  ;;  %vm5201_vm7 = vmmov %vm5137_vm2  ;;  %v5202_v62 = vld [vmem:[#allocation40_spill] sm:$0xff]  ;;  %v5206_v18 = vld [vmem:[#allocation18_spill] sm:$0xff] }
  0xd1   :  { %v596_v51 = vsel %vm5200_vm5, %v2786_v15, %v563_v38  ;;  %v742_v26 = vadd.f32 %v741_v59, %v740_v34  ;;  %v1242_v23 = vsel %vm5201_vm7, %v1157_v25, 0.0  ;;  %v569_v40 = vrot.slane %v2918_v5, 4  ;;  %vm5203_vm6 = vmmov %vm5137_vm2 }
  0xd2   :  { %5199 = vst [vmem:[#allocation97_spill] sm:$0xff] %v3226_v41  ;;  %v745_v35 = vsel %vm5203_vm6, %v5202_v62, 0.0  ;;  %v1241_v36 = vadd.f32 %v1240_v63, %v1239_v4  ;;  %vm5204_vm8 = vmmov %vm5137_vm2  ;;  %v3249_v34 = vsub.f32 %v5206_v18, %v596_v51  ;;  %v5232_v18 = vld [vmem:[#allocation43_spill] sm:$0xff] }
  0xd3   :  { %871 = vst [vmem:[#allocation1 + $0x10] ss:$2 sm:$0xff] %v3226_v41  ;;  %v597_v15 = vsel %vm5204_vm8, %v5156_v8, %v564_v60  ;;  %v744_v38 = vadd.f32 %v743_v16, %v742_v26  ;;  %vm5205_vm15 = vmmov %vm5137_vm2  ;;  %v1160_v41 = vmul.f32 %v5169_v61, %v5169_v61  ;;  %v5210_v60 = vld [vmem:[#allocation19_spill] sm:$0xff]  ;;  %v1161_v61 = vmul.f32 %v2860_v49, %v2860_v49 }
  0xd4   :  { %v1244_v59 = vsel %vm5205_vm15, %v1158_v12, 0.0  ;;  %5207 = vst [vmem:[#allocation23_spill] sm:$0xff] %v3249_v34  ;;  %v1243_v42 = vadd.f32 %v1242_v23, %v1241_v36  ;;  %vm5208_vm5 = vmmov %vm5137_vm2  ;;  %v3260_v12 = vsub.f32 %v5210_v60, %v597_v15  ;;  %v3262_v51 = vld.sshfl [vmem:[#allocation1 + $0x20] sm:$0xff pattern:$0x75316420]  ;;  %v5215_v36 = vld [vmem:[#allocation20_spill] sm:$0xff] }
  0xd5   :  { %v598_v63 = vsel %vm5208_vm5, %v5167_v29, %v565_v55  ;;  %v746_v4 = vadd.f32 %v745_v35, %v744_v38  ;;  %vm5209_vm7 = vmmov %vm5137_vm2  ;;  %v3270_v55 = vld.sshfl [vmem:[#allocation1 + $0x28] sm:$0xff pattern:$0x75316420]  ;;  %v751_v16 = vsel %vm5137_vm2, %v2929_v53, 0.0 }
  0xd6   :  { %v1246_v8 = vsel %vm5209_vm7, %v1159_v27, 0.0  ;;  %5211 = vst [vmem:[#allocation98_spill] sm:$0xff] %v3260_v12  ;;  %vm5212_vm6 = vmmov %vm5137_vm2  ;;  %v1245_v23 = vadd.f32 %v1244_v59, %v1243_v42  ;;  %v3274_v15 = vsub.f32 %v5215_v36, %v598_v63  ;;  %v3276_v38 = vld.sshfl [vmem:[#allocation1 + $0x30] sm:$0xff pattern:$0x75316420]  ;;  %v1162_v42 = vmul.f32 %v5173_v21, %v5173_v21 }
  0xd7   :  { %v749_v26 = vsel %vm5212_vm6, %v2923_v44, 0.0  ;;  %vm5213_vm8 = vmmov %vm5137_vm2  ;;  %v748_v35 = vadd.f32 %v747_v2, %v746_v4  ;;  %872 = vst [vmem:[#allocation1 + $0x20] ss:$2 sm:$0xff] %v3249_v34  ;;  %v5219_v4 = vld [vmem:[#allocation21_spill] sm:$0xff] }
  0xd8   :  { %v599_v29 = vsel %vm5213_vm8, %v2860_v49, %v566_v52  ;;  %vm5214_vm15 = vmmov %vm5137_vm2  ;;  %5216 = vst [vmem:[#allocation100_spill] sm:$0xff] %v3274_v15  ;;  %v1247_v59 = vadd.f32 %v1246_v8, %v1245_v23  ;;  %v3284_v52 = vld.sshfl [vmem:[#allocation1 + $0x38] sm:$0xff pattern:$0x75316420]  ;;  %v1163_v8 = vmul.f32 %v5174_v54, %v5174_v54 }
  0xd9   :  { %v1248_v27 = vsel %vm5214_vm15, %v1160_v41, 0.0  ;;  %v750_v2 = vadd.f32 %v749_v26, %v748_v35  ;;  %vm5217_vm5 = vmmov %vm5137_vm2  ;;  %v3290_v25 = vsub.f32 %v5219_v4, %v599_v29  ;;  %873 = vst [vmem:[#allocation1 + $0x30] ss:$2 sm:$0xff] %v3260_v12  ;;  %v3293_v36 = vld.sshfl [vmem:[#allocation1] sm:$0xff pattern:$0x75316420] }
  0xda   :  { %v1250_v41 = vsel %vm5217_vm5, %v1161_v61, 0.0  ;;  %vm5218_vm7 = vmmov %vm5137_vm2  ;;  %5221 = vst [vmem:[#allocation24_spill] sm:$0xff] %v3293_v36  ;;  %v1249_v23 = vadd.f32 %v1248_v27, %v1247_v59  ;;  %v3300_v61 = vld.sshfl [vmem:[#allocation1 + $0x8] sm:$0xff pattern:$0x75316420]  ;;  %v755_v4 = vsel %vm5137_vm2, %v2952_v50, 0.0 }
  0xdb   :  { %v600_v63 = vsel %vm5218_vm7, %v5174_v54, %v567_v7  ;;  %5220 = vst [vmem:[#allocation31_spill] sm:$0xff] %v3290_v25  ;;  %vm5222_vm6 = vmmov %vm5137_vm2  ;;  %v752_v35 = vadd.f32 %v751_v16, %v750_v2  ;;  %v3305_v49 = vld.sshfl [vmem:[#allocation1 + $0x10] sm:$0xff pattern:$0x75316420]  ;;  %v1164_v54 = vmul.f32 %v5177_v19, %v5177_v19  ;;  %v5227_v59 = vld [vmem:[#allocation22_spill] sm:$0xff]  ;;  %v1165_v19 = vmul.f32 %v5186_v31, %v5186_v31 }
  0xdc   :  { %v753_v21 = vsel %vm5222_vm6, %v2938_v0, 0.0  ;;  %5223 = vst [vmem:[#allocation106_spill] sm:$0xff] %v3300_v61  ;;  %vm5224_vm8 = vmmov %vm5137_vm2  ;;  %v1251_v27 = vadd.f32 %v1250_v41, %v1249_v23  ;;  %v3313_v26 = vsub.f32 %v5227_v59, %v600_v63  ;;  %v3315_v16 = vld.sshfl [vmem:[#allocation1 + $0x18] sm:$0xff pattern:$0x75316420]  ;;  %v5234_v63 = vld [vmem:[#allocation27_spill] sm:$0xff] }
  0xdd   :  { %v1252_v7 = vsel %vm5224_vm8, %v1162_v42, 0.0  ;;  %vm5225_vm15 = vmmov %vm5137_vm2  ;;  %5226 = vst [vmem:[#allocation25_spill] sm:$0xff] %v3305_v49  ;;  %v754_v42 = vadd.f32 %v753_v21, %v752_v35  ;;  %v5322_v49 = vld [vmem:[#allocation59_spill] sm:$0xff] }
  0xde   :  { %v601_v29 = vsel %vm5225_vm15, %v5186_v31, %v568_v22  ;;  %882 = vst [vmem:[#allocation1] ss:$2 sm:$0xff] %v3274_v15  ;;  %vm5230_vm5 = vmmov %vm5137_vm2  ;;  %v1253_v41 = vadd.f32 %v1252_v7, %v1251_v27  ;;  %v3329_v21 = vld.sshfl [vmem:[#allocation1 + $0x20] sm:$0xff pattern:$0x75316420]  ;;  %v759_v31 = vsel %vm5137_vm2, %v2986_v3, 0.0  ;;  %v1166_v7 = vmul.f32 %v5197_v9, %v5197_v9 }
  0xdf   :  { %5228 = vst [vmem:[#allocation108_spill] sm:$0xff] %v3313_v26  ;;  %v1254_v2 = vsel %vm5230_vm5, %v1163_v8, 0.0  ;;  %vm5231_vm7 = vmmov %vm5137_vm2  ;;  %v3327_v23 = vsub.f32 %v5234_v63, %v601_v29  ;;  %v756_v8 = vadd.f32 %v755_v4, %v754_v42  ;;  %v5241_v27 = vld [vmem:[#allocation29_spill] sm:$0xff]  ;;  %v1167_v9 = vmul.f32 %v5202_v62, %v5202_v62 }
  0xe0   :  { %5229 = vst [vmem:[#allocation26_spill] sm:$0xff] %v3315_v16  ;;  %v602_v60 = vsel %vm5231_vm7, %v5202_v62, %v569_v40  ;;  %vm5233_vm6 = vmmov %vm5137_vm2  ;;  %v5238_v40 = vrot.slane %v2929_v53, 4  ;;  %v1255_v29 = vadd.f32 %v1254_v2, %v1253_v41  ;;  %v3353_v12 = vld.sshfl [vmem:[#allocation1 + $0x38] sm:$0xff pattern:$0x75316420] }
  0xe1   :  { %883 = vst [vmem:[#allocation1 + $0x10] ss:$2 sm:$0xff] %v3290_v25  ;;  %v757_v15 = vsel %vm5233_vm6, %v5232_v18, 0.0  ;;  %vm5237_vm8 = vmmov %vm5137_vm2  ;;  %v3337_v25 = vld.sshfl [vmem:[#allocation1 + $0x28] sm:$0xff pattern:$0x75316420]  ;;  %v3344_v4 = vsub.f32 %v5241_v27, %v602_v60 }
  0xe2   :  { %5235 = vst [vmem:[#allocation28_spill] sm:$0xff] %v3327_v23  ;;  %v1256_v35 = vsel %vm5237_vm8, %v1164_v54, 0.0  ;;  %vm5239_vm15 = vmmov %vm5137_vm2  ;;  %v3346_v54 = vld.sshfl [vmem:[#allocation1 + $0x30] sm:$0xff pattern:$0x75316420]  ;;  %v758_v42 = vadd.f32 %v757_v15, %v756_v8  ;;  %v5247_v60 = vrot.slane %v2952_v50, 4 }
  0xe3   :  { %5236 = vst [vmem:[#allocation34_spill] sm:$0xff] %v3329_v21  ;;  %v603_v59 = vsel %vm5239_vm15, %v2923_v44, %v5238_v40  ;;  %vm5244_vm5 = vmmov %vm5137_vm2  ;;  %v1257_v2 = vadd.f32 %v1256_v35, %v1255_v29  ;;  %v5249_v27 = vld [vmem:[#allocation30_spill] sm:$0xff] }
  0xe4   :  { %5240 = vst [vmem:[#allocation35_spill] sm:$0xff] %v3337_v25  ;;  %v761_v40 = vsel %vm5244_vm5, %v2991_v11, 0.0  ;;  %vm5245_vm7 = vmmov %vm5137_vm2  ;;  %v3362_v15 = vsub.f32 %v5249_v27, %v603_v59  ;;  %v1168_v59 = vmul.f32 %v2918_v5, %v2918_v5  ;;  %v5255_v27 = vrot.slane %v2986_v3, 4  ;;  %v5316_v25 = vld [vmem:[#allocation54_spill] sm:$0xff] }
  0xe5   :  { %5242 = vst [vmem:[#allocation36_spill] sm:$0xff] %v3344_v4  ;;  %v1258_v22 = vsel %vm5245_vm7, %v1165_v19, 0.0  ;;  %vm5248_vm6 = vmmov %vm5137_vm2  ;;  %v3365_v8 = vld.sshfl [vmem:[#allocation1] sm:$0xff pattern:$0x75316420]  ;;  %v760_v19 = vadd.f32 %v759_v31, %v758_v42 }
  0xe6   :  { %5243 = vst [vmem:[#allocation37_spill] sm:$0xff] %v3346_v54  ;;  %v604_v41 = vsel %vm5248_vm6, %v2938_v0, %v5247_v60  ;;  %vm5252_vm8 = vmmov %vm5137_vm2  ;;  %v3370_v35 = vld.sshfl [vmem:[#allocation1 + $0x8] sm:$0xff pattern:$0x75316420]  ;;  %v1259_v60 = vadd.f32 %v1258_v22, %v1257_v2  ;;  %v605_v31 = vsel %vm5137_vm2, %v5232_v18, %v5255_v27  ;;  %v1169_v22 = vmul.f32 %v2923_v44, %v2923_v44 }
  0xe7   :  { %884 = vst [vmem:[#allocation1 + $0x20] ss:$2 sm:$0xff] %v3313_v26  ;;  %v1260_v63 = vsel %vm5252_vm8, %v1166_v7, 0.0  ;;  %vm5254_vm15 = vmmov %vm5137_vm2  ;;  %v762_v7 = vadd.f32 %v761_v40, %v760_v19  ;;  %v5262_v2 = vrot.slane %v2997_v56, 4  ;;  %v581_v19 = vrot.slane %v3108_v1, 4  ;;  %v5265_v26 = vld [vmem:[#allocation39_spill] sm:$0xff] }
  0xe8   :  { %5246 = vst [vmem:[#allocation38_spill] sm:$0xff] %v3353_v12  ;;  %v763_v29 = vsel %vm5254_vm15, %v2997_v56, 0.0  ;;  %v3380_v42 = vld.sshfl [vmem:[#allocation1 + $0x10] sm:$0xff pattern:$0x75316420]  ;;  %vm5257_vm5 = vmmov %vm5137_vm2  ;;  %v1261_v27 = vadd.f32 %v1260_v63, %v1259_v60  ;;  %v1170_v63 = vmul.f32 %v2929_v53, %v2929_v53 }
  0xe9   :  { %5250 = vst [vmem:[#allocation40_spill] sm:$0xff] %v3362_v15  ;;  %v1262_v62 = vsel %vm5257_vm5, %v1167_v9, 0.0  ;;  %vm5261_vm7 = vmmov %vm5137_vm2  ;;  %v764_v9 = vadd.f32 %v763_v29, %v762_v7 }
  0xea   :  { %885 = vst [vmem:[#allocation1 + $0x30] ss:$2 sm:$0xff] %v3327_v23  ;;  %v765_v5 = vsel %vm5261_vm7, %v3007_v10, 0.0  ;;  %vm5263_vm6 = vmmov %vm5137_vm2  ;;  %v1263_v60 = vadd.f32 %v1262_v62, %v1261_v27  ;;  %v1171_v62 = vmul.f32 %v2938_v0, %v2938_v0 }
  0xeb   :  { %5251 = vst [vmem:[#allocation43_spill] sm:$0xff] %v3365_v8  ;;  %v3388_v8 = vld.sshfl [vmem:[#allocation1 + $0x18] sm:$0xff pattern:$0x75316420]  ;;  %v606_v40 = vsel %vm5263_vm6, %v2991_v11, %v5262_v2  ;;  %vm5264_vm8 = vmmov %vm5137_vm2  ;;  %v5269_v2 = vrot.slane %v3012_v28, 4  ;;  %v766_v7 = vadd.f32 %v765_v5, %v764_v9 }
  0xec   :  { %5253 = vst [vmem:[#allocation112_spill] sm:$0xff] %v3370_v35  ;;  %v5258_v35 = vld [vmem:[#allocation32_spill] sm:$0xff]  ;;  %vm5268_vm15 = vmmov %vm5137_vm2 }
  0xed   :  { %5256 = vst [vmem:[#allocation113_spill] sm:$0xff] %v3380_v42  ;;  %v3386_v23 = vsub.f32 %v5258_v35, %v604_v41  ;;  %v1264_v41 = vsel %vm5264_vm8, %v1168_v59, 0.0  ;;  %v3402_v35 = vsub.f32 %v5265_v26, %v605_v31  ;;  %v767_v44 = vsel %vm5268_vm15, %v3012_v28, 0.0  ;;  %vm5271_vm5 = vmmov %vm5137_vm2  ;;  %v5272_v26 = vld [vmem:[#allocation41_spill] sm:$0xff] }
  0xee   :  { %894 = vst [vmem:[#allocation1] ss:$2 sm:$0xff] %v3344_v4  ;;  %v607_v29 = vsel %vm5137_vm2, %v3007_v10, %v5269_v2  ;;  %v3414_v59 = vld.sshfl [vmem:[#allocation1 + $0x28] sm:$0xff pattern:$0x75316420]  ;;  %v1266_v31 = vsel %vm5271_vm5, %v1169_v22, 0.0  ;;  %v3418_v42 = vsub.f32 %v5272_v26, %v606_v40  ;;  %vm5275_vm7 = vmmov %vm5137_vm2  ;;  %v1265_v27 = vadd.f32 %v1264_v41, %v1263_v60 }
  0xef   :  { %5259 = vst [vmem:[#allocation114_spill] sm:$0xff] %v3386_v23  ;;  %v769_v53 = vsel %vm5275_vm7, %v3019_v13, 0.0  ;;  %v582_v2 = vrot.slane %v3119_v6, 4  ;;  %v768_v5 = vadd.f32 %v767_v44, %v766_v7  ;;  %vm5277_vm6 = vmmov %vm5137_vm2  ;;  %v5278_v40 = vrot.slane %v3028_v32, 4  ;;  %v5280_v26 = vld [vmem:[#allocation42_spill] sm:$0xff]  ;;  %v5304_v4 = vld [vmem:[#allocation63_spill] sm:$0xff] }
  0xf0   :  { %5260 = vst [vmem:[#allocation115_spill] sm:$0xff] %v3388_v8  ;;  %v3404_v8 = vld.sshfl [vmem:[#allocation1 + $0x20] sm:$0xff pattern:$0x75316420]  ;;  %v1268_v22 = vsel %vm5277_vm6, %v1170_v63, 0.0  ;;  %vm5279_vm8 = vmmov %vm5137_vm2  ;;  %v1172_v41 = vmul.f32 %v2952_v50, %v2952_v50  ;;  %v1267_v44 = vadd.f32 %v1266_v31, %v1265_v27  ;;  %v583_v63 = vrot.slane %v3133_v47, 4 }
  0xf1   :  { %895 = vst [vmem:[#allocation1 + $0x10] ss:$2 sm:$0xff] %v3362_v15  ;;  %v608_v9 = vsel %vm5279_vm8, %v3019_v13, %v5278_v40  ;;  %vm5283_vm15 = vmmov %vm5137_vm2  ;;  %v770_v7 = vadd.f32 %v769_v53, %v768_v5  ;;  %v1270_v40 = vsel %vm5137_vm2, %v1171_v62, 0.0  ;;  %v584_v27 = vrot.slane %v3148_v14, 4 }
  0xf2   :  { %5266 = vst [vmem:[#allocation116_spill] sm:$0xff] %v3402_v35  ;;  %v771_v0 = vsel %vm5283_vm15, %v3028_v32, 0.0  ;;  %vm5286_vm5 = vmmov %vm5137_vm2  ;;  %v1269_v31 = vadd.f32 %v1268_v22, %v1267_v44 }
  0xf3   :  { %5267 = vst [vmem:[#allocation117_spill] sm:$0xff] %v3404_v8  ;;  %v3420_v8 = vld.sshfl [vmem:[#allocation1 + $0x30] sm:$0xff pattern:$0x75316420]  ;;  %vm5288_vm7 = vmmov %vm5137_vm2  ;;  %v772_v62 = vadd.f32 %v771_v0, %v770_v7  ;;  %v1272_v0 = vsel %vm5137_vm2, %v1172_v41, 0.0  ;;  %v5298_v7 = vld [vmem:[#allocation47_spill] sm:$0xff] }
  0xf4   :  { %5270 = vst [vmem:[#allocation118_spill] sm:$0xff] %v3414_v59  ;;  %v3428_v59 = vld.sshfl [vmem:[#allocation1 + $0x38] sm:$0xff pattern:$0x75316420]  ;;  %v773_v50 = vsel %vm5288_vm7, %v3033_v57, 0.0  ;;  %vm5292_vm6 = vmmov %vm5137_vm2  ;;  %v1271_v44 = vadd.f32 %v1270_v40, %v1269_v31  ;;  %v5308_v41 = vrot.slane %v3093_v48, 4 }
  0xf5   :  { %5273 = vst [vmem:[#allocation119_spill] sm:$0xff] %v3418_v42  ;;  %v3446_v60 = vld.sshfl [vmem:[#allocation1 + $0x8] sm:$0xff pattern:$0x75316420]  ;;  %v775_v5 = vsel %vm5292_vm6, %v3039_v17, 0.0  ;;  %vm5294_vm8 = vmmov %vm5137_vm2  ;;  %v774_v15 = vadd.f32 %v773_v50, %v772_v62  ;;  %v5309_v31 = vld [vmem:[#allocation65_spill] sm:$0xff] }
  0xf6   :  { %5274 = vst [vmem:[#allocation120_spill] sm:$0xff] %v3420_v8  ;;  %v3436_v8 = vsub.f32 %v5280_v26, %v607_v29  ;;  %v5285_v29 = vrot.slane %v3039_v17, 4  ;;  %vm5297_vm15 = vmmov %vm5137_vm2  ;;  %v5311_v62 = vld [vmem:[#allocation66_spill] sm:$0xff]  ;;  %v1273_v34 = vadd.f32 %v1272_v0, %v1271_v44  ;;  %v787_v44 = vsel %vm5137_vm2, %v3079_v43, 0.0 }
  0xf7   :  { %896 = vst [vmem:[#allocation1 + $0x20] ss:$2 sm:$0xff] %v3386_v23  ;;  %v3439_v23 = vld.sshfl [vmem:[#allocation1] sm:$0xff pattern:$0x75316420]  ;;  %vm5302_vm7 = vmmov %vm5137_vm2 }
  0xf8   :  { %5276 = vst [vmem:[#allocation121_spill] sm:$0xff] %v3428_v59  ;;  %v609_v26 = vsel %vm5286_vm5, %v3033_v57, %v5285_v29  ;;  %v5289_v59 = vld [vmem:[#allocation44_spill] sm:$0xff]  ;;  %v3462_v53 = vld.sshfl [vmem:[#allocation1 + $0x18] sm:$0xff pattern:$0x75316420]  ;;  %v5293_v29 = vrot.slane %v3053_v39, 4  ;;  %vm5301_vm5 = vmmov %vm5137_vm2 }
  0xf9   :  { %5281 = vst [vmem:[#allocation122_spill] sm:$0xff] %v3436_v8  ;;  %vm5305_vm6 = vmmov %vm5137_vm2 }
  0xfa   :  { %897 = vst [vmem:[#allocation1 + $0x30] ss:$2 sm:$0xff] %v3402_v35  ;;  %v5296_v35 = vld [vmem:[#allocation51_spill] sm:$0xff] }
  0xfb   :  { %5282 = vst [vmem:[#allocation123_spill] sm:$0xff] %v3439_v23  ;;  %v3453_v23 = vld.sshfl [vmem:[#allocation1 + $0x10] sm:$0xff pattern:$0x75316420] }
  0xfc   :  { %5284 = vst [vmem:[#allocation124_spill] sm:$0xff] %v3446_v60  ;;  %v3460_v60 = vsub.f32 %v5289_v59, %v608_v9  ;;  %v1173_v9 = vmul.f32 %v5232_v18, %v5232_v18  ;;  %v3479_v59 = vsub.f32 %v5298_v7, %v609_v26  ;;  %v614_v7 = vsel %vm5137_vm2, %v5311_v62, %v581_v19 }
  0xfd   :  { %5287 = vst [vmem:[#allocation125_spill] sm:$0xff] %v3453_v23  ;;  %v610_v23 = vsel %vm5294_vm8, %v3048_v20, %v5293_v29  ;;  %v777_v29 = vsel %vm5301_vm5, %v3048_v20, 0.0  ;;  %vm5307_vm8 = vmmov %vm5137_vm2  ;;  %v1174_v19 = vmul.f32 %v2986_v3, %v2986_v3 }
  0xfe   :  { %906 = vst [vmem:[#allocation1] ss:$2 sm:$0xff] %v3418_v42  ;;  %v5295_v42 = vrot.slane %v3068_v37, 4  ;;  %v3491_v40 = vld.sshfl [vmem:[#allocation1 + $0x28] sm:$0xff pattern:$0x75316420]  ;;  %vm5313_vm5 = vmmov %vm5137_vm2  ;;  %v3509_v21 = vsub.f32 %v5316_v25, %v610_v23 }
  0xff   :  { %5290 = vst [vmem:[#allocation126_spill] sm:$0xff] %v3460_v60  ;;  %v781_v26 = vsel %vm5307_vm8, %v5296_v35, 0.0  ;;  %vm5321_vm8 = vmmov %vm5137_vm2 }
 0x100   :  { %5291 = vst [vmem:[#allocation127_spill] sm:$0xff] %v3462_v53  ;;  %v611_v22 = vsel %vm5297_vm15, %v5296_v35, %v5295_v42  ;;  %v3481_v53 = vld.sshfl [vmem:[#allocation1 + $0x20] sm:$0xff pattern:$0x75316420]  ;;  %v779_v42 = vsel %vm5302_vm7, %v3053_v39, 0.0  ;;  %vm5310_vm15 = vmmov %vm5137_vm2 }
 0x101   :  { %907 = vst [vmem:[#allocation1 + $0x10] ss:$2 sm:$0xff] %v3436_v8  ;;  %v5303_v8 = vrot.slane %v3079_v43, 4  ;;  %v613_v50 = vsel %vm5310_vm15, %v5309_v31, %v5308_v41  ;;  %v3503_v54 = vld.sshfl [vmem:[#allocation1 + $0x30] sm:$0xff pattern:$0x75316420]  ;;  %vm5315_vm7 = vmmov %vm5137_vm2 }
 0x102   :  { %5299 = vst [vmem:[#allocation51_spill] sm:$0xff] %v3479_v59  ;;  %v3511_v16 = vld.sshfl [vmem:[#allocation1 + $0x38] sm:$0xff pattern:$0x75316420]  ;;  %vm5324_vm15 = vmmov %vm5137_vm2 }
 0x103   :  { %5300 = vst [vmem:[#allocation128_spill] sm:$0xff] %v3481_v53  ;;  %v612_v18 = vsel %vm5305_vm6, %v5304_v4, %v5303_v8  ;;  %v5312_v53 = vld [vmem:[#allocation68_spill] sm:$0xff]  ;;  %v776_v8 = vadd.f32 %v775_v5, %v774_v15  ;;  %vm5319_vm6 = vmmov %vm5137_vm2  ;;  %v785_v23 = vsel %vm5324_vm15, %v5304_v4, 0.0 }
 0x104   :  { %5306 = vst [vmem:[#allocation63_spill] sm:$0xff] %v3491_v40  ;;  %v615_v12 = vsel %vm5313_vm5, %v5312_v53, %v582_v2  ;;  %v783_v40 = vsel %vm5315_vm7, %v3068_v37, 0.0  ;;  %v1274_v41 = vsel %vm5319_vm6, %v1173_v9, 0.0  ;;  %v5320_v2 = vld [vmem:[#allocation69_spill] sm:$0xff]  ;;  %vm5325_vm5 = vmmov %vm5137_vm2 }
 0x105   :  { %5314 = vst [vmem:[#allocation65_spill] sm:$0xff] %v3503_v54  ;;  %v616_v54 = vsel %vm5321_vm8, %v5320_v2, %v583_v63  ;;  %v3522_v15 = vld.sshfl [vmem:[#allocation1] sm:$0xff pattern:$0x75316420]  ;;  %v778_v5 = vadd.f32 %v777_v29, %v776_v8  ;;  %v789_v3 = vsel %vm5325_vm5, %v5309_v31, 0.0  ;;  %v1175_v63 = vmul.f32 %v2991_v11, %v2991_v11  ;;  %vm5328_vm7 = vmmov %vm5137_vm2 }
 0x106   :  { %908 = vst [vmem:[#allocation1 + $0x20] ss:$2 sm:$0xff] %v3460_v60  ;;  %v3519_v60 = vsub.f32 %v5322_v49, %v611_v22  ;;  %v3530_v9 = vld.sshfl [vmem:[#allocation1 + $0x8] sm:$0xff pattern:$0x75316420]  ;;  %v5327_v22 = vld [vmem:[#allocation70_spill] sm:$0xff]  ;;  %vm5335_vm6 = vmmov %vm5137_vm2  ;;  %v1275_v61 = vadd.f32 %v1274_v41, %v1273_v34 }
 0x107   :  { %5317 = vst [vmem:[#allocation66_spill] sm:$0xff] %v3509_v21  ;;  %v617_v0 = vsel %vm5328_vm7, %v5327_v22, %v584_v27  ;;  %v5329_v49 = vld [vmem:[#allocation64_spill] sm:$0xff]  ;;  %v5331_v29 = vld [vmem:[#allocation67_spill] sm:$0xff]  ;;  %vm5336_vm8 = vmmov %vm5137_vm2  ;;  %v1176_v27 = vmul.f32 %v2997_v56, %v2997_v56 }
 0x108   :  { %5318 = vst [vmem:[#allocation68_spill] sm:$0xff] %v3511_v16  ;;  %v3537_v25 = vsub.f32 %v5329_v49, %v612_v18  ;;  %v3540_v8 = vsub.f32 %v5331_v29, %v613_v50  ;;  %v3544_v16 = vld.sshfl [vmem:[#allocation1 + $0x18] sm:$0xff pattern:$0x75316420]  ;;  %v3550_v11 = vsel %vm5336_vm8, %v5311_v62, 0.0  ;;  %vm5337_vm15 = vmmov %vm5137_vm2  ;;  %v5342_v34 = vld [vmem:[#allocation91_spill] sm:$0xff] }
 0x109   :  { %909 = vst [vmem:[#allocation1 + $0x30] ss:$2 sm:$0xff] %v3479_v59  ;;  %v780_v59 = vadd.f32 %v779_v42, %v778_v5  ;;  %v1276_v18 = vsel %vm5337_vm15, %v1174_v19, 0.0  ;;  %v5338_v50 = vld [vmem:[#allocation46_spill] sm:$0xff]  ;;  %v5339_v5 = vld [vmem:[#allocation49_spill] sm:$0xff]  ;;  %vm5340_vm5 = vmmov %vm5137_vm2  ;;  %v3565_v41 = vsub.f32 %v5342_v34, %v615_v12 }
 0x10a   :  { %5323 = vst [vmem:[#allocation69_spill] sm:$0xff] %v3522_v15  ;;  %v3542_v15 = vld.sshfl [vmem:[#allocation1 + $0x10] sm:$0xff pattern:$0x75316420]  ;;  %v1006_v42 = vsel %vm5137_vm2, %v5338_v50, 0.0  ;;  %v1007_v29 = vsel %vm5340_vm5, %v5339_v5, 0.0  ;;  %vm5346_vm7 = vmmov %vm5137_vm2  ;;  %v1277_v5 = vadd.f32 %v1276_v18, %v1275_v61  ;;  %v1181_v61 = vmul.f32 %v3033_v57, %v3033_v57 }
 0x10b   :  { %5326 = vst [vmem:[#allocation129_spill] sm:$0xff] %v3530_v9  ;;  %v791_v9 = vsel %vm5335_vm6, %v3093_v48, 0.0  ;;  %v782_v49 = vadd.f32 %v781_v26, %v780_v59  ;;  %v3576_v50 = vsel %vm5346_vm7, %v3108_v1, 0.0  ;;  %vm5347_vm6 = vmmov %vm5137_vm2  ;;  %v1008_v34 = vadd.f32 %v1007_v29, %v1006_v42 }
 0x10c   :  { %5330 = vst [vmem:[#allocation70_spill] sm:$0xff] %v3537_v25  ;;  %v3580_v59 = vsel %vm5347_vm6, %v5312_v53, 0.0  ;;  %vm5348_vm8 = vmmov %vm5137_vm2  ;;  %v1182_v42 = vmul.f32 %v3039_v17, %v3039_v17  ;;  %v1184_v17 = vmul.f32 %v3053_v39, %v3053_v39  ;;  %v1186_v39 = vmul.f32 %v3068_v37, %v3068_v37 }
 0x10d   :  { %5332 = vst [vmem:[#allocation130_spill] sm:$0xff] %v3540_v8  ;;  %v3570_v56 = vld.sshfl [vmem:[#allocation1 + $0x20] sm:$0xff pattern:$0x75316420]  ;;  %v1278_v12 = vsel %vm5348_vm8, %v1175_v63, 0.0  ;;  %vm5349_vm15 = vmmov %vm5137_vm2  ;;  %v5351_v63 = vld [vmem:[#allocation50_spill] sm:$0xff] }
 0x10e   :  { %5333 = vst [vmem:[#allocation131_spill] sm:$0xff] %v3542_v15  ;;  %v3572_v19 = vld.sshfl [vmem:[#allocation1 + $0x28] sm:$0xff pattern:$0x75316420]  ;;  %v3588_v26 = vsel %vm5349_vm15, %v3119_v6, 0.0  ;;  %vm5352_vm5 = vmmov %vm5137_vm2  ;;  %v1279_v18 = vadd.f32 %v1278_v12, %v1277_v5 }
 0x10f   :  { %5334 = vst [vmem:[#allocation132_spill] sm:$0xff] %v3544_v16  ;;  %v5341_v16 = vld [vmem:[#allocation88_spill] sm:$0xff]  ;;  %vm5354_vm7 = vmmov %vm5137_vm2 }
 0x110   :  { %918 = vst [vmem:[#allocation1] ss:$2 sm:$0xff] %v3509_v21  ;;  %v3562_v15 = vsub.f32 %v5341_v16, %v614_v7  ;;  %v5343_v21 = vld [vmem:[#allocation93_spill] sm:$0xff]  ;;  %v1177_v7 = vmul.f32 %v3007_v10, %v3007_v10  ;;  %v1178_v16 = vmul.f32 %v3012_v28, %v3012_v28  ;;  %v1280_v10 = vsel %vm5137_vm2, %v1176_v27, 0.0  ;;  %vm5355_vm6 = vmmov %vm5137_vm2 }
 0x111   :  { %919 = vst [vmem:[#allocation1 + $0x10] ss:$2 sm:$0xff] %v3519_v60  ;;  %v3568_v36 = vsub.f32 %v5343_v21, %v616_v54  ;;  %v784_v54 = vadd.f32 %v783_v40, %v782_v49  ;;  %v3590_v21 = vld.sshfl [vmem:[#allocation1 + $0x30] sm:$0xff pattern:$0x75316420]  ;;  %v1180_v40 = vmul.f32 %v3028_v32, %v3028_v32  ;;  %v3607_v28 = vsel %vm5354_vm7, %v5320_v2, 0.0  ;;  %vm5356_vm8 = vmmov %vm5137_vm2 }
 0x112   :  { %5344 = vst [vmem:[#allocation46_spill] sm:$0xff] %v3570_v56  ;;  %v1009_v56 = vsel %vm5352_vm5, %v5351_v63, 0.0  ;;  %v3603_v29 = vld.sshfl [vmem:[#allocation1 + $0x38] sm:$0xff pattern:$0x75316420]  ;;  %vm5357_vm15 = vmmov %vm5137_vm2  ;;  %v3621_v27 = vsel %vm5137_vm2, %v3148_v14, 0.0  ;;  %v1281_v12 = vadd.f32 %v1280_v10, %v1279_v18 }
 0x113   :  { %5345 = vst [vmem:[#allocation49_spill] sm:$0xff] %v3572_v19  ;;  %v1179_v19 = vmul.f32 %v3019_v13, %v3019_v13  ;;  %v786_v49 = vadd.f32 %v785_v23, %v784_v54  ;;  %v3611_v13 = vsel %vm5355_vm6, %v3133_v47, 0.0  ;;  %v3615_v23 = vsel %vm5356_vm8, %v5327_v22, 0.0  ;;  %vm5358_vm5 = vmmov %vm5137_vm2  ;;  %v5362_v10 = vld [vmem:[#allocation95_spill] sm:$0xff]  ;;  %v5363_v18 = vld [vmem:[#allocation33_spill] sm:$0xff] }
 0x114   :  { %920 = vst [vmem:[#allocation1 + $0x20] ss:$2 sm:$0xff] %v3537_v25  ;;  %v1282_v32 = vsel %vm5357_vm15, %v1177_v7, 0.0  ;;  %v1183_v54 = vmul.f32 %v3048_v20, %v3048_v20  ;;  %v1284_v5 = vsel %vm5358_vm5, %v1178_v16, 0.0  ;;  %vm5359_vm7 = vmmov %vm5137_vm2  ;;  %v1010_v7 = vadd.f32 %v1009_v56, %v1008_v34 }
 0x115   :  { %5350 = vst [vmem:[#allocation133_spill] sm:$0xff] %v3590_v21  ;;  %v788_v57 = vadd.f32 %v787_v44, %v786_v49  ;;  %v1286_v63 = vsel %vm5359_vm7, %v1179_v19, 0.0  ;;  %v1283_v44 = vadd.f32 %v1282_v32, %v1281_v12  ;;  %vm5360_vm6 = vmmov %vm5137_vm2  ;;  %v3638_v20 = vsub.f32 %v5362_v10, %v617_v0 }
 0x116   :  { %5353 = vst [vmem:[#allocation50_spill] sm:$0xff] %v3603_v29  ;;  %v1288_v49 = vsel %vm5360_vm6, %v1180_v40, 0.0  ;;  %vm5361_vm8 = vmmov %vm5137_vm2  ;;  %v1185_v56 = vmul.f32 %v5296_v35, %v5296_v35  ;;  %v1187_v0 = vmul.f32 %v5304_v4, %v5304_v4  ;;  %v5367_v35 = vld [vmem:[#allocation111_spill] sm:$0xff] }
 0x117   :  { %921 = vst [vmem:[#allocation1 + $0x30] ss:$2 sm:$0xff] %v3540_v8  ;;  %v3629_v29 = vld.sshfl [vmem:[#allocation1] sm:$0xff pattern:$0x75316420]  ;;  %v790_v21 = vadd.f32 %v789_v3, %v788_v57  ;;  %v1290_v8 = vsel %vm5361_vm8, %v1181_v61, 0.0  ;;  %v1328_v3 = vmul.f32 %v5363_v18, %v5363_v18  ;;  %v1285_v40 = vadd.f32 %v1284_v5, %v1283_v44  ;;  %vm5364_vm15 = vmmov %vm5137_vm2 }
 0x118   :  { %v3633_v25 = vld.sshfl [vmem:[#allocation1 + $0x8] sm:$0xff pattern:$0x75316420]  ;;  %v3640_v16 = vld.sshfl [vmem:[#allocation1 + $0x10] sm:$0xff pattern:$0x75316420]  ;;  %v1188_v57 = vmul.f32 %v3079_v43, %v3079_v43  ;;  %vm5368_vm5 = vmmov %vm5137_vm2 }
 0x119   :  { %v3642_v19 = vld.sshfl [vmem:[#allocation1 + $0x18] sm:$0xff pattern:$0x75316420]  ;;  %v792_v34 = vadd.f32 %v791_v9, %v790_v21  ;;  %v1292_v61 = vsel %vm5364_vm15, %v1182_v42, 0.0  ;;  %930 = vst [vmem:[#allocation1] ss:$2 sm:$0xff] %v3562_v15  ;;  %v1287_v12 = vadd.f32 %v1286_v63, %v1285_v40  ;;  %vm5369_vm7 = vmmov %vm5137_vm2 }
 0x11a   :  { %931 = vst [vmem:[#allocation1 + $0x10] ss:$2 sm:$0xff] %v3565_v41  ;;  %v1011_v9 = vsel %vm5137_vm2, %v5367_v35, 0.0  ;;  %v1294_v5 = vsel %vm5368_vm5, %v1183_v54, 0.0  ;;  %v1296_v4 = vsel %vm5369_vm7, %v1184_v17, 0.0  ;;  %v5370_v18 = vld [vmem:[#allocation71_spill] sm:$0xff]  ;;  %vm5371_vm6 = vmmov %vm5137_vm2 }
 0x11b   :  { %v3649_v32 = vld.sshfl [vmem:[#allocation1 + $0x20] sm:$0xff pattern:$0x75316420]  ;;  %v3658_v21 = vld.sshfl [vmem:[#allocation1 + $0x28] sm:$0xff pattern:$0x75316420]  ;;  %v794_v42 = vadd.f32 %v3550_v11, %v792_v34  ;;  %v1012_v37 = vadd.f32 %v1011_v9, %v1010_v7  ;;  %vm5373_vm8 = vmmov %vm5137_vm2  ;;  %v1289_v63 = vadd.f32 %v1288_v49, %v1287_v12 }
 0x11c   :  { %5365 = vst [vmem:[#allocation33_spill] sm:$0xff] %v3649_v32  ;;  %v1013_v10 = vsel %vm5371_vm6, %v5370_v18, 0.0  ;;  %v5374_v32 = vld [vmem:[#allocation107_spill] sm:$0xff]  ;;  %vm5375_vm15 = vmmov %vm5137_vm2  ;;  %v1300_v17 = vsel %vm5137_vm2, %v1186_v39, 0.0  ;;  %v1190_v39 = vmul.f32 %v3093_v48, %v3093_v48  ;;  %v5382_v12 = vld [vmem:[#allocation109_spill] sm:$0xff]  ;;  %v1191_v48 = vmul.f32 %v5311_v62, %v5311_v62 }
 0x11d   :  { %5366 = vst [vmem:[#allocation134_spill] sm:$0xff] %v3658_v21  ;;  %v5372_v21 = vld [vmem:[#allocation73_spill] sm:$0xff]  ;;  %v1329_v11 = vmul.f32 %v5374_v32, %v5374_v32  ;;  %v796_v54 = vadd.f32 %v3576_v50, %v794_v42  ;;  %v1298_v34 = vsel %vm5375_vm15, %v1185_v56, 0.0  ;;  %v1014_v7 = vadd.f32 %v1013_v10, %v1012_v37  ;;  %vm5376_vm5 = vmmov %vm5137_vm2  ;;  %v5380_v42 = vld [vmem:[#allocation94_spill] sm:$0xff] }
 0x11e   :  { %v3665_v44 = vld.sshfl [vmem:[#allocation1 + $0x30] sm:$0xff pattern:$0x75316420]  ;;  %932 = vst [vmem:[#allocation1 + $0x20] ss:$2 sm:$0xff] %v3568_v36  ;;  %v1015_v35 = vsel %vm5373_vm8, %v5372_v21, 0.0  ;;  %vm5377_vm7 = vmmov %vm5137_vm2  ;;  %v1291_v50 = vadd.f32 %v1290_v8, %v1289_v63  ;;  %v1189_v10 = vmul.f32 %v5309_v31, %v5309_v31  ;;  %v1330_v37 = vmul.f32 %v5382_v12, %v5382_v12 }
 0x11f   :  { %v3669_v43 = vld.sshfl [vmem:[#allocation1 + $0x38] sm:$0xff pattern:$0x75316420]  ;;  %v3682_v40 = vsel %vm5376_vm5, %v1187_v0, 0.0  ;;  %v3685_v9 = vsel %vm5377_vm7, %v1188_v57, 0.0  ;;  %v5378_v21 = vld [vmem:[#allocation92_spill] sm:$0xff]  ;;  %vm5379_vm6 = vmmov %vm5137_vm2  ;;  %v798_v32 = vadd.f32 %v3580_v59, %v796_v54  ;;  %v1016_v49 = vadd.f32 %v1015_v35, %v1014_v7 }
 0x120   :  { %933 = vst [vmem:[#allocation1 + $0x30] ss:$2 sm:$0xff] %v3638_v20  ;;  %v1017_v18 = vsel %vm5379_vm6, %v5378_v21, 0.0  ;;  %vm5381_vm8 = vmmov %vm5137_vm2  ;;  %v3696_v0 = vld.sshfl [vmem:[#allocation1] sm:$0xff pattern:$0x75316420]  ;;  %v1293_v35 = vadd.f32 %v1292_v61, %v1291_v50  ;;  %v1192_v7 = vmul.f32 %v3108_v1, %v3108_v1  ;;  %v1194_v12 = vmul.f32 %v3119_v6, %v3119_v6 }
 0x121   :  { %v1019_v56 = vsel %vm5381_vm8, %v5380_v42, 0.0  ;;  %v3698_v57 = vld.sshfl [vmem:[#allocation1 + $0x8] sm:$0xff pattern:$0x75316420]  ;;  %v5383_v21 = vld [vmem:[#allocation110_spill] sm:$0xff]  ;;  %v800_v59 = vadd.f32 %v3588_v26, %v798_v32  ;;  %v1018_v63 = vadd.f32 %v1017_v18, %v1016_v49  ;;  %vm5384_vm15 = vmmov %vm5137_vm2  ;;  %v1193_v42 = vmul.f32 %v5312_v53, %v5312_v53 }
 0x122   :  { %v1331_v8 = vmul.f32 %v5383_v21, %v5383_v21  ;;  %v3705_v54 = vld.sshfl [vmem:[#allocation1 + $0x10] sm:$0xff pattern:$0x75316420]  ;;  %v1021_v31 = vsel %vm5384_vm15, %v3204_v46, 0.0  ;;  %v1295_v32 = vadd.f32 %v1294_v5, %v1293_v35  ;;  %v1023_v62 = vsel %vm5137_vm2, %v3206_v33, 0.0  ;;  %vm5385_vm5 = vmmov %vm5137_vm2 }
 0x123   :  { %v3717_v26 = vld.sshfl [vmem:[#allocation1 + $0x18] sm:$0xff pattern:$0x75316420]  ;;  %v802_v18 = vadd.f32 %v3607_v28, %v800_v59  ;;  %v1020_v50 = vadd.f32 %v1019_v56, %v1018_v63  ;;  %1392 = vst [vmem:[#allocation1] ss:$2 sm:$0xff] %v1328_v3  ;;  %v1195_v1 = vmul.f32 %v5320_v2, %v5320_v2  ;;  %v1196_v6 = vmul.f32 %v3133_v47, %v3133_v47  ;;  %vm5386_vm7 = vmmov %vm5137_vm2 }
 0x124   :  { %v1197_v53 = vmul.f32 %v5327_v22, %v5327_v22  ;;  %v1198_v28 = vmul.f32 %v3148_v14, %v3148_v14  ;;  %v1297_v33 = vadd.f32 %v1296_v4, %v1295_v32  ;;  %v1306_v3 = vsel %vm5385_vm5, %v1189_v10, 0.0  ;;  %1394 = vst [vmem:[#allocation1 + $0x10] ss:$2 sm:$0xff] %v1329_v11  ;;  %vm5387_vm6 = vmmov %vm5137_vm2 }
 0x125   :  { %v3719_v61 = vld.sshfl [vmem:[#allocation1 + $0x20] sm:$0xff pattern:$0x75316420]  ;;  %v3722_v46 = vld.sshfl [vmem:[#allocation1 + $0x28] sm:$0xff pattern:$0x75316420]  ;;  %v804_v56 = vadd.f32 %v3611_v13, %v802_v18  ;;  %v1022_v21 = vadd.f32 %v1021_v31, %v1020_v50  ;;  %vm5388_vm8 = vmmov %vm5137_vm2  ;;  %v1334_v50 = vmul.f32 %v3202_v45, %v3202_v45 }
 0x126   :  { %v1308_v2 = vsel %vm5386_vm7, %v1190_v39, 0.0  ;;  %v1310_v47 = vsel %vm5387_vm6, %v1191_v48, 0.0  ;;  %v1312_v22 = vsel %vm5388_vm8, %v1192_v7, 0.0  ;;  %vm5389_vm15 = vmmov %vm5137_vm2  ;;  %1396 = vst [vmem:[#allocation1 + $0x20] ss:$2 sm:$0xff] %v1330_v37  ;;  %v1299_v35 = vadd.f32 %v1298_v34, %v1297_v33  ;;  %v5392_v39 = vld [vmem:[#allocation45_spill] sm:$0xff] }
 0x127   :  { %v3734_v5 = vld.sshfl [vmem:[#allocation1 + $0x30] sm:$0xff pattern:$0x75316420]  ;;  %v3736_v49 = vld.sshfl [vmem:[#allocation1 + $0x38] sm:$0xff pattern:$0x75316420]  ;;  %v806_v59 = vadd.f32 %v3615_v23, %v804_v56  ;;  %v1024_v4 = vadd.f32 %v1023_v62, %v1022_v21  ;;  %vm5390_vm5 = vmmov %vm5137_vm2  ;;  %v1332_v63 = vmul.f32 %v5392_v39, %v5392_v39 }
 0x128   :  { %v1025_v14 = vsel %vm5389_vm15, %v3215_v58, 0.0  ;;  %v3747_v13 = vsel %vm5137_vm2, %v1193_v42, 0.0  ;;  %1398 = vst [vmem:[#allocation1 + $0x30] ss:$2 sm:$0xff] %v1331_v8  ;;  %v3750_v11 = vsel %vm5390_vm5, %v1194_v12, 0.0  ;;  %vm5391_vm7 = vmmov %vm5137_vm2  ;;  %v5393_v31 = vld [vmem:[#allocation48_spill] sm:$0xff]  ;;  %v1301_v34 = vadd.f32 %v1300_v17, %v1299_v35 }
 0x129   :  { %v1027_v10 = vsel %vm5391_vm7, %v3221_v24, 0.0  ;;  %v1333_v58 = vmul.f32 %v5393_v31, %v5393_v31  ;;  %v808_v23 = vadd.f32 %v3621_v27, %v806_v59  ;;  %vm5394_vm6 = vmmov %vm5137_vm2  ;;  %v1026_v48 = vadd.f32 %v1025_v14, %v1024_v4  ;;  %v5401_v21 = vld [vmem:[#allocation24_spill] sm:$0xff]  ;;  %v5404_v35 = vld [vmem:[#allocation97_spill] sm:$0xff] }
 0x12a   :  { %v3760_v37 = vsel %vm5394_vm6, %v1195_v1, 0.0  ;;  %vm5395_vm8 = vmmov %vm5137_vm2  ;;  %v3769_v24 = vsel %vm5137_vm2, %v1198_v28, 0.0  ;;  %v1303_v27 = vadd.f32 %v3682_v40, %v1301_v34  ;;  %v1399_v32 = vld.sshfl [vmem:[#allocation1] sm:$0xff pattern:$0x75316420]  ;;  %v1335_v40 = vmul.f32 %v3210_v30, %v3210_v30  ;;  %v5403_v59 = vld [vmem:[#allocation96_spill] sm:$0xff] }
 0x12b   :  { %v3763_v8 = vsel %vm5395_vm8, %v1196_v6, 0.0  ;;  %vm5396_vm15 = vmmov %vm5137_vm2  ;;  %809 = vadd.xlane.f32.xlu0 %v808_v23  ;;  %v1028_v17 = vadd.f32 %v1027_v10, %v1026_v48  ;;  %v1400_v62 = vld.sshfl [vmem:[#allocation1 + $0x8] sm:$0xff pattern:$0x75316420]  ;;  %v1555_v30 = vsel %vm5137_vm2, %v1399_v32, 0.0  ;;  %v5407_v31 = vld [vmem:[#allocation25_spill] sm:$0xff] }
 0x12c   :  { %v3766_v7 = vsel %vm5396_vm15, %v1197_v53, 0.0  ;;  %vm5397_vm5 = vmmov %vm5137_vm2  ;;  %v1401_v1 = vld.sshfl [vmem:[#allocation1 + $0x10] sm:$0xff pattern:$0x75316420]  ;;  %v1305_v6 = vadd.f32 %v3685_v9, %v1303_v27  ;;  %1407 = vst [vmem:[#allocation1] ss:$2 sm:$0xff] %v1332_v63  ;;  %v1336_v9 = vmul.f32 %v5403_v59, %v5403_v59 }
 0x12d   :  { %v1029_v42 = vsel %vm5397_vm5, %v3262_v51, 0.0  ;;  %vm5398_vm7 = vmmov %vm5137_vm2  ;;  %v1402_v28 = vld.sshfl [vmem:[#allocation1 + $0x18] sm:$0xff pattern:$0x75316420]  ;;  %v5413_v27 = vld [vmem:[#allocation35_spill] sm:$0xff] }
 0x12e   :  { %v1031_v12 = vsel %vm5398_vm7, %v3270_v55, 0.0  ;;  %vm5399_vm6 = vmmov %vm5137_vm2  ;;  %v1030_v53 = vadd.f32 %v1029_v42, %v1028_v17  ;;  %v1403_v55 = vld.sshfl [vmem:[#allocation1 + $0x20] sm:$0xff pattern:$0x75316420]  ;;  %1408 = vst [vmem:[#allocation1 + $0x10] ss:$2 sm:$0xff] %v1333_v58 }
 0x12f   :  { %v1033_v18 = vsel %vm5399_vm6, %v3276_v38, 0.0  ;;  %vm5400_vm8 = vmmov %vm5137_vm2  ;;  %v1404_v56 = vld.sshfl [vmem:[#allocation1 + $0x28] sm:$0xff pattern:$0x75316420]  ;;  %v1307_v38 = vadd.f32 %v1306_v3, %v1305_v6  ;;  %v5405_v63 = vld [vmem:[#allocation106_spill] sm:$0xff] }
 0x130   :  { %v1035_v51 = vsel %vm5400_vm8, %v3284_v52, 0.0  ;;  %v1032_v33 = vadd.f32 %v1031_v12, %v1030_v53  ;;  %vm5402_vm15 = vmmov %vm5137_vm2  ;;  %v1405_v14 = vld.sshfl [vmem:[#allocation1 + $0x30] sm:$0xff pattern:$0x75316420]  ;;  %v1337_v52 = vmul.f32 %v5404_v35, %v5404_v35  ;;  %1409 = vst [vmem:[#allocation1 + $0x20] ss:$2 sm:$0xff] %v1334_v50 }
 0x131   :  { %v1037_v45 = vsel %vm5402_vm15, %v5401_v21, 0.0  ;;  %v1406_v4 = vld.sshfl [vmem:[#allocation1 + $0x38] sm:$0xff pattern:$0x75316420]  ;;  %v1309_v10 = vadd.f32 %v1308_v2, %v1307_v38  ;;  %vm5406_vm5 = vmmov %vm5137_vm2  ;;  %v1556_v12 = vsel %vm5415_vm4, %v1400_v62, 0.0  ;;  %v1558_v50 = vsel %vm5137_vm2, %v1401_v1, 0.0 }
 0x132   :  { %v1034_v39 = vadd.f32 %v1033_v18, %v1032_v33  ;;  %v1039_v3 = vsel %vm5406_vm5, %v5405_v63, 0.0  ;;  %vm5408_vm7 = vmmov %vm5137_vm2  ;;  %1410 = vst [vmem:[#allocation1 + $0x30] ss:$2 sm:$0xff] %v1335_v40  ;;  %v5409_v58 = vld [vmem:[#allocation26_spill] sm:$0xff]  ;;  %v1557_v32 = vadd.f32 %v1556_v12, %v1555_v30  ;;  %v5416_v33 = vld [vmem:[#allocation23_spill] sm:$0xff] }
 0x133   :  { %v1041_v23 = vsel %vm5408_vm7, %v5407_v31, 0.0  ;;  %vm5410_vm6 = vmmov %vm5137_vm2  ;;  %v5411_v48 = vld [vmem:[#allocation34_spill] sm:$0xff]  ;;  %v1311_v2 = vadd.f32 %v1310_v47, %v1309_v10  ;;  %v1411_v6 = vld.sshfl [vmem:[#allocation1] sm:$0xff pattern:$0x75316420]  ;;  %v1338_v21 = vmul.f32 %v5416_v33, %v5416_v33 }
 0x134   :  { %v1043_v34 = vsel %vm5410_vm6, %v5409_v58, 0.0  ;;  %vm5412_vm8 = vmmov %vm5137_vm2  ;;  %v1036_v18 = vadd.f32 %v1035_v51, %v1034_v39  ;;  %v1412_v53 = vld.sshfl [vmem:[#allocation1 + $0x8] sm:$0xff pattern:$0x75316420]  ;;  %v5418_v35 = vld [vmem:[#allocation98_spill] sm:$0xff]  ;;  %v1559_v47 = vadd.f32 %v1558_v50, %v1557_v32 }
 0x135   :  { %v1045_v42 = vsel %vm5412_vm8, %v5411_v48, 0.0  ;;  %vm5414_vm15 = vmmov %vm5137_vm2  ;;  %v1313_v38 = vadd.f32 %v1312_v22, %v1311_v2  ;;  %1419 = vst [vmem:[#allocation1] ss:$2 sm:$0xff] %v1336_v9  ;;  %v1339_v63 = vmul.f32 %v5418_v35, %v5418_v35  ;;  %v1413_v31 = vld.sshfl [vmem:[#allocation1 + $0x10] sm:$0xff pattern:$0x75316420] }
 0x136   :  { %v1047_v17 = vsel %vm5414_vm15, %v5413_v27, 0.0  ;;  %v1038_v40 = vadd.f32 %v1037_v45, %v1036_v18  ;;  %vm5417_vm5 = vmmov %vm5137_vm2  ;;  %v3809_v62 = vld.sshfl [vmem:[#allocation1 + $0x18] sm:$0xff pattern:$0x75316420]  ;;  %v5420_v58 = vld [vmem:[#allocation37_spill] sm:$0xff] }
 0x137   :  { %v1560_v59 = vsel %vm5417_vm5, %v1402_v28, 0.0  ;;  %v1315_v51 = vadd.f32 %v3747_v13, %v1313_v38  ;;  %v3812_v30 = vld.sshfl [vmem:[#allocation1 + $0x20] sm:$0xff pattern:$0x75316420]  ;;  %1420 = vst [vmem:[#allocation1 + $0x10] ss:$2 sm:$0xff] %v1337_v52  ;;  %vm5419_vm4 = vmmov %vm5137_vm2 }
 0x138   :  { %v1040_v1 = vadd.f32 %v1039_v3, %v1038_v40  ;;  %v1562_v22 = vsel %vm5419_vm4, %v1403_v55, 0.0  ;;  %v3815_v45 = vld.sshfl [vmem:[#allocation1 + $0x28] sm:$0xff pattern:$0x75316420]  ;;  %v1561_v28 = vadd.f32 %v1560_v59, %v1559_v47  ;;  %vm5421_vm7 = vmmov %vm5137_vm2  ;;  %v5423_v52 = vld [vmem:[#allocation38_spill] sm:$0xff]  ;;  %v1566_v40 = vsel %vm5137_vm2, %v1405_v14, 0.0 }
 0x139   :  { %v3817_v9 = vld.sshfl [vmem:[#allocation1 + $0x30] sm:$0xff pattern:$0x75316420]  ;;  %v1317_v10 = vadd.f32 %v3750_v11, %v1315_v51  ;;  %v1049_v48 = vsel %vm5421_vm7, %v5420_v58, 0.0  ;;  %v5422_v27 = vld [vmem:[#allocation100_spill] sm:$0xff]  ;;  %vm5424_vm6 = vmmov %vm5137_vm2 }
 0x13a   :  { %v1042_v39 = vadd.f32 %v1041_v23, %v1040_v1  ;;  %v1340_v13 = vmul.f32 %v5422_v27, %v5422_v27  ;;  %v3824_v3 = vld.sshfl [vmem:[#allocation1 + $0x38] sm:$0xff pattern:$0x75316420]  ;;  %1421 = vst [vmem:[#allocation1 + $0x20] ss:$2 sm:$0xff] %v1338_v21  ;;  %v1051_v55 = vsel %vm5424_vm6, %v5423_v52, 0.0  ;;  %vm5426_vm8 = vmmov %vm5137_vm2  ;;  %v1563_v18 = vadd.f32 %v1562_v22, %v1561_v28 }
 0x13b   :  { %v5425_v12 = vld [vmem:[#allocation43_spill] sm:$0xff]  ;;  %1422 = vst [vmem:[#allocation1 + $0x30] ss:$2 sm:$0xff] %v1339_v63  ;;  %vm5427_vm15 = vmmov %vm5137_vm2  ;;  %v1319_v23 = vadd.f32 %v3760_v37, %v1317_v10  ;;  %v5429_v63 = vld [vmem:[#allocation108_spill] sm:$0xff] }
 0x13c   :  { %v1053_v2 = vsel %vm5426_vm8, %v5425_v12, 0.0  ;;  %v1564_v11 = vsel %vm5427_vm15, %v1404_v56, 0.0  ;;  %v1044_v32 = vadd.f32 %v1043_v34, %v1042_v39  ;;  %v5428_v50 = vld [vmem:[#allocation31_spill] sm:$0xff]  ;;  %v3837_v21 = vld.sshfl [vmem:[#allocation1 + $0x8] sm:$0xff pattern:$0x75316420]  ;;  %v1342_v51 = vmul.f32 %v5429_v63, %v5429_v63  ;;  %vm5430_vm5 = vmmov %vm5137_vm2 }
 0x13d   :  { %v1341_v38 = vmul.f32 %v5428_v50, %v5428_v50  ;;  %v3835_v33 = vld.sshfl [vmem:[#allocation1] sm:$0xff pattern:$0x75316420]  ;;  %v1565_v59 = vadd.f32 %v1564_v11, %v1563_v18  ;;  %v1321_v35 = vadd.f32 %v3763_v8, %v1319_v23  ;;  %v1568_v37 = vsel %vm5430_vm5, %v1406_v4, 0.0  ;;  %v5431_v28 = vld [vmem:[#allocation28_spill] sm:$0xff]  ;;  %vm5432_vm4 = vmmov %vm5137_vm2 }
 0x13e   :  { %v1046_v47 = vadd.f32 %v1045_v42, %v1044_v32  ;;  %1431 = vst [vmem:[#allocation1] ss:$2 sm:$0xff] %v1340_v13  ;;  %v3843_v56 = vld.sshfl [vmem:[#allocation1 + $0x10] sm:$0xff pattern:$0x75316420]  ;;  %v1343_v10 = vmul.f32 %v5431_v28, %v5431_v28  ;;  %v1570_v8 = vsel %vm5432_vm4, %v1411_v6, 0.0  ;;  %vm5434_vm7 = vmmov %vm5137_vm2 }
 0x13f   :  { %v3845_v34 = vld.sshfl [vmem:[#allocation1 + $0x18] sm:$0xff pattern:$0x75316420]  ;;  %v1567_v1 = vadd.f32 %v1566_v40, %v1565_v59  ;;  %v1323_v14 = vadd.f32 %v3766_v7, %v1321_v35  ;;  %v5433_v13 = vld [vmem:[#allocation36_spill] sm:$0xff]  ;;  %v1572_v7 = vsel %vm5434_vm7, %v1412_v53, 0.0  ;;  %vm5436_vm6 = vmmov %vm5137_vm2  ;;  %v1576_v63 = vsel %vm5137_vm2, %v3809_v62, 0.0 }
 0x140   :  { %v1048_v22 = vadd.f32 %v1047_v17, %v1046_v47  ;;  %1432 = vst [vmem:[#allocation1 + $0x10] ss:$2 sm:$0xff] %v1341_v38  ;;  %v1344_v52 = vmul.f32 %v5433_v13, %v5433_v13  ;;  %v5435_v11 = vld [vmem:[#allocation112_spill] sm:$0xff]  ;;  %vm5438_vm8 = vmmov %vm5137_vm2  ;;  %v5439_v59 = vld [vmem:[#allocation113_spill] sm:$0xff] }
 0x141   :  { %v3851_v42 = vld.sshfl [vmem:[#allocation1 + $0x20] sm:$0xff pattern:$0x75316420]  ;;  %v3853_v39 = vld.sshfl [vmem:[#allocation1 + $0x28] sm:$0xff pattern:$0x75316420]  ;;  %v1569_v58 = vadd.f32 %v1568_v37, %v1567_v1  ;;  %v1325_v4 = vadd.f32 %v3769_v24, %v1323_v14  ;;  %vm5440_vm15 = vmmov %vm5137_vm2 }
 0x142   :  { %v1050_v27 = vadd.f32 %v1049_v48, %v1048_v22  ;;  %1433 = vst [vmem:[#allocation1 + $0x20] ss:$2 sm:$0xff] %v1342_v51  ;;  %v3859_v17 = vld.sshfl [vmem:[#allocation1 + $0x30] sm:$0xff pattern:$0x75316420]  ;;  %v1055_v23 = vsel %vm5436_vm6, %v5435_v11, 0.0  ;;  %vm5443_vm5 = vmmov %vm5137_vm2 }
 0x143   :  { %v3861_v12 = vld.sshfl [vmem:[#allocation1 + $0x38] sm:$0xff pattern:$0x75316420]  ;;  %v1571_v18 = vadd.f32 %v1570_v8, %v1569_v58  ;;  %1326 = vadd.xlane.f32.xlu1 %v1325_v4  ;;  %v5437_v32 = vld [vmem:[#allocation40_spill] sm:$0xff]  ;;  %v1574_v48 = vsel %vm5438_vm8, %v1413_v31, 0.0  ;;  %v1057_v35 = vsel %vm5440_vm15, %v5439_v59, 0.0  ;;  %vm5444_vm4 = vmmov %vm5137_vm2 }
 0x144   :  { %v1052_v6 = vadd.f32 %v1051_v55, %v1050_v27  ;;  %v1345_v24 = vmul.f32 %v5437_v32, %v5437_v32  ;;  %1434 = vst [vmem:[#allocation1 + $0x30] ss:$2 sm:$0xff] %v1343_v10  ;;  %v5441_v47 = vld [vmem:[#allocation114_spill] sm:$0xff]  ;;  %v5442_v14 = vld [vmem:[#allocation115_spill] sm:$0xff]  ;;  %v5445_v62 = vld [vmem:[#allocation117_spill] sm:$0xff] }
 0x145   :  { %v3868_v50 = vld.sshfl [vmem:[#allocation1] sm:$0xff pattern:$0x75316420]  ;;  %v3870_v38 = vld.sshfl [vmem:[#allocation1 + $0x8] sm:$0xff pattern:$0x75316420]  ;;  %v1573_v53 = vadd.f32 %v1572_v7, %v1571_v18  ;;  %v1346_v55 = vmul.f32 %v5441_v47, %v5441_v47  ;;  %vm5446_vm7 = vmmov %vm5137_vm2 }
 0x146   :  { %v1054_v40 = vadd.f32 %v1053_v2, %v1052_v6  ;;  %1443 = vst [vmem:[#allocation1] ss:$2 sm:$0xff] %v1344_v52  ;;  %v1059_v22 = vsel %vm5443_vm5, %v5442_v14, 0.0  ;;  %v1578_v2 = vsel %vm5444_vm4, %v3812_v30, 0.0  ;;  %v1061_v4 = vsel %vm5446_vm7, %v5445_v62, 0.0  ;;  %v5447_v27 = vld [vmem:[#allocation116_spill] sm:$0xff]  ;;  %vm5448_vm6 = vmmov %vm5137_vm2 }
 0x147   :  { %v3878_v51 = vld.sshfl [vmem:[#allocation1 + $0x10] sm:$0xff pattern:$0x75316420]  ;;  %v3880_v37 = vld.sshfl [vmem:[#allocation1 + $0x18] sm:$0xff pattern:$0x75316420]  ;;  %v1575_v31 = vadd.f32 %v1574_v48, %v1573_v53  ;;  %v1347_v13 = vmul.f32 %v5447_v27, %v5447_v27  ;;  %vm5449_vm8 = vmmov %vm5137_vm2 }
 0x148   :  { %v1056_v1 = vadd.f32 %v1055_v23, %v1054_v40  ;;  %1444 = vst [vmem:[#allocation1 + $0x10] ss:$2 sm:$0xff] %v1345_v24  ;;  %v1580_v52 = vsel %vm5448_vm6, %v3815_v45, 0.0  ;;  %v1582_v11 = vsel %vm5449_vm8, %v3817_v9, 0.0  ;;  %v5450_v23 = vld [vmem:[#allocation118_spill] sm:$0xff]  ;;  %vm5451_vm15 = vmmov %vm5137_vm2  ;;  %v5452_v53 = vld [vmem:[#allocation120_spill] sm:$0xff] }
 0x149   :  { %v3886_v28 = vld.sshfl [vmem:[#allocation1 + $0x20] sm:$0xff pattern:$0x75316420]  ;;  %v3888_v10 = vld.sshfl [vmem:[#allocation1 + $0x28] sm:$0xff pattern:$0x75316420]  ;;  %v1577_v8 = vadd.f32 %v1576_v63, %v1575_v31  ;;  %vm5454_vm5 = vmmov %vm5137_vm2 }
 0x14a   :  { %v1058_v58 = vadd.f32 %v1057_v35, %v1056_v1  ;;  %1445 = vst [vmem:[#allocation1 + $0x20] ss:$2 sm:$0xff] %v1346_v55  ;;  %v1063_v32 = vsel %vm5451_vm15, %v5450_v23, 0.0  ;;  %v1065_v40 = vsel %vm5137_vm2, %v5452_v53, 0.0  ;;  %v5453_v59 = vld [vmem:[#allocation119_spill] sm:$0xff]  ;;  %v1584_v35 = vsel %vm5454_vm5, %v3824_v3, 0.0  ;;  %vm5455_vm4 = vmmov %vm5137_vm2 }
 0x14b   :  { %v3896_v7 = vld.sshfl [vmem:[#allocation1 + $0x30] sm:$0xff pattern:$0x75316420]  ;;  %v3898_v18 = vld.sshfl [vmem:[#allocation1 + $0x38] sm:$0xff pattern:$0x75316420]  ;;  %v1579_v30 = vadd.f32 %v1578_v2, %v1577_v8  ;;  %v1348_v45 = vmul.f32 %v5453_v59, %v5453_v59  ;;  %vm5457_vm7 = vmmov %vm5137_vm2 }
 0x14c   :  { %v1060_v6 = vadd.f32 %v1059_v22, %v1058_v58  ;;  %1446 = vst [vmem:[#allocation1 + $0x30] ss:$2 sm:$0xff] %v1347_v13  ;;  %v1586_v31 = vsel %vm5455_vm4, %v3835_v33, 0.0  ;;  %v5456_v1 = vld [vmem:[#allocation121_spill] sm:$0xff]  ;;  %v5458_v8 = vld [vmem:[#allocation123_spill] sm:$0xff]  ;;  %vm5459_vm6 = vmmov %vm5137_vm2 }
 0x14d   :  { %v1581_v24 = vadd.f32 %v1580_v52, %v1579_v30  ;;  %v3910_v47 = vld.sshfl [vmem:[#allocation1] sm:$0xff pattern:$0x75316420]  ;;  %v3912_v55 = vld.sshfl [vmem:[#allocation1 + $0x8] sm:$0xff pattern:$0x75316420]  ;;  %vm5461_vm8 = vmmov %vm5137_vm2 }
 0x14e   :  { %v1062_v48 = vadd.f32 %v1061_v4, %v1060_v6  ;;  %1455 = vst [vmem:[#allocation1] ss:$2 sm:$0xff] %v1348_v45  ;;  %v1067_v14 = vsel %vm5457_vm7, %v5456_v1, 0.0  ;;  %v1069_v58 = vsel %vm5459_vm6, %v5458_v8, 0.0  ;;  %v5460_v62 = vld [vmem:[#allocation122_spill] sm:$0xff]  ;;  %v1588_v4 = vsel %vm5461_vm8, %v3837_v21, 0.0  ;;  %vm5462_vm15 = vmmov %vm5137_vm2 }
 0x14f   :  { %v1583_v63 = vadd.f32 %v1582_v11, %v1581_v24  ;;  %v1349_v3 = vmul.f32 %v5460_v62, %v5460_v62  ;;  %v3924_v27 = vld.sshfl [vmem:[#allocation1 + $0x10] sm:$0xff pattern:$0x75316420]  ;;  %v3926_v13 = vld.sshfl [vmem:[#allocation1 + $0x18] sm:$0xff pattern:$0x75316420]  ;;  %vm5465_vm5 = vmmov %vm5137_vm2 }
 0x150   :  { %v1064_v9 = vadd.f32 %v1063_v32, %v1062_v48  ;;  %v1590_v30 = vsel %vm5462_vm15, %v3843_v56, 0.0  ;;  %v5463_v6 = vld [vmem:[#allocation124_spill] sm:$0xff]  ;;  %v5464_v24 = vld [vmem:[#allocation125_spill] sm:$0xff]  ;;  %v5466_v53 = vld [vmem:[#allocation126_spill] sm:$0xff] }
 0x151   :  { %v1585_v22 = vadd.f32 %v1584_v35, %v1583_v63  ;;  %1456 = vst [vmem:[#allocation1 + $0x10] ss:$2 sm:$0xff] %v1349_v3  ;;  %v1071_v11 = vsel %vm5137_vm2, %v5463_v6, 0.0  ;;  %v1073_v48 = vsel %vm5465_vm5, %v5464_v24, 0.0  ;;  %v1350_v21 = vmul.f32 %v5466_v53, %v5466_v53  ;;  %vm5467_vm4 = vmmov %vm5137_vm2  ;;  %v5473_v8 = vld [vmem:[#allocation51_spill] sm:$0xff]  ;;  %v5479_v24 = vld [vmem:[#allocation66_spill] sm:$0xff] }
 0x152   :  { %v1066_v2 = vadd.f32 %v1065_v40, %v1064_v9  ;;  %v1592_v40 = vsel %vm5467_vm4, %v3845_v34, 0.0  ;;  %v3938_v59 = vld.sshfl [vmem:[#allocation1 + $0x20] sm:$0xff pattern:$0x75316420]  ;;  %vm5468_vm7 = vmmov %vm5137_vm2  ;;  %v1351_v34 = vmul.f32 %v5473_v8, %v5473_v8 }
 0x153   :  { %v1587_v52 = vadd.f32 %v1586_v31, %v1585_v22  ;;  %v3940_v45 = vld.sshfl [vmem:[#allocation1 + $0x28] sm:$0xff pattern:$0x75316420]  ;;  %v1594_v63 = vsel %vm5468_vm7, %v3851_v42, 0.0  ;;  %v5469_v9 = vld [vmem:[#allocation127_spill] sm:$0xff]  ;;  %vm5470_vm6 = vmmov %vm5137_vm2 }
 0x154   :  { %v1068_v33 = vadd.f32 %v1067_v14, %v1066_v2  ;;  %1457 = vst [vmem:[#allocation1 + $0x20] ss:$2 sm:$0xff] %v1350_v21  ;;  %v1075_v31 = vsel %vm5470_vm6, %v5469_v9, 0.0  ;;  %v5471_v22 = vld [vmem:[#allocation128_spill] sm:$0xff]  ;;  %vm5472_vm8 = vmmov %vm5137_vm2 }
 0x155   :  { %v1589_v23 = vadd.f32 %v1588_v4, %v1587_v52  ;;  %v1077_v2 = vsel %vm5472_vm8, %v5471_v22, 0.0  ;;  %vm5474_vm15 = vmmov %vm5137_vm2  ;;  %v3952_v62 = vld.sshfl [vmem:[#allocation1 + $0x30] sm:$0xff pattern:$0x75316420]  ;;  %v1598_v52 = vsel %vm5137_vm2, %v3859_v17, 0.0  ;;  %v1604_v22 = vsel %vm5137_vm2, %v3870_v38, 0.0 }
 0x156   :  { %v1070_v32 = vadd.f32 %v1069_v58, %v1068_v33  ;;  %v1596_v58 = vsel %vm5474_vm15, %v3853_v39, 0.0  ;;  %v3954_v3 = vld.sshfl [vmem:[#allocation1 + $0x38] sm:$0xff pattern:$0x75316420]  ;;  %v5475_v33 = vld [vmem:[#allocation63_spill] sm:$0xff]  ;;  %vm5476_vm5 = vmmov %vm5137_vm2  ;;  %v1352_v39 = vmul.f32 %v5479_v24, %v5479_v24 }
 0x157   :  { %v1591_v35 = vadd.f32 %v1590_v30, %v1589_v23  ;;  %1458 = vst [vmem:[#allocation1 + $0x30] ss:$2 sm:$0xff] %v1351_v34  ;;  %v1079_v30 = vsel %vm5476_vm5, %v5475_v33, 0.0  ;;  %v5477_v23 = vld [vmem:[#allocation65_spill] sm:$0xff]  ;;  %vm5478_vm4 = vmmov %vm5137_vm2 }
 0x158   :  { %v1072_v56 = vadd.f32 %v1071_v11, %v1070_v32  ;;  %v1081_v32 = vsel %vm5478_vm4, %v5477_v23, 0.0  ;;  %vm5480_vm7 = vmmov %vm5137_vm2  ;;  %v3966_v53 = vld.sshfl [vmem:[#allocation1] sm:$0xff pattern:$0x75316420] }
 0x159   :  { %v1593_v1 = vadd.f32 %v1592_v40, %v1591_v35  ;;  %v3968_v21 = vld.sshfl [vmem:[#allocation1 + $0x8] sm:$0xff pattern:$0x75316420]  ;;  %vm5481_vm6 = vmmov %vm5137_vm2  ;;  %v3982_v8 = vld.sshfl [vmem:[#allocation1 + $0x18] sm:$0xff pattern:$0x75316420] }
 0x15a   :  { %v1074_v14 = vadd.f32 %v1073_v48, %v1072_v56  ;;  %v1600_v48 = vsel %vm5480_vm7, %v3861_v12, 0.0  ;;  %1467 = vst [vmem:[#allocation1] ss:$2 sm:$0xff] %v1352_v39  ;;  %v1602_v35 = vsel %vm5481_vm6, %v3868_v50, 0.0  ;;  %v5482_v56 = vld [vmem:[#allocation68_spill] sm:$0xff]  ;;  %vm5483_vm8 = vmmov %vm5137_vm2  ;;  %v1353_v12 = vmul.f32 %v3519_v60, %v3519_v60 }
 0x15b   :  { %v1595_v4 = vadd.f32 %v1594_v63, %v1593_v1  ;;  %v1083_v63 = vsel %vm5483_vm8, %v5482_v56, 0.0  ;;  %v5484_v1 = vld [vmem:[#allocation69_spill] sm:$0xff]  ;;  %vm5485_vm15 = vmmov %vm5137_vm2  ;;  %v3994_v23 = vld.sshfl [vmem:[#allocation1 + $0x20] sm:$0xff pattern:$0x75316420] }
 0x15c   :  { %v1076_v42 = vadd.f32 %v1075_v31, %v1074_v14  ;;  %v1085_v14 = vsel %vm5485_vm15, %v5484_v1, 0.0  ;;  %vm5486_vm5 = vmmov %vm5137_vm2  ;;  %v5496_v56 = vld [vmem:[#allocation46_spill] sm:$0xff] }
 0x15d   :  { %v1597_v6 = vadd.f32 %v1596_v58, %v1595_v4  ;;  %v1606_v58 = vsel %vm5486_vm5, %v3878_v51, 0.0  ;;  %v5487_v4 = vld [vmem:[#allocation129_spill] sm:$0xff]  ;;  %vm5488_vm4 = vmmov %vm5137_vm2 }
 0x15e   :  { %v1078_v11 = vadd.f32 %v1077_v2, %v1076_v42  ;;  %v3980_v2 = vld.sshfl [vmem:[#allocation1 + $0x10] sm:$0xff pattern:$0x75316420]  ;;  %v1087_v42 = vsel %vm5488_vm4, %v5487_v4, 0.0  ;;  %vm5490_vm7 = vmmov %vm5137_vm2 }
 0x15f   :  { %v1599_v40 = vadd.f32 %v1598_v52, %v1597_v6  ;;  %1468 = vst [vmem:[#allocation1 + $0x10] ss:$2 sm:$0xff] %v1353_v12  ;;  %v5491_v6 = vld [vmem:[#allocation70_spill] sm:$0xff]  ;;  %vm5492_vm6 = vmmov %vm5137_vm2  ;;  %v4008_v1 = vld.sshfl [vmem:[#allocation1 + $0x30] sm:$0xff pattern:$0x75316420] }
 0x160   :  { %v1080_v17 = vadd.f32 %v1079_v30, %v1078_v11  ;;  %v5489_v30 = vld [vmem:[#allocation131_spill] sm:$0xff]  ;;  %v1354_v38 = vmul.f32 %v5491_v6, %v5491_v6  ;;  %v1608_v11 = vsel %vm5492_vm6, %v3880_v37, 0.0  ;;  %vm5493_vm8 = vmmov %vm5137_vm2 }
 0x161   :  { %v1601_v9 = vadd.f32 %v1600_v48, %v1599_v40  ;;  %v1089_v60 = vsel %vm5490_vm7, %v5489_v30, 0.0  ;;  %v1610_v39 = vsel %vm5493_vm8, %v3886_v28, 0.0  ;;  %v5494_v48 = vld [vmem:[#allocation132_spill] sm:$0xff]  ;;  %vm5495_vm15 = vmmov %vm5137_vm2  ;;  %v4022_v30 = vld.sshfl [vmem:[#allocation1] sm:$0xff pattern:$0x75316420] }
 0x162   :  { %v1082_v31 = vadd.f32 %v1081_v32, %v1080_v17  ;;  %v3996_v32 = vld.sshfl [vmem:[#allocation1 + $0x28] sm:$0xff pattern:$0x75316420]  ;;  %v1091_v40 = vsel %vm5495_vm15, %v5494_v48, 0.0  ;;  %vm5498_vm5 = vmmov %vm5137_vm2 }
 0x163   :  { %v1603_v34 = vadd.f32 %v1602_v35, %v1601_v9  ;;  %1469 = vst [vmem:[#allocation1 + $0x20] ss:$2 sm:$0xff] %v1354_v38  ;;  %v5497_v9 = vld [vmem:[#allocation130_spill] sm:$0xff]  ;;  %vm5499_vm4 = vmmov %vm5137_vm2 }
 0x164   :  { %v1084_v50 = vadd.f32 %v1083_v63, %v1082_v31  ;;  %v1093_v63 = vsel %vm5137_vm2, %v5496_v56, 0.0  ;;  %v1355_v37 = vmul.f32 %v5497_v9, %v5497_v9  ;;  %v1612_v31 = vsel %vm5498_vm5, %v3888_v10, 0.0  ;;  %vm5501_vm7 = vmmov %vm5137_vm2 }
 0x165   :  { %v1605_v52 = vadd.f32 %v1604_v22, %v1603_v34  ;;  %v1614_v22 = vsel %vm5499_vm4, %v3896_v7, 0.0  ;;  %v5500_v34 = vld [vmem:[#allocation49_spill] sm:$0xff]  ;;  %vm5503_vm6 = vmmov %vm5137_vm2  ;;  %v1356_v10 = vmul.f32 %v3562_v15, %v3562_v15 }
 0x166   :  { %v1086_v33 = vadd.f32 %v1085_v14, %v1084_v50  ;;  %v4010_v14 = vld.sshfl [vmem:[#allocation1 + $0x38] sm:$0xff pattern:$0x75316420]  ;;  %v1095_v50 = vsel %vm5501_vm7, %v5500_v34, 0.0  ;;  %vm5504_vm8 = vmmov %vm5137_vm2 }
 0x167   :  { %v1607_v24 = vadd.f32 %v1606_v58, %v1605_v52  ;;  %1470 = vst [vmem:[#allocation1 + $0x30] ss:$2 sm:$0xff] %v1355_v37  ;;  %vm5505_vm15 = vmmov %vm5137_vm2  ;;  %v1359_v37 = vmul.f32 %v3638_v20, %v3638_v20 }
 0x168   :  { %v1088_v51 = vadd.f32 %v1087_v42, %v1086_v33  ;;  %v5502_v42 = vld [vmem:[#allocation133_spill] sm:$0xff]  ;;  %v1616_v33 = vsel %vm5504_vm8, %v3898_v18, 0.0  ;;  %v1618_v38 = vsel %vm5505_vm15, %v3910_v47, 0.0  ;;  %vm5507_vm5 = vmmov %vm5137_vm2  ;;  %v1357_v18 = vmul.f32 %v3565_v41, %v3565_v41 }
 0x169   :  { %v1609_v17 = vadd.f32 %v1608_v11, %v1607_v24  ;;  %v1097_v52 = vsel %vm5503_vm6, %v5502_v42, 0.0  ;;  %v5506_v11 = vld [vmem:[#allocation50_spill] sm:$0xff]  ;;  %v1101_v15 = vsel %vm5507_vm5, %v3629_v29, 0.0  ;;  %vm5508_vm4 = vmmov %vm5137_vm2 }
 0x16a   :  { %v1090_v35 = vadd.f32 %v1089_v60, %v1088_v51  ;;  %v4024_v60 = vld.sshfl [vmem:[#allocation1 + $0x8] sm:$0xff pattern:$0x75316420]  ;;  %v1099_v24 = vsel %vm5137_vm2, %v5506_v11, 0.0  ;;  %v1620_v48 = vsel %vm5508_vm4, %v3912_v55, 0.0  ;;  %vm5509_vm7 = vmmov %vm5137_vm2  ;;  %v1358_v55 = vmul.f32 %v3568_v36, %v3568_v36 }
 0x16b   :  { %v1611_v12 = vadd.f32 %v1610_v39, %v1609_v17  ;;  %1479 = vst [vmem:[#allocation1] ss:$2 sm:$0xff] %v1356_v10  ;;  %v4038_v17 = vld.sshfl [vmem:[#allocation1 + $0x18] sm:$0xff pattern:$0x75316420]  ;;  %v1622_v56 = vsel %vm5509_vm7, %v3924_v27, 0.0  ;;  %vm5510_vm6 = vmmov %vm5137_vm2 }
 0x16c   :  { %v1092_v28 = vadd.f32 %v1091_v40, %v1090_v35  ;;  %v4036_v40 = vld.sshfl [vmem:[#allocation1 + $0x10] sm:$0xff pattern:$0x75316420]  ;;  %vm5511_vm8 = vmmov %vm5137_vm2  ;;  %v4054_v27 = vld.sshfl [vmem:[#allocation1 + $0x28] sm:$0xff pattern:$0x75316420] }
 0x16d   :  { %v1613_v58 = vadd.f32 %v1612_v31, %v1611_v12  ;;  %1480 = vst [vmem:[#allocation1 + $0x10] ss:$2 sm:$0xff] %v1357_v18  ;;  %v1105_v29 = vsel %vm5511_vm8, %v3640_v16, 0.0  ;;  %v4050_v31 = vld.sshfl [vmem:[#allocation1 + $0x20] sm:$0xff pattern:$0x75316420]  ;;  %vm5512_vm15 = vmmov %vm5137_vm2 }
 0x16e   :  { %v1094_v4 = vadd.f32 %v1093_v63, %v1092_v28  ;;  %v1103_v63 = vsel %vm5510_vm6, %v3633_v25, 0.0  ;;  %v1624_v12 = vsel %vm5512_vm15, %v3926_v13, 0.0  ;;  %v4056_v28 = vld.sshfl [vmem:[#allocation1 + $0x30] sm:$0xff pattern:$0x75316420]  ;;  %v1626_v36 = vsel %vm5137_vm2, %v3938_v59, 0.0  ;;  %vm5513_vm5 = vmmov %vm5137_vm2 }
 0x16f   :  { %v1615_v6 = vadd.f32 %v1614_v22, %v1613_v58  ;;  %v4058_v16 = vld.sshfl [vmem:[#allocation1 + $0x38] sm:$0xff pattern:$0x75316420]  ;;  %1481 = vst [vmem:[#allocation1 + $0x20] ss:$2 sm:$0xff] %v1358_v55  ;;  %v1107_v20 = vsel %vm5513_vm5, %v3642_v19, 0.0  ;;  %vm5514_vm4 = vmmov %vm5137_vm2 }
 0x170   :  { %v1096_v7 = vadd.f32 %v1095_v50, %v1094_v4  ;;  %1482 = vst [vmem:[#allocation1 + $0x30] ss:$2 sm:$0xff] %v1359_v37  ;;  %v1628_v13 = vsel %vm5514_vm4, %v3940_v45, 0.0  ;;  %v5515_v58 = vld [vmem:[#allocation33_spill] sm:$0xff]  ;;  %vm5516_vm7 = vmmov %vm5137_vm2  ;;  %v1127_v37 = vsel %vm5137_vm2, %v3722_v46, 0.0 }
 0x171   :  { %v1617_v51 = vadd.f32 %v1616_v33, %v1615_v6  ;;  %v1109_v4 = vsel %vm5516_vm7, %v5515_v58, 0.0  ;;  %vm5517_vm6 = vmmov %vm5137_vm2  ;;  %v5518_v33 = vld [vmem:[#allocation134_spill] sm:$0xff] }
 0x172   :  { %v1098_v39 = vadd.f32 %v1097_v52, %v1096_v7  ;;  %v1630_v10 = vsel %vm5517_vm6, %v3952_v62, 0.0  ;;  %vm5519_vm8 = vmmov %vm5137_vm2 }
 0x173   :  { %v1619_v35 = vadd.f32 %v1618_v38, %v1617_v51  ;;  %v1111_v59 = vsel %vm5519_vm8, %v5518_v33, 0.0  ;;  %vm5520_vm15 = vmmov %vm5137_vm2  ;;  %v1113_v38 = vsel %vm5137_vm2, %v3665_v44, 0.0  ;;  %v1484_v33 = vld.sshfl [vmem:[#allocation1 + $0x8] sm:$0xff pattern:$0x75316420] }
 0x174   :  { %v1100_v47 = vadd.f32 %v1099_v24, %v1098_v39  ;;  %v1632_v19 = vsel %vm5520_vm15, %v3954_v3, 0.0  ;;  %vm5521_vm5 = vmmov %vm5137_vm2 }
 0x175   :  { %v1621_v41 = vadd.f32 %v1620_v48, %v1619_v35  ;;  %v1634_v24 = vsel %vm5521_vm5, %v3966_v53, 0.0  ;;  %vm5522_vm4 = vmmov %vm5137_vm2 }
 0x176   :  { %v1102_v9 = vadd.f32 %v1101_v15, %v1100_v47  ;;  %v1115_v51 = vsel %vm5522_vm4, %v3669_v43, 0.0  ;;  %vm5523_vm7 = vmmov %vm5137_vm2  ;;  %v1640_v43 = vsel %vm5137_vm2, %v3982_v8, 0.0 }
 0x177   :  { %v1623_v25 = vadd.f32 %v1622_v56, %v1621_v41  ;;  %v1636_v15 = vsel %vm5523_vm7, %v3968_v21, 0.0  ;;  %vm5524_vm6 = vmmov %vm5137_vm2 }
 0x178   :  { %v1104_v22 = vadd.f32 %v1103_v63, %v1102_v9  ;;  %v1117_v18 = vsel %vm5524_vm6, %v3696_v0, 0.0  ;;  %vm5525_vm8 = vmmov %vm5137_vm2 }
 0x179   :  { %v1625_v34 = vadd.f32 %v1624_v12, %v1623_v25  ;;  %v1638_v44 = vsel %vm5525_vm8, %v3980_v2, 0.0  ;;  %vm5526_vm15 = vmmov %vm5137_vm2 }
 0x17a   :  { %v1106_v50 = vadd.f32 %v1105_v29, %v1104_v22  ;;  %v1119_v35 = vsel %vm5526_vm15, %v3698_v57, 0.0  ;;  %vm5527_vm5 = vmmov %vm5137_vm2 }
 0x17b   :  { %v1627_v42 = vadd.f32 %v1626_v36, %v1625_v34  ;;  %v1121_v56 = vsel %vm5527_vm5, %v3705_v54, 0.0  ;;  %vm5528_vm4 = vmmov %vm5137_vm2 }
 0x17c   :  { %v1108_v52 = vadd.f32 %v1107_v20, %v1106_v50  ;;  %v1642_v0 = vsel %vm5528_vm4, %v3994_v23, 0.0  ;;  %vm5529_vm7 = vmmov %vm5137_vm2 }
 0x17d   :  { %v1629_v6 = vadd.f32 %v1628_v13, %v1627_v42  ;;  %v1123_v29 = vsel %vm5529_vm7, %v3717_v26, 0.0  ;;  %vm5530_vm6 = vmmov %vm5137_vm2 }
 0x17e   :  { %v1110_v7 = vadd.f32 %v1109_v4, %v1108_v52  ;;  %v1644_v57 = vsel %vm5530_vm6, %v3996_v32, 0.0  ;;  %vm5531_vm8 = vmmov %vm5137_vm2  ;;  %v1483_v52 = vld.sshfl [vmem:[#allocation1] sm:$0xff pattern:$0x75316420] }
 0x17f   :  { %v1631_v45 = vadd.f32 %v1630_v10, %v1629_v6  ;;  %v1125_v9 = vsel %vm5531_vm8, %v3719_v61, 0.0  ;;  %vm5532_vm15 = vmmov %vm5137_vm2  ;;  %v1485_v6 = vld.sshfl [vmem:[#allocation1 + $0x10] sm:$0xff pattern:$0x75316420] }
 0x180   :  { %v1112_v11 = vadd.f32 %v1111_v59, %v1110_v7  ;;  %v1646_v54 = vsel %vm5532_vm15, %v4008_v1, 0.0  ;;  %vm5533_vm5 = vmmov %vm5137_vm2 }
 0x181   :  { %v1633_v62 = vadd.f32 %v1632_v19, %v1631_v45  ;;  %v1648_v26 = vsel %vm5533_vm5, %v4010_v14, 0.0  ;;  %vm5534_vm4 = vmmov %vm5137_vm2 }
 0x182   :  { %v1114_v39 = vadd.f32 %v1113_v38, %v1112_v11  ;;  %v1129_v25 = vsel %vm5534_vm4, %v3734_v5, 0.0  ;;  %vm5535_vm7 = vmmov %vm5137_vm2  ;;  %v1656_v5 = vsel %vm5137_vm2, %v4038_v17, 0.0  ;;  %v1486_v38 = vld.sshfl [vmem:[#allocation1 + $0x18] sm:$0xff pattern:$0x75316420] }
 0x183   :  { %v1635_v3 = vadd.f32 %v1634_v24, %v1633_v62  ;;  %v1650_v61 = vsel %vm5535_vm7, %v4022_v30, 0.0  ;;  %vm5536_vm6 = vmmov %vm5137_vm2  ;;  %v1487_v11 = vld.sshfl [vmem:[#allocation1 + $0x20] sm:$0xff pattern:$0x75316420] }
 0x184   :  { %v1116_v48 = vadd.f32 %v1115_v51, %v1114_v39  ;;  %v1131_v36 = vsel %vm5536_vm6, %v3736_v49, 0.0  ;;  %vm5537_vm8 = vmmov %vm5137_vm2  ;;  %v2152_v49 = vmov 0   ;;  %v1488_v51 = vld.sshfl [vmem:[#allocation1 + $0x28] sm:$0xff pattern:$0x75316420] }
 0x185   :  { %v1637_v53 = vadd.f32 %v1636_v15, %v1635_v3  ;;  %v1652_v46 = vsel %vm5537_vm8, %v4024_v60, 0.0  ;;  %vm5538_vm15 = vmmov %vm5137_vm2  ;;  %2091 = vset.pattern.permute.xlu0 %v2152_v49  ;;  %2090 = vset.pattern.permute.xlu2 %v2152_v49  ;;  %v1489_v39 = vld.sshfl [vmem:[#allocation1 + $0x30] sm:$0xff pattern:$0x75316420] }
 0x186   :  { %v1118_v47 = vadd.f32 %v1117_v18, %v1116_v48  ;;  %v1654_v14 = vsel %vm5538_vm15, %v4036_v40, 0.0  ;;  %vm5539_vm5 = vmmov %vm5137_vm2  ;;  %2092 = vset.pattern.permute.xlu1 %v2152_v49  ;;  %v1490_v3 = vld.sshfl [vmem:[#allocation1 + $0x38] sm:$0xff pattern:$0x75316420] }
 0x187   :  { %v1639_v21 = vadd.f32 %v1638_v44, %v1637_v53  ;;  %v1658_v30 = vsel %vm5539_vm5, %v4050_v31, 0.0  ;;  %vm5540_vm4 = vmmov %vm5137_vm2 }
 0x188   :  { %v1120_v63 = vadd.f32 %v1119_v35, %v1118_v47  ;;  %v1660_v60 = vsel %vm5540_vm4, %v4054_v27, 0.0  ;;  %vm5541_vm7 = vmmov %vm5137_vm2  ;;  %v1670_v27 = vsel %vm5137_vm2, %v1485_v6, 0.0  ;;  %v5550_v6 = vld [vmem:[#allocation52_spill] sm:$0xff] }
 0x189   :  { %v1641_v2 = vadd.f32 %v1640_v43, %v1639_v21  ;;  %v1662_v40 = vsel %vm5541_vm7, %v4056_v28, 0.0  ;;  %vm5542_vm6 = vmmov %vm5137_vm2 }
 0x18a   :  { %v1122_v41 = vadd.f32 %v1121_v56, %v1120_v63  ;;  %v1664_v17 = vsel %vm5542_vm6, %v4058_v16, 0.0  ;;  %vm5543_vm8 = vmmov %vm5137_vm2 }
 0x18b   :  { %v1643_v8 = vadd.f32 %v1642_v0, %v1641_v2  ;;  %v1666_v31 = vsel %vm5543_vm8, %v1483_v52, 0.0  ;;  %vm5544_vm15 = vmmov %vm5137_vm2 }
 0x18c   :  { %v1124_v55 = vadd.f32 %v1123_v29, %v1122_v41  ;;  %v1668_v19 = vsel %vm5544_vm15, %v1484_v33, 0.0  ;;  %vm5545_vm5 = vmmov %vm5137_vm2 }
 0x18d   :  { %v1645_v23 = vadd.f32 %v1644_v57, %v1643_v8  ;;  %v1672_v28 = vsel %vm5545_vm5, %v1486_v38, 0.0  ;;  %vm5546_vm4 = vmmov %vm5137_vm2 }
 0x18e   :  { %v1126_v12 = vadd.f32 %v1125_v9, %v1124_v55  ;;  %v1674_v16 = vsel %vm5546_vm4, %v1487_v11, 0.0  ;;  %vm5547_vm7 = vmmov %vm5137_vm2  ;;  %v5556_v11 = vld [vmem:[#allocation56_spill] sm:$0xff] }
 0x18f   :  { %v1647_v32 = vadd.f32 %v1646_v54, %v1645_v23  ;;  %v1676_v18 = vsel %vm5547_vm7, %v1488_v51, 0.0  ;;  %vm5548_vm6 = vmmov %vm5137_vm2  ;;  %v1694_v23 = vld [vmem:[%s4612_s1] sm:$0xf] }
 0x190   :  { %v1128_v22 = vadd.f32 %v1127_v37, %v1126_v12  ;;  %v1678_v44 = vsel %vm5548_vm6, %v1489_v39, 0.0  ;;  %vm5549_vm8 = vmmov %vm5137_vm2  ;;  %v5562_v39 = vld [vmem:[#allocation60_spill] sm:$0xff] }
 0x191   :  { %v1649_v1 = vadd.f32 %v1648_v26, %v1647_v32  ;;  %v1680_v53 = vsel %vm5549_vm8, %v1490_v3, 0.0  ;;  %v1720_v32 = vld [vmem:[%s4614_s3] sm:$0xf]  ;;  %vm5551_vm8 = vnez %v5550_v6 }
 0x192   :  { %v1130_v20 = vadd.f32 %v1129_v25, %v1128_v22 }
 0x193   :  { %v1651_v34 = vadd.f32 %v1650_v61, %v1649_v1 }
 0x194   :  { %v1132_v50 = vadd.f32 %v1131_v36, %v1130_v20 }
 0x195   :  { %v1653_v13 = vadd.f32 %v1652_v46, %v1651_v34 }
 0x196   :  { %1133 = vadd.xlane.f32.xlu0 %v1132_v50 }
 0x197   :  { %v1655_v58 = vadd.f32 %v1654_v14, %v1653_v13 }
 0x199   :  { %v1657_v4 = vadd.f32 %v1656_v5, %v1655_v58 }
 0x19b   :  { %v1659_v42 = vadd.f32 %v1658_v30, %v1657_v4 }
 0x19d   :  { %v1661_v10 = vadd.f32 %v1660_v60, %v1659_v42  ;;  %v1707_v60 = vld [vmem:[%s4613_s2] sm:$0xf]  ;;  %s2153_s2 = smov [#allocation5]  }
 0x19e   :  { %v810_v43 = vpop.xlane.xlu0 %809 }
 0x19f   :  { %v1663_v59 = vadd.f32 %v1662_v40, %v1661_v10  ;;  %v1684_v21 = vmul.f32 0.00024414063, %v810_v43  ;;  %v1723_v10 = vld [vmem:[%s4615_s4] sm:$0xf]  ;;  %s2070_s4 = sshll.u32 %s2153_s2, 4  ;;  %s2071_s4 = int_to_ptr.vmem [resolvable:$true] %s2070_s4 }
 0x1a1   :  { %v1665_v7 = vadd.f32 %v1664_v17, %v1663_v59  ;;  %v1687_v63 = vmul.f32 %v1684_v21, %v1684_v21 }
 0x1a3   :  { %v1667_v45 = vadd.f32 %v1666_v31, %v1665_v7 }
 0x1a5   :  { %v1669_v24 = vadd.f32 %v1668_v19, %v1667_v45  ;;  %v5552_v19 = vld [vmem:[#allocation53_spill] sm:$0xff]  ;;  %v5554_v45 = vld [vmem:[#allocation55_spill] sm:$0xff] }
 0x1a7   :  { %v1671_v62 = vadd.f32 %v1670_v27, %v1669_v24 }
 0x1a9   :  { %v1673_v15 = vadd.f32 %v1672_v28, %v1671_v62  ;;  %v5558_v28 = vld [vmem:[#allocation57_spill] sm:$0xff]  ;;  %v5560_v62 = vld [vmem:[#allocation58_spill] sm:$0xff] }
 0x1ab   :  { %v1675_v48 = vadd.f32 %v1674_v16, %v1673_v15 }
 0x1ad   :  { %v1677_v35 = vadd.f32 %v1676_v18, %v1675_v48  ;;  %v5564_v18 = vld [vmem:[#allocation61_spill] sm:$0xff]  ;;  %v5566_v48 = vld [vmem:[#allocation62_spill] sm:$0xff] }
 0x1af   :  { %v1679_v47 = vadd.f32 %v1678_v44, %v1677_v35  ;;  %v5568_v35 = vld [vmem:[#allocation72_spill] sm:$0xff] }
 0x1b1   :  { %v1681_v56 = vadd.f32 %v1680_v53, %v1679_v47  ;;  %v5570_v47 = vld [vmem:[#allocation74_spill] sm:$0xff] }
 0x1b3   :  { %1682 = vadd.xlane.f32.xlu1 %v1681_v56  ;;  %v5572_v56 = vld [vmem:[#allocation75_spill] sm:$0xff] }
 0x1b6   :  { %v1327_v0 = vpop.xlane.xlu1 %1326 }
 0x1b7   :  { %v1686_v29 = vmul.f32 0.00024414063, %v1327_v0 }
 0x1b9   :  { %v1688_v2 = vsub.f32 %v1686_v29, %v1687_v63  ;;  %v5574_v63 = vld [vmem:[#allocation76_spill] sm:$0xff]  ;;  %v5576_v29 = vld [vmem:[#allocation77_spill] sm:$0xff] }
 0x1bb   :  { %v1689_v41 = vmax.f32 %v1688_v2, 0.0 }
 0x1bd   :  { %v1695_v57 = vadd.f32 1e-05, %v1689_v41 }
 0x1bf   :  { %2093 = vrsqrt.f32 %v1695_v57  ;;  %vm1702_vm15 = vweird.f32 %v1695_v57 }
 0x1c5   :  { %v2094_v9 = vpop.eup %2093 }
 0x1c6   :  { %v1697_v8 = vmul.f32 %v2094_v9, %v1695_v57  ;;  %vm1703_vm2 = vweird.f32 %v2094_v9 }
 0x1c7   :  { %vm1704_vm5 = vmor %vm1702_vm15, %vm1703_vm2  ;;  %vm5553_vm15 = vnez %v5552_v19  ;;  %vm5555_vm2 = vnez %v5554_v45 }
 0x1c8   :  { %v1698_v55 = vmul.f32 %v2094_v9, %v1697_v8 }
 0x1ca   :  { %v1699_v54 = vmul.f32 0.5, %v1698_v55 }
 0x1cc   :  { %v1700_v37 = vsub.f32 1.5, %v1699_v54 }
 0x1ce   :  { %v1701_v12 = vmul.f32 %v2094_v9, %v1700_v37 }
 0x1d0   :  { %v1705_v26 = vsel %vm1704_vm5, %v2094_v9, %v1701_v12  ;;  %vm5557_vm5 = vnez %v5556_v11  ;;  %v5582_v12 = vld [vmem:[#allocation82_spill] sm:$0xff] }
 0x1d1   :  { %v1706_v25 = vmul.f32 %v1705_v26, %v1694_v23 }
 0x1d3   :  { %v1721_v22 = vmul.f32 %v1706_v25, %v1684_v21  ;;  %1728 = vperm.xlu2 %2090, %v1706_v25  }
 0x1d5   :  { %v1722_v61 = vsub.f32 %v1720_v32, %v1721_v22 }
 0x1d7   :  { %1770 = vperm.xlu0 %2091, %v1722_v61  }
 0x209   :  { %v1134_v36 = vpop.xlane.xlu0 %1133 }
 0x20a   :  { %v1685_v1 = vmul.f32 0.00024414063, %v1134_v36  ;;  %v5586_v36 = vld [vmem:[#allocation85_spill] sm:$0xff] }
 0x20c   :  { %v1691_v20 = vmul.f32 %v1685_v1, %v1685_v1 }
 0x226   :  { %v1683_v46 = vpop.xlane.xlu1 %1682 }
 0x227   :  { %v1690_v34 = vmul.f32 0.00024414063, %v1683_v46 }
 0x229   :  { %v1692_v50 = vsub.f32 %v1690_v34, %v1691_v20  ;;  %v5588_v20 = vld [vmem:[#allocation86_spill] sm:$0xff] }
 0x22b   :  { %v1693_v14 = vmax.f32 %v1692_v50, 0.0 }
 0x22d   :  { %v1708_v13 = vadd.f32 1e-05, %v1693_v14  ;;  %v4146_v59 = vpop.permute.xlu2 %1728 }
 0x22f   :  { %2095 = vrsqrt.f32 %v1708_v13  ;;  %vm1715_vm7 = vweird.f32 %v1708_v13 }
 0x235   :  { %v2096_v5 = vpop.eup %2095 }
 0x236   :  { %v1710_v58 = vmul.f32 %v2096_v5, %v1708_v13  ;;  %vm1716_vm4 = vweird.f32 %v2096_v5 }
 0x237   :  { %vm1717_vm6 = vmor %vm1715_vm7, %vm1716_vm4  ;;  %vm5559_vm4 = vnez %v5558_v28  ;;  %vm5561_vm7 = vnez %v5560_v62 }
 0x238   :  { %v1711_v30 = vmul.f32 %v2096_v5, %v1710_v58 }
 0x23a   :  { %v1712_v49 = vmul.f32 0.5, %v1711_v30  ;;  %v5593_v30 = vld [vmem:[#allocation99_spill] sm:$0xff] }
 0x23c   :  { %v1713_v4 = vsub.f32 1.5, %v1712_v49 }
 0x23e   :  { %v1714_v42 = vmul.f32 %v2096_v5, %v1713_v4  ;;  %v5595_v4 = vld [vmem:[#allocation101_spill] sm:$0xff] }
 0x240   :  { %v1718_v40 = vsel %vm1717_vm6, %v2096_v5, %v1714_v42  ;;  %vm5563_vm6 = vnez %v5562_v39  ;;  %v5597_v42 = vld [vmem:[#allocation102_spill] sm:$0xff] }
 0x241   :  { %v1719_v52 = vmul.f32 %v1718_v40, %v1707_v60 }
 0x243   :  { %1733 = vperm.xlu2 %2090, %v1719_v52   ;;  %v1724_v17 = vmul.f32 %v1719_v52, %v1685_v1  ;;  %v5599_v52 = vld [vmem:[#allocation103_spill] sm:$0xff] }
 0x245   :  { %v1725_v33 = vsub.f32 %v1723_v10, %v1724_v17  ;;  %v5601_v17 = vld [vmem:[#allocation104_spill] sm:$0xff] }
 0x247   :  { %1775 = vperm.xlu1 %2092, %v1725_v33  }
 0x29d   :  { %v4148_v31 = vpop.permute.xlu2 %1733 }
 0x29e   :  { %v1736_v7 = vsel %vm5551_vm8, %v4146_v59, %v4148_v31  ;;  %v1737_v38 = vsel %vm5553_vm15, %v4146_v59, %v4148_v31  ;;  %v1738_v27 = vsel %vm5555_vm2, %v4146_v59, %v4148_v31  ;;  %v1739_v24 = vsel %vm5557_vm5, %v4146_v59, %v4148_v31 }
 0x29f   :  { %v1740_v51 = vsel %vm5559_vm4, %v4146_v59, %v4148_v31  ;;  %v1741_v16 = vsel %vm5561_vm7, %v4146_v59, %v4148_v31  ;;  %v1742_v15 = vsel %vm5563_vm6, %v4146_v59, %v4148_v31  ;;  %vm5565_vm2 = vnez %v5564_v18 }
 0x2a0   :  { %v1743_v3 = vsel %vm5565_vm2, %v4146_v59, %v4148_v31  ;;  %vm5567_vm8 = vnez %v5566_v48  ;;  %vm5569_vm4 = vnez %v5568_v35  ;;  %vm5571_vm7 = vnez %v5570_v47  ;;  %v5639_v35 = vld [vmem:[#allocation77_spill] sm:$0xff] }
 0x2a1   :  { %v1744_v44 = vsel %vm5567_vm8, %v4146_v59, %v4148_v31  ;;  %v1745_v53 = vsel %vm5569_vm4, %v4146_v59, %v4148_v31  ;;  %v1746_v43 = vsel %vm5571_vm7, %v4146_v59, %v4148_v31  ;;  %vm5573_vm6 = vnez %v5572_v56 }
 0x2a2   :  { %v1747_v21 = vsel %vm5573_vm6, %v4146_v59, %v4148_v31  ;;  %vm5575_vm2 = vnez %v5574_v63  ;;  %vm5577_vm8 = vnez %v5576_v29  ;;  %v1750_v57 = vsel %vm5128_vm12, %v4146_v59, %v4148_v31 }
 0x2a3   :  { %v1748_v0 = vsel %vm5575_vm2, %v4146_v59, %v4148_v31  ;;  %v1749_v2 = vsel %vm5577_vm8, %v4146_v59, %v4148_v31  ;;  %v1751_v8 = vsel %vm5131_vm3, %v4146_v59, %v4148_v31  ;;  %v1752_v54 = vsel %vm5134_vm11, %v4146_v59, %v4148_v31 }
 0x2a4   :  { %v1753_v23 = vsel %vm2574_vm14, %v4146_v59, %v4148_v31  ;;  %vm5583_vm8 = vnez %v5582_v12  ;;  %v1755_v32 = vsel %vm5029_vm9, %v4146_v59, %v4148_v31  ;;  %v1756_v61 = vsel %vm5140_vm1, %v4146_v59, %v4148_v31 }
 0x2a5   :  { %v1754_v26 = vsel %vm5583_vm8, %v4146_v59, %v4148_v31  ;;  %vm5587_vm11 = vnez %v5586_v36  ;;  %vm5589_vm14 = vnez %v5588_v20  ;;  %v1759_v50 = vsel %vm5151_vm13, %v4146_v59, %v4148_v31 }
 0x2a6   :  { %v1757_v1 = vsel %vm5587_vm11, %v4146_v59, %v4148_v31  ;;  %v1758_v46 = vsel %vm5589_vm14, %v4146_v59, %v4148_v31  ;;  %v1760_v13 = vsel %vm2628_vm0, %v4146_v59, %v4148_v31  ;;  %v1761_v58 = vsel %vm5159_vm10, %v4146_v59, %v4148_v31 }
 0x2a7   :  { %vm5594_vm1 = vnez %v5593_v30  ;;  %vm5596_vm14 = vnez %v5595_v4  ;;  %vm5598_vm13 = vnez %v5597_v42  ;;  %vm5600_vm0 = vnez %v5599_v52  ;;  %v5603_v30 = vld [vmem:[#allocation105_spill] sm:$0xff] }
 0x2a8   :  { %v1762_v49 = vsel %vm5594_vm1, %v4146_v59, %v4148_v31  ;;  %v1763_v60 = vsel %vm5596_vm14, %v4146_v59, %v4148_v31  ;;  %v1764_v40 = vsel %vm5598_vm13, %v4146_v59, %v4148_v31  ;;  %v1765_v10 = vsel %vm5600_vm0, %v4146_v59, %v4148_v31 }
 0x2a9   :  { %vm5602_vm10 = vnez %v5601_v17  ;;  %vm5604_vm1 = vnez %v5603_v30  ;;  %v1842_v20 = vrot.slane %v1737_v38, 4  ;;  %v1843_v22 = vrot.slane %v1739_v24, 4 }
 0x2aa   :  { %v1766_v33 = vsel %vm5602_vm10, %v4146_v59, %v4148_v31  ;;  %v1767_v14 = vsel %vm5604_vm1, %v4146_v59, %v4148_v31  ;;  %v1844_v4 = vrot.slane %v1741_v16, 4  ;;  %v1845_v42 = vrot.slane %v1743_v3, 4 }
 0x2ab   :  { %v1846_v5 = vrot.slane %v1745_v53, 4  ;;  %v1847_v34 = vrot.slane %v1747_v21, 4  ;;  %v1848_v36 = vrot.slane %v1749_v2, 4  ;;  %v1849_v25 = vrot.slane %v1751_v8, 4 }
 0x2ac   :  { %v1850_v52 = vrot.slane %v1753_v23, 4  ;;  %v1851_v12 = vrot.slane %v1755_v32, 4  ;;  %v1852_v37 = vrot.slane %v1757_v1, 4  ;;  %v1853_v55 = vrot.slane %v1759_v50, 4  ;;  %v5623_v23 = vld [vmem:[#allocation11_spill] sm:$0xff]  ;;  %v5625_v32 = vld [vmem:[#allocation13_spill] sm:$0xff] }
 0x2ad   :  { %v1854_v9 = vrot.slane %v1761_v58, 4  ;;  %v1855_v17 = vrot.slane %v1763_v60, 4  ;;  %v1856_v41 = vrot.slane %v1765_v10, 4  ;;  %v1857_v29 = vrot.slane %v1767_v14, 4  ;;  %v5634_v58 = vld [vmem:[#allocation18_spill] sm:$0xff] }
 0x2ae   :  { %vm5605_vm10 = vcmask 1043456  }
 0x2af   :  { %v4279_v63 = vsel %vm5605_vm10, %v1736_v7, %v1842_v20  ;;  %vm5606_vm13 = vmmov %vm5605_vm10  ;;  %v5628_v20 = vld [vmem:[#allocation16_spill] sm:$0xff] }
 0x2b0   :  { %v4282_v59 = vsel %vm5606_vm13, %v1738_v27, %v1843_v22  ;;  %vm5607_vm1 = vmmov %vm5605_vm10  ;;  %v5626_v22 = vld [vmem:[#allocation14_spill] sm:$0xff] }
 0x2b1   :  { %v4285_v31 = vsel %vm5607_vm1, %v1740_v51, %v1844_v4  ;;  %vm5608_vm0 = vmmov %vm5607_vm1 }
 0x2b2   :  { %v4288_v38 = vsel %vm5608_vm0, %v1742_v15, %v1845_v42  ;;  %vm5609_vm14 = vmmov %vm5608_vm0  ;;  %v4309_v15 = vsel %vm5608_vm0, %v1756_v61, %v1852_v37  ;;  %v5622_v37 = vld [vmem:[#allocation10_spill] sm:$0xff] }
 0x2b3   :  { %v4291_v24 = vsel %vm5609_vm14, %v1744_v44, %v1846_v5  ;;  %vm5610_vm11 = vmmov %vm5608_vm0 }
 0x2b4   :  { %v4294_v16 = vsel %vm5610_vm11, %v1746_v43, %v1847_v34  ;;  %vm5611_vm9 = vmmov %vm5608_vm0 }
 0x2b5   :  { %v4297_v3 = vsel %vm5611_vm9, %v1748_v0, %v1848_v36  ;;  %vm5612_vm10 = vmmov %vm5608_vm0  ;;  %v5627_v36 = vld [vmem:[#allocation15_spill] sm:$0xff] }
 0x2b6   :  { %v4300_v7 = vsel %vm5612_vm10, %v1750_v57, %v1849_v25  ;;  %vm5613_vm13 = vmmov %vm5608_vm0  ;;  %v5620_v57 = vld [vmem:[#allocation8_spill] sm:$0xff]  ;;  %v4344_v61 = vmul.f32 %v4297_v3, %v5626_v22 }
 0x2b7   :  { %v4303_v27 = vsel %vm5613_vm13, %v1752_v54, %v1850_v52  ;;  %vm5614_vm1 = vmmov %vm5608_vm0  ;;  %v1890_v8 = vmul.f32 %v4279_v63, %v5620_v57  ;;  %v5621_v54 = vld [vmem:[#allocation9_spill] sm:$0xff]  ;;  %v4348_v1 = vmul.f32 %v4300_v7, %v5627_v36 }
 0x2b8   :  { %v4306_v51 = vsel %vm5614_vm1, %v1754_v26, %v1851_v12  ;;  %vm5615_vm14 = vmmov %vm5608_vm0  ;;  %v1893_v12 = vmul.f32 %v4288_v38, %v5623_v23  ;;  %v5624_v26 = vld [vmem:[#allocation12_spill] sm:$0xff]  ;;  %vm5629_vm1 = vnez %v5560_v62 }
 0x2b9   :  { %v4312_v44 = vsel %vm5615_vm14, %v1758_v46, %v1853_v55  ;;  %vm5616_vm11 = vmmov %vm5608_vm0  ;;  %v4317_v43 = vpop.permute.xlu1 %1775  ;;  %v1891_v55 = vmul.f32 %v4282_v59, %v5621_v54  ;;  %v1894_v25 = vmul.f32 %v4291_v24, %v5624_v26  ;;  %v4352_v46 = vmul.f32 %v4303_v27, %v5628_v20  ;;  %v5643_v54 = vld [vmem:[#allocation80_spill] sm:$0xff]  ;;  %v5645_v26 = vld [vmem:[#allocation81_spill] sm:$0xff] }
 0x2ba   :  { %v4315_v53 = vsel %vm5616_vm11, %v1760_v13, %v1854_v9  ;;  %vm5617_vm9 = vmmov %vm5608_vm0  ;;  %v1892_v9 = vmul.f32 %v4285_v31, %v5622_v37  ;;  %v5630_v13 = vld [vmem:[#allocation17_spill] sm:$0xff]  ;;  %vm5635_vm14 = vnez %v5558_v28  ;;  %vm5636_vm11 = vnez %v5562_v39  ;;  %v5648_v20 = vld [vmem:[#allocation83_spill] sm:$0xff] }
 0x2bb   :  { %v4320_v21 = vsel %vm5617_vm9, %v1762_v49, %v1855_v17  ;;  %vm5618_vm10 = vmmov %vm5608_vm0  ;;  %v4368_v5 = vmul.f32 %v4306_v51, %v5630_v13  ;;  %v4384_v49 = vmul.f32 %v4309_v15, %v5634_v58  ;;  %vm5637_vm9 = vnez %v5566_v48 }
 0x2bc   :  { %v4323_v0 = vsel %vm5618_vm10, %v1764_v40, %v1856_v41  ;;  %vm5619_vm13 = vmmov %vm5608_vm0  ;;  %v4338_v41 = vpop.permute.xlu0 %1770  ;;  %vm5631_vm0 = vnez %v5550_v6 }
 0x2bd   :  { %v4326_v2 = vsel %vm5619_vm13, %v1766_v33, %v1857_v29  ;;  %v1895_v29 = vmul.f32 %v4294_v16, %v5625_v32  ;;  %v1779_v34 = vsel %vm5553_vm15, %v4338_v41, %v4317_v43  ;;  %v1781_v50 = vsel %vm5557_vm5, %v4338_v41, %v4317_v43 }
 0x2be   :  { %v1783_v14 = vsel %vm5629_vm1, %v4338_v41, %v4317_v43  ;;  %v1778_v19 = vsel %vm5631_vm0, %v4338_v41, %v4317_v43  ;;  %vm5632_vm15 = vnez %v5554_v45  ;;  %vm5633_vm5 = vnez %v5564_v18 }
 0x2bf   :  { %v1780_v11 = vsel %vm5632_vm15, %v4338_v41, %v4317_v43  ;;  %v1785_v62 = vsel %vm5633_vm5, %v4338_v41, %v4317_v43  ;;  %v1782_v6 = vsel %vm5635_vm14, %v4338_v41, %v4317_v43  ;;  %v1784_v45 = vsel %vm5636_vm11, %v4338_v41, %v4317_v43 }
 0x2c0   :  { %v1786_v18 = vsel %vm5637_vm9, %v4338_v41, %v4317_v43  ;;  %v1787_v4 = vsel %vm5569_vm4, %v4338_v41, %v4317_v43  ;;  %v1789_v28 = vsel %vm5573_vm6, %v4338_v41, %v4317_v43  ;;  %v1954_v60 = vrot.slane %v1779_v34, 4 }
 0x2c1   :  { %v1955_v42 = vrot.slane %v1781_v50, 4  ;;  %v1956_v40 = vrot.slane %v1783_v14, 4  ;;  %v1788_v39 = vsel %vm5571_vm7, %v4338_v41, %v4317_v43  ;;  %v1790_v52 = vsel %vm5575_vm2, %v4338_v41, %v4317_v43 }
 0x2c2   :  { %vm5640_vm4 = vnez %v5639_v35  ;;  %v1957_v56 = vrot.slane %v1785_v62, 4  ;;  %v1792_v33 = vsel %vm5128_vm12, %v4338_v41, %v4317_v43  ;;  %v1793_v57 = vsel %vm5131_vm3, %v4338_v41, %v4317_v43  ;;  %vm5650_vm3 = vmmov %vm5618_vm10  ;;  %v5655_v35 = vld [vmem:[#allocation87_spill] sm:$0xff] }
 0x2c3   :  { %v1791_v10 = vsel %vm5640_vm4, %v4338_v41, %v4317_v43  ;;  %vm5644_vm2 = vnez %v5643_v54  ;;  %v1958_v23 = vrot.slane %v1787_v4, 4  ;;  %vm5646_vm7 = vnez %v5645_v26  ;;  %vm5651_vm6 = vmmov %vm5650_vm3  ;;  %v5653_v4 = vld [vmem:[#allocation85_spill] sm:$0xff] }
 0x2c4   :  { %v1794_v37 = vsel %vm5644_vm2, %v4338_v41, %v4317_v43  ;;  %v1795_v32 = vsel %vm5646_vm7, %v4338_v41, %v4317_v43  ;;  %v1796_v36 = vsel %vm5583_vm8, %v4338_v41, %v4317_v43  ;;  %vm5649_vm12 = vnez %v5648_v20  ;;  %vm5652_vm10 = vmmov %vm5650_vm3 }
 0x2c5   :  { %v1797_v34 = vsel %vm5649_vm12, %v4338_v41, %v4317_v43  ;;  %v1959_v50 = vrot.slane %v1789_v28, 4  ;;  %v1960_v14 = vrot.slane %v1791_v10, 4  ;;  %v4443_v13 = vsel %vm5650_vm3, %v1778_v19, %v1954_v60  ;;  %vm5657_vm1 = vmmov %vm5650_vm3 }
 0x2c6   :  { %v4446_v62 = vsel %vm5651_vm6, %v1780_v11, %v1955_v42  ;;  %v4449_v58 = vsel %vm5652_vm10, %v1782_v6, %v1956_v40  ;;  %vm5654_vm8 = vnez %v5653_v4  ;;  %vm5656_vm13 = vnez %v5655_v35  ;;  %v5658_v11 = vld [vmem:[#allocation90_spill] sm:$0xff]  ;;  %vm5660_vm15 = vmmov %vm5657_vm1 }
 0x2c7   :  { %v1799_v48 = vsel %vm5654_vm8, %v4338_v41, %v4317_v43  ;;  %v1801_v28 = vsel %vm5656_vm13, %v4338_v41, %v4317_v43  ;;  %v1961_v10 = vrot.slane %v1793_v57, 4  ;;  %v4460_v19 = vsel %vm5657_vm1, %v1784_v45, %v1957_v56  ;;  %vm5661_vm5 = vmmov %vm5657_vm1  ;;  %v5662_v56 = vld [vmem:[#allocation101_spill] sm:$0xff] }
 0x2c8   :  { %vm5659_vm0 = vnez %v5658_v11  ;;  %v1962_v60 = vrot.slane %v1795_v32, 4  ;;  %v1963_v42 = vrot.slane %v1797_v34, 4  ;;  %v4467_v40 = vsel %vm5660_vm15, %v1786_v18, %v1958_v23  ;;  %vm5664_vm11 = vmmov %vm5657_vm1  ;;  %v5670_v34 = vld [vmem:[#allocation84_spill] sm:$0xff]  ;;  %v5679_v11 = vld [vmem:[#allocation99_spill] sm:$0xff] }
 0x2c9   :  { %v1803_v6 = vsel %vm5659_vm0, %v4338_v41, %v4317_v43  ;;  %v4470_v17 = vsel %vm5661_vm5, %v1788_v39, %v1959_v50  ;;  %v2002_v47 = vadd.f32 %v4443_v13, %v1890_v8  ;;  %v2003_v57 = vadd.f32 %v4446_v62, %v1891_v55  ;;  %v5665_v39 = vld [vmem:[#allocation103_spill] sm:$0xff]  ;;  %vm5667_vm4 = vmmov %vm5657_vm1 }
 0x2ca   :  { %v2004_v45 = vadd.f32 %v4449_v58, %v1892_v9  ;;  %vm5663_vm14 = vnez %v5662_v56  ;;  %v1964_v26 = vrot.slane %v1799_v48, 4  ;;  %v4480_v32 = vsel %vm5664_vm11, %v1790_v52, %v1960_v14  ;;  %vm5669_vm7 = vmmov %vm5657_vm1 }
 0x2cb   :  { %v1805_v54 = vsel %vm5663_vm14, %v4338_v41, %v4317_v43  ;;  %v2005_v18 = vadd.f32 %v4460_v19, %v1893_v12  ;;  %vm5666_vm9 = vnez %v5665_v39  ;;  %v1965_v23 = vrot.slane %v1801_v28, 4  ;;  %2034 = vst [vmem:[#allocation5] sm:$0xff] %v2002_v47  ;;  %vm5672_vm3 = vmmov %vm5657_vm1  ;;  %v5689_v39 = vld [vmem:[#allocation21_spill] sm:$0xff] }
 0x2cc   :  { %v1807_v8 = vsel %vm5666_vm9, %v4338_v41, %v4317_v43  ;;  %v4488_v55 = vsel %vm5667_vm4, %v1792_v33, %v1961_v10  ;;  %v2006_v9 = vadd.f32 %v4467_v40, %v1894_v25  ;;  %vm5668_vm2 = vnez %v5603_v30  ;;  %2035 = vst [vmem:[#allocation5 + $0x8] sm:$0xff] %v2003_v57  ;;  %vm5675_vm10 = vmmov %vm5657_vm1  ;;  %v5683_v57 = vld [vmem:[#allocation102_spill] sm:$0xff] }
 0x2cd   :  { %v1809_v52 = vsel %vm5668_vm2, %v4338_v41, %v4317_v43  ;;  %v1966_v22 = vrot.slane %v1803_v6, 4  ;;  %v4496_v12 = vsel %vm5669_vm7, %v1794_v37, %v1962_v60  ;;  %v2007_v20 = vadd.f32 %v4470_v17, %v1895_v29  ;;  %2036 = vst [vmem:[#allocation5 + $0x10] sm:$0xff] %v2004_v45  ;;  %v5673_v37 = vld [vmem:[#allocation86_spill] sm:$0xff]  ;;  %vm5678_vm13 = vmmov %vm5657_vm1  ;;  %v5685_v45 = vld [vmem:[#allocation20_spill] sm:$0xff] }
 0x2ce   :  { %vm5671_vm12 = vnez %v5670_v34  ;;  %v1967_v50 = vrot.slane %v1805_v54, 4  ;;  %v4504_v25 = vsel %vm5672_vm3, %v1796_v36, %v1963_v42  ;;  %v2008_v30 = vadd.f32 %v4480_v32, %v4344_v61  ;;  %2037 = vst [vmem:[#allocation5 + $0x18] sm:$0xff] %v2005_v18  ;;  %v5676_v36 = vld [vmem:[#allocation89_spill] sm:$0xff]  ;;  %vm5682_vm0 = vmmov %vm5672_vm3  ;;  %v5687_v18 = vld [vmem:[#allocation104_spill] sm:$0xff] }
 0x2cf   :  { %v1798_v33 = vsel %vm5671_vm12, %v4338_v41, %v4317_v43  ;;  %vm5674_vm6 = vnez %v5673_v37  ;;  %v1968_v29 = vrot.slane %v1807_v8, 4  ;;  %v2009_v48 = vadd.f32 %v4488_v55, %v4348_v1  ;;  %2038 = vst [vmem:[#allocation5 + $0x20] sm:$0xff] %v2006_v9  ;;  %v5681_v1 = vld [vmem:[#allocation19_spill] sm:$0xff]  ;;  %vm5686_vm5 = vmmov %vm5682_vm0  ;;  %v5695_v37 = vld [vmem:[#allocation30_spill] sm:$0xff] }
 0x2d0   :  { %v1800_v14 = vsel %vm5674_vm6, %v4338_v41, %v4317_v43  ;;  %v4513_v4 = vsel %vm5675_vm10, %v1798_v33, %v1964_v26  ;;  %vm5677_vm8 = vnez %v5676_v36  ;;  %v1969_v61 = vrot.slane %v1809_v52, 4  ;;  %2039 = vst [vmem:[#allocation5 + $0x28] sm:$0xff] %v2007_v20  ;;  %vm5690_vm11 = vmmov %vm5682_vm0  ;;  %v5691_v52 = vld [vmem:[#allocation22_spill] sm:$0xff]  ;;  %v5693_v34 = vld [vmem:[#allocation27_spill] sm:$0xff] }
 0x2d1   :  { %v1802_v35 = vsel %vm5677_vm8, %v4338_v41, %v4317_v43  ;;  %v4522_v28 = vsel %vm5678_vm13, %v1800_v14, %v1965_v23  ;;  %v2010_v10 = vadd.f32 %v4496_v12, %v4352_v46  ;;  %vm5680_vm1 = vnez %v5679_v11  ;;  %2040 = vst [vmem:[#allocation5 + $0x30] sm:$0xff] %v2008_v30  ;;  %vm5692_vm9 = vmmov %vm5682_vm0 }
 0x2d2   :  { %v1804_v6 = vsel %vm5680_vm1, %v4338_v41, %v4317_v43  ;;  %v1901_v60 = vmul.f32 %v4312_v44, %v5681_v1  ;;  %v4533_v42 = vsel %vm5682_vm0, %v1802_v35, %v1966_v22  ;;  %v2011_v47 = vadd.f32 %v4504_v25, %v4368_v5  ;;  %2041 = vst [vmem:[#allocation5 + $0x38] sm:$0xff] %v2009_v48  ;;  %v5696_v48 = vld [vmem:[#allocation32_spill] sm:$0xff] }
 0x2d3   :  { %vm5684_vm15 = vnez %v5683_v57  ;;  %v1902_v56 = vmul.f32 %v4315_v53, %v5685_v45  ;;  %v1983_v54 = vsel %vm5686_vm5, %v1804_v6, %v1967_v50  ;;  %v2012_v26 = vadd.f32 %v4513_v4, %v4384_v49  ;;  %2042 = vst [vmem:[#allocation5 + $0x40] sm:$0xff] %v2010_v10 }
 0x2d4   :  { %v1806_v46 = vsel %vm5684_vm15, %v4338_v41, %v4317_v43  ;;  %vm5688_vm14 = vnez %v5687_v18  ;;  %v1903_v8 = vmul.f32 %v4320_v21, %v5689_v39  ;;  %v2013_v9 = vadd.f32 %v4522_v28, %v1901_v60  ;;  %2043 = vst [vmem:[#allocation5 + $0x48] sm:$0xff] %v2011_v47 }
 0x2d5   :  { %v1808_v5 = vsel %vm5688_vm14, %v4338_v41, %v4317_v43  ;;  %v1984_v23 = vsel %vm5690_vm11, %v1806_v46, %v1968_v29  ;;  %v1904_v22 = vmul.f32 %v4323_v0, %v5691_v52  ;;  %v2014_v49 = vadd.f32 %v4533_v42, %v1902_v56  ;;  %v5694_v41 = vld [vmem:[#allocation29_spill] sm:$0xff]  ;;  %2044 = vst [vmem:[#allocation5 + $0x50] sm:$0xff] %v2012_v26 }
 0x2d6   :  { %v1985_v20 = vsel %vm5692_vm9, %v1808_v5, %v1969_v61  ;;  %v1905_v33 = vmul.f32 %v4326_v2, %v5693_v34  ;;  %v2015_v43 = vadd.f32 %v1983_v54, %v1903_v8  ;;  %v1906_v50 = vmul.f32 %v4279_v63, %v5694_v41  ;;  %2045 = vst [vmem:[#allocation5 + $0x58] sm:$0xff] %v2013_v9  ;;  %v5697_v61 = vld [vmem:[#allocation39_spill] sm:$0xff]  ;;  %v5698_v63 = vld [vmem:[#allocation41_spill] sm:$0xff] }
 0x2d7   :  { %v2016_v30 = vadd.f32 %v1984_v23, %v1904_v22  ;;  %v1907_v14 = vmul.f32 %v4282_v59, %v5695_v37  ;;  %v1908_v36 = vmul.f32 %v4285_v31, %v5696_v48  ;;  %2046 = vst [vmem:[#allocation5 + $0x60] sm:$0xff] %v2014_v49  ;;  %v1909_v10 = vmul.f32 %v4288_v38, %v5697_v61  ;;  %v5699_v59 = vld [vmem:[#allocation42_spill] sm:$0xff] }
 0x2d8   :  { %v2017_v29 = vadd.f32 %v1985_v20, %v1905_v33  ;;  %v2018_v35 = vadd.f32 %v4443_v13, %v1906_v50  ;;  %2047 = vst [vmem:[#allocation5 + $0x68] sm:$0xff] %v2015_v43  ;;  %v1910_v6 = vmul.f32 %v4291_v24, %v5698_v63  ;;  %v1911_v60 = vmul.f32 %v4294_v16, %v5699_v59  ;;  %v5700_v13 = vld [vmem:[#allocation44_spill] sm:$0xff] }
 0x2d9   :  { %v2019_v11 = vadd.f32 %v4446_v62, %v1907_v14  ;;  %v2020_v1 = vadd.f32 %v4449_v58, %v1908_v36  ;;  %2048 = vst [vmem:[#allocation5 + $0x70] sm:$0xff] %v2016_v30  ;;  %v2021_v31 = vadd.f32 %v4460_v19, %v1909_v10  ;;  %v1912_v47 = vmul.f32 %v4297_v3, %v5700_v13  ;;  %v5701_v62 = vld [vmem:[#allocation47_spill] sm:$0xff]  ;;  %v5702_v58 = vld [vmem:[#allocation54_spill] sm:$0xff] }
 0x2da   :  { %2049 = vst [vmem:[#allocation5 + $0x78] sm:$0xff] %v2017_v29  ;;  %v2022_v38 = vadd.f32 %v4467_v40, %v1910_v6  ;;  %v1913_v57 = vmul.f32 %v4300_v7, %v5701_v62  ;;  %v2023_v24 = vadd.f32 %v4470_v17, %v1911_v60  ;;  %v1914_v46 = vmul.f32 %v4303_v27, %v5702_v58  ;;  %v5703_v19 = vld [vmem:[#allocation59_spill] sm:$0xff]  ;;  %v5704_v40 = vld [vmem:[#allocation64_spill] sm:$0xff] }
 0x2db   :  { %2050 = vst [vmem:[#allocation5 + $0x80] sm:$0xff] %v2018_v35  ;;  %v2024_v16 = vadd.f32 %v4480_v32, %v1912_v47  ;;  %v1915_v45 = vmul.f32 %v4306_v51, %v5703_v19  ;;  %v1916_v56 = vmul.f32 %v4309_v15, %v5704_v40  ;;  %v5705_v17 = vld [vmem:[#allocation67_spill] sm:$0xff]  ;;  %v5706_v32 = vld [vmem:[#allocation88_spill] sm:$0xff] }
 0x2dc   :  { %2051 = vst [vmem:[#allocation5 + $0x88] sm:$0xff] %v2019_v11  ;;  %v2025_v3 = vadd.f32 %v4488_v55, %v1913_v57  ;;  %v2026_v7 = vadd.f32 %v4496_v12, %v1914_v46  ;;  %v1917_v26 = vmul.f32 %v4312_v44, %v5705_v17  ;;  %v1918_v18 = vmul.f32 %v4315_v53, %v5706_v32  ;;  %v5707_v55 = vld [vmem:[#allocation91_spill] sm:$0xff]  ;;  %v5708_v12 = vld [vmem:[#allocation93_spill] sm:$0xff] }
 0x2dd   :  { %2052 = vst [vmem:[#allocation5 + $0x90] sm:$0xff] %v2020_v1  ;;  %v2027_v27 = vadd.f32 %v4504_v25, %v1915_v45  ;;  %v2028_v51 = vadd.f32 %v4513_v4, %v1916_v56  ;;  %v1919_v5 = vmul.f32 %v4320_v21, %v5707_v55  ;;  %v1920_v39 = vmul.f32 %v4323_v0, %v5708_v12  ;;  %v5709_v25 = vld [vmem:[#allocation95_spill] sm:$0xff] }
 0x2de   :  { %2053 = vst [vmem:[#allocation5 + $0x98] sm:$0xff] %v2021_v31  ;;  %v2029_v15 = vadd.f32 %v4522_v28, %v1917_v26  ;;  %v2030_v44 = vadd.f32 %v4533_v42, %v1918_v18  ;;  %v1921_v8 = vmul.f32 %v4326_v2, %v5709_v25 }
 0x2df   :  { %2054 = vst [vmem:[#allocation5 + $0xa0] sm:$0xff] %v2022_v38  ;;  %v2031_v9 = vadd.f32 %v1983_v54, %v1919_v5  ;;  %v2032_v53 = vadd.f32 %v1984_v23, %v1920_v39 }
 0x2e0   :  { %2055 = vst [vmem:[#allocation5 + $0xa8] sm:$0xff] %v2023_v24  ;;  %v2033_v21 = vadd.f32 %v1985_v20, %v1921_v8 }
 0x2e1   :  { %2056 = vst [vmem:[#allocation5 + $0xb0] sm:$0xff] %v2024_v16 }
 0x2e2   :  { %2057 = vst [vmem:[#allocation5 + $0xb8] sm:$0xff] %v2025_v3 }
 0x2e3   :  { %2058 = vst [vmem:[#allocation5 + $0xc0] sm:$0xff] %v2026_v7 }
 0x2e4   :  { %2059 = vst [vmem:[#allocation5 + $0xc8] sm:$0xff] %v2027_v27 }
 0x2e5   :  { %2060 = vst [vmem:[#allocation5 + $0xd0] sm:$0xff] %v2028_v51 }
 0x2e6   :  { %2061 = vst [vmem:[#allocation5 + $0xd8] sm:$0xff] %v2029_v15 }
 0x2e7   :  { %2062 = vst [vmem:[#allocation5 + $0xe0] sm:$0xff] %v2030_v44 }
 0x2e8   :  { %2063 = vst [vmem:[#allocation5 + $0xe8] sm:$0xff] %v2031_v9 }
 0x2e9   :  { %2064 = vst [vmem:[#allocation5 + $0xf0] sm:$0xff] %v2032_v53 }
 0x2ea   :  { %2065 = vst [vmem:[#allocation5 + $0xf8] sm:$0xff] %v2033_v21 }
 0x2eb   :  { %2078 = dma.vmem_to_hbm [thread:$0]  %s2071_s4, 4096, %s2073_s7, [#allocation4], %s2150_s23, %s2150_s23, %s2151_s24  }
 0x2ec   :  { %2147 = dma.done.wait [#allocation4], 4096  }
 0x2ed   :  { %2148 = vsyncadd [#allocation4], 4294963200 }
 0x2ee   :  { %2083 = vsyncpa [#allocation3], 1 }
 0x2ef   :  { %2084 = vsyncpa [#allocation4], 1 }

</bundles_post_ra>
